<compile_context>
chip_gen: v7x
topology: tpu7x:2x2x1
jax: 0.10.0
libtpu: 0.0.40
codegen_flags: <defaults>
</compile_context>

<pallas_src>
import jax
import jax.numpy as jnp
from jax.experimental import pallas as pl
from jax.experimental.pallas import tpu as pltpu


# ----------------------------------------------------------------------------
# Fully fused kernel: all layers, both directions, packed-seq masking, FC head.
# ----------------------------------------------------------------------------
def _make_fused_kernel(T, Bp, E, H, O, n_layers):
    G = 4 * H

    def kernel(*refs):
        x_ref = refs[0]                                   # (T*Bp, E)
        mask_ref = refs[1]                                # (T*Bp, 1)
        w_refs = refs[2:2 + 6 * n_layers]                 # per layer: wih_f, whh_f, b_f, wih_b, whh_b, b_b
        fc_w_ref = refs[2 + 6 * n_layers]                 # (2H, O)
        fc_b_ref = refs[3 + 6 * n_layers]                 # (1, O)
        o_ref = refs[4 + 6 * n_layers]                    # (Bp, O)
        gxf_ref, gxb_ref, seqf_ref, seqb_ref = refs[5 + 6 * n_layers:]

        # hoisted lane mask selecting the `g` (cell-candidate) gate columns
        lane = jax.lax.broadcasted_iota(jnp.int32, (Bp, G), 1)
        g_lanes = (lane >= 2 * H) & (lane < 3 * H)

        def cell(gates, c_prev):
            # full-vreg nonlinearities (EUP slot), then slice activated gates
            act = jnp.where(g_lanes, jnp.tanh(gates), jax.nn.sigmoid(gates))
            i_g = act[:, 0:H]
            f_g = act[:, H:2 * H]
            g_g = act[:, 2 * H:3 * H]
            o_g = act[:, 3 * H:4 * H]
            c_new = f_g * c_prev + i_g * g_g
            h_new = o_g * jnp.tanh(c_new)
            return h_new, c_new

        h_f = c_f = h_b = c_b = None
        for layer in range(n_layers):
            wih_f, whh_f, b_f, wih_b, whh_b, b_b = w_refs[6 * layer:6 * layer + 6]
            last = layer == n_layers - 1

            # ---- input projection hoisted out of the recurrence -------------
            if layer == 0:
                x = x_ref[...]                                            # (T*Bp, E)
                gxf_ref[...] = (jnp.dot(x, wih_f[...],
                                        preferred_element_type=jnp.float32) + b_f[...])
                gxb_ref[...] = (jnp.dot(x, wih_b[...],
                                        preferred_element_type=jnp.float32) + b_b[...])
            else:
                pf = seqf_ref[...]                                        # (T*Bp, H) prev fwd
                pb = seqb_ref[...]                                        # (T*Bp, H) prev bwd
                # split W_ih (2H,4H) by rows -> avoids concatenating [fwd, bwd]
                gxf_ref[...] = (jnp.dot(pf, wih_f[0:H, :], preferred_element_type=jnp.float32)
                                + jnp.dot(pb, wih_f[H:2 * H, :], preferred_element_type=jnp.float32)
                                + b_f[...])
                gxb_ref[...] = (jnp.dot(pf, wih_b[0:H, :], preferred_element_type=jnp.float32)
                                + jnp.dot(pb, wih_b[H:2 * H, :], preferred_element_type=jnp.float32)
                                + b_b[...])

            whh_f_v = whh_f[...]                                          # resident (H, 4H)
            whh_b_v = whh_b[...]

            h_f = jnp.zeros((Bp, H), jnp.float32)
            c_f = jnp.zeros((Bp, H), jnp.float32)
            h_b = jnp.zeros((Bp, H), jnp.float32)
            c_b = jnp.zeros((Bp, H), jnp.float32)

            # ---- fused fwd+bwd recurrence (trace-time unrolled, T small) ----
            for s in range(T):
                tf, tb = s, T - 1 - s

                # forward direction, timestep tf
                m_f = mask_ref[pl.ds(tf * Bp, Bp), :] > 0.5                # (Bp, 1)
                gates_f = (gxf_ref[pl.ds(tf * Bp, Bp), :]
                           + jnp.dot(h_f, whh_f_v, preferred_element_type=jnp.float32))
                hn, cn = cell(gates_f, c_f)
                h_f = jnp.where(m_f, hn, h_f)                              # hold on padded steps
                c_f = jnp.where(m_f, cn, c_f)

                # backward direction, timestep tb
                m_b = mask_ref[pl.ds(tb * Bp, Bp), :] > 0.5
                gates_b = (gxb_ref[pl.ds(tb * Bp, Bp), :]
                           + jnp.dot(h_b, whh_b_v, preferred_element_type=jnp.float32))
                hn, cn = cell(gates_b, c_b)
                h_b = jnp.where(m_b, hn, h_b)
                c_b = jnp.where(m_b, cn, c_b)

                if not last:                       # last layer only needs final states
                    seqf_ref[pl.ds(tf * Bp, Bp), :] = h_f
                    seqb_ref[pl.ds(tb * Bp, Bp), :] = h_b

        # ---- FC epilogue: concat([h_bwd_final, h_fwd_final]) @ W_fc^T + b ----
        o_ref[...] = (jnp.dot(h_b, fc_w_ref[0:H, :], preferred_element_type=jnp.float32)
                      + jnp.dot(h_f, fc_w_ref[H:2 * H, :], preferred_element_type=jnp.float32)
                      + fc_b_ref[...])

    return kernel


# ----------------------------------------------------------------------------
# Parameters (deterministic, synthetic — shapes follow the PyTorch module).
# ----------------------------------------------------------------------------
def init_params(key, vocab_size, E, H, O, n_layers, pad_idx):
    keys = iter(jax.random.split(key, 3 + 8 * n_layers))

    def u(shape, scale):
        return jax.random.uniform(next(keys), shape, jnp.float32, -scale, scale)

    emb = jax.random.normal(next(keys), (vocab_size, E), jnp.float32) * 0.1
    emb = emb.at[pad_idx].set(0.0)                    # padding_idx row is zero

    scale = 1.0 / (H ** 0.5)
    lstm = []
    for layer in range(n_layers):
        in_dim = E if layer == 0 else 2 * H
        layer_p = {}
        for d in ("fwd", "bwd"):
            layer_p[d] = dict(
                w_ih_t=u((in_dim, 4 * H), scale),                 # W_ih^T
                w_hh_t=u((H, 4 * H), scale),                      # W_hh^T
                b=u((1, 4 * H), scale) + u((1, 4 * H), scale),    # b_ih + b_hh
            )
        lstm.append(layer_p)

    fc_scale = 1.0 / ((2 * H) ** 0.5)
    fc_w_t = u((2 * H, O), fc_scale)
    fc_b = u((1, O), fc_scale)
    return dict(emb=emb, lstm=lstm, fc_w_t=fc_w_t, fc_b=fc_b)


# ----------------------------------------------------------------------------
# Forward pass == RNN.forward(text, text_lengths) in eval mode.
# ----------------------------------------------------------------------------
def rnn_forward(params, text, lengths):
    T, B = text.shape
    E = params["emb"].shape[1]
    H = params["lstm"][0]["fwd"]["w_hh_t"].shape[0]
    O = params["fc_w_t"].shape[1]
    n_layers = len(params["lstm"])
    Bp = max(8, -(-B // 8) * 8)                        # pad batch to full sublanes

    # embedding lookup (gather: glue, stays in plain JAX); dropout = identity (eval)
    embedded = jnp.take(params["emb"], text, axis=0)                 # (T, B, E)
    if Bp != B:
        embedded = jnp.pad(embedded, ((0, 0), (0, Bp - B), (0, 0)))
        lengths_p = jnp.pad(lengths, (0, Bp - B))                    # padded rows: length 0
    else:
        lengths_p = lengths

    # per-timestep validity mask (emulates pack_padded_sequence)
    mask = (jnp.arange(T, dtype=jnp.int32)[:, None]
            < lengths_p[None, :]).astype(jnp.float32)                # (T, Bp)

    x2d = embedded.reshape(T * Bp, E)                                # (T*Bp, E)
    mask2d = mask.reshape(T * Bp, 1)                                 # (T*Bp, 1)

    weight_args = []
    for lp in params["lstm"]:
        for d in ("fwd", "bwd"):
            weight_args += [lp[d]["w_ih_t"], lp[d]["w_hh_t"], lp[d]["b"]]

    kernel = _make_fused_kernel(T, Bp, E, H, O, n_layers)
    logits_p = pl.pallas_call(
        kernel,
        out_shape=jax.ShapeDtypeStruct((Bp, O), jnp.float32),
        scratch_shapes=[
            pltpu.VMEM((T * Bp, 4 * H), jnp.float32),   # precomputed x-gates, fwd
            pltpu.VMEM((T * Bp, 4 * H), jnp.float32),   # precomputed x-gates, bwd
            pltpu.VMEM((T * Bp, H), jnp.float32),       # fwd hidden sequence (layer input)
            pltpu.VMEM((T * Bp, H), jnp.float32),       # bwd hidden sequence (layer input)
        ],
    )(x2d, mask2d, *weight_args, params["fc_w_t"], params["fc_b"])
    return logits_p[:B]                                              # (B, O)


if __name__ == "__main__":
    vocab_size, E, H, O = 50, 16, 32, 4
    n_layers, pad_idx = 2, 0
    T, B = 8, 4

    key = jax.random.PRNGKey(0)
    pkey, tkey = jax.random.split(key)
    params = init_params(pkey, vocab_size, E, H, O, n_layers, pad_idx)

    # lengths sorted descending (pack_padded_sequence enforce_sorted default)
    lengths = jnp.array([8, 6, 5, 3], dtype=jnp.int32)
    tokens = jax.random.randint(tkey, (T, B), 1, vocab_size, dtype=jnp.int32)
    valid = jnp.arange(T, dtype=jnp.int32)[:, None] < lengths[None, :]
    text = jnp.where(valid, tokens, pad_idx)                          # (T, B)

    logits = rnn_forward(params, text, lengths)
    jax.block_until_ready(logits)
    assert logits.shape == (B, O) and logits.dtype == jnp.float32
    print("KERNEL_OK")
</pallas_src>

<mosaic_0001>
module attributes {stable_mosaic.version = 11 : i64} {
  func.func @kernel(%arg0: memref<64x16xf32, #tpu.memory_space<vmem>>, %arg1: memref<64x1xf32, #tpu.memory_space<vmem>>, %arg2: memref<16x128xf32, #tpu.memory_space<vmem>>, %arg3: memref<32x128xf32, #tpu.memory_space<vmem>>, %arg4: memref<1x128xf32, #tpu.memory_space<vmem>>, %arg5: memref<16x128xf32, #tpu.memory_space<vmem>>, %arg6: memref<32x128xf32, #tpu.memory_space<vmem>>, %arg7: memref<1x128xf32, #tpu.memory_space<vmem>>, %arg8: memref<64x128xf32, #tpu.memory_space<vmem>>, %arg9: memref<32x128xf32, #tpu.memory_space<vmem>>, %arg10: memref<1x128xf32, #tpu.memory_space<vmem>>, %arg11: memref<64x128xf32, #tpu.memory_space<vmem>>, %arg12: memref<32x128xf32, #tpu.memory_space<vmem>>, %arg13: memref<1x128xf32, #tpu.memory_space<vmem>>, %arg14: memref<64x4xf32, #tpu.memory_space<vmem>>, %arg15: memref<1x4xf32, #tpu.memory_space<vmem>>, %arg16: memref<8x4xf32, #tpu.memory_space<vmem>>, %arg17: memref<64x128xf32, #tpu.memory_space<vmem>>, %arg18: memref<64x128xf32, #tpu.memory_space<vmem>>, %arg19: memref<64x32xf32, #tpu.memory_space<vmem>>, %arg20: memref<64x32xf32, #tpu.memory_space<vmem>>) attributes {dimension_semantics = [], scalar_prefetch = 0 : i64, scratch_operands = 4 : i64, tpu.core_type = #tpu.core_type<tc>} {
    %0 = tpu.iota {dimensions = array<i32: 1>} : vector<8x128xi32>
    %c64_i32 = arith.constant 64 : i32
    %1 = vector.broadcast %c64_i32 : i32 to vector<8x128xi32>
    %2 = arith.cmpi sge, %0, %1 : vector<8x128xi32>
    %c96_i32 = arith.constant 96 : i32
    %3 = vector.broadcast %c96_i32 : i32 to vector<8x128xi32>
    %4 = arith.cmpi slt, %0, %3 : vector<8x128xi32>
    %5 = arith.andi %2, %4 : vector<8x128xi1>
    %c0 = arith.constant 0 : index
    %c0_0 = arith.constant 0 : index
    %6 = vector.load %arg0[%c0, %c0_0] : memref<64x16xf32, #tpu.memory_space<vmem>>, vector<64x16xf32>
    %c0_1 = arith.constant 0 : index
    %c0_2 = arith.constant 0 : index
    %7 = vector.load %arg2[%c0_1, %c0_2] : memref<16x128xf32, #tpu.memory_space<vmem>>, vector<16x128xf32>
    %cst = arith.constant dense<0.000000e+00> : vector<64x128xf32>
    %8 = tpu.matmul %6, %7, %cst {dimension_numbers = #tpu.dot_dimension_numbers<[1], [0], [0], [1], [0, 0, 1, 1], [], []>} : vector<64x16xf32>, vector<16x128xf32>, vector<64x128xf32> -> vector<64x128xf32>
    %c0_3 = arith.constant 0 : index
    %c0_4 = arith.constant 0 : index
    %9 = vector.load %arg4[%c0_3, %c0_4] : memref<1x128xf32, #tpu.memory_space<vmem>>, vector<1x128xf32>
    %10 = vector.broadcast %9 : vector<1x128xf32> to vector<64x128xf32>
    %11 = arith.addf %8, %10 : vector<64x128xf32>
    %c0_5 = arith.constant 0 : index
    %c0_6 = arith.constant 0 : index
    %12 = vector.load %arg17[%c0_5, %c0_6] : memref<64x128xf32, #tpu.memory_space<vmem>>, vector<64x128xf32>
    tpu.vector_store %arg17[%c0_5, %c0_6], %11 {strides = array<i32>} : memref<64x128xf32, #tpu.memory_space<vmem>>, vector<64x128xf32>,
    %c0_7 = arith.constant 0 : index
    %c0_8 = arith.constant 0 : index
    %13 = vector.load %arg5[%c0_7, %c0_8] : memref<16x128xf32, #tpu.memory_space<vmem>>, vector<16x128xf32>
    %cst_9 = arith.constant dense<0.000000e+00> : vector<64x128xf32>
    %14 = tpu.matmul %6, %13, %cst_9 {dimension_numbers = #tpu.dot_dimension_numbers<[1], [0], [0], [1], [0, 0, 1, 1], [], []>} : vector<64x16xf32>, vector<16x128xf32>, vector<64x128xf32> -> vector<64x128xf32>
    %c0_10 = arith.constant 0 : index
    %c0_11 = arith.constant 0 : index
    %15 = vector.load %arg7[%c0_10, %c0_11] : memref<1x128xf32, #tpu.memory_space<vmem>>, vector<1x128xf32>
    %16 = vector.broadcast %15 : vector<1x128xf32> to vector<64x128xf32>
    %17 = arith.addf %14, %16 : vector<64x128xf32>
    %c0_12 = arith.constant 0 : index
    %c0_13 = arith.constant 0 : index
    %18 = vector.load %arg18[%c0_12, %c0_13] : memref<64x128xf32, #tpu.memory_space<vmem>>, vector<64x128xf32>
    tpu.vector_store %arg18[%c0_12, %c0_13], %17 {strides = array<i32>} : memref<64x128xf32, #tpu.memory_space<vmem>>, vector<64x128xf32>,
    %c0_14 = arith.constant 0 : index
    %c0_15 = arith.constant 0 : index
    %19 = vector.load %arg3[%c0_14, %c0_15] : memref<32x128xf32, #tpu.memory_space<vmem>>, vector<32x128xf32>
    %c0_16 = arith.constant 0 : index
    %c0_17 = arith.constant 0 : index
    %20 = vector.load %arg6[%c0_16, %c0_17] : memref<32x128xf32, #tpu.memory_space<vmem>>, vector<32x128xf32>
    %cst_18 = arith.constant 0.000000e+00 : f32
    %21 = vector.broadcast %cst_18 : f32 to vector<8x32xf32>
    %cst_19 = arith.constant 0.000000e+00 : f32
    %22 = vector.broadcast %cst_19 : f32 to vector<8x32xf32>
    %cst_20 = arith.constant 0.000000e+00 : f32
    %23 = vector.broadcast %cst_20 : f32 to vector<8x32xf32>
    %cst_21 = arith.constant 0.000000e+00 : f32
    %24 = vector.broadcast %cst_21 : f32 to vector<8x32xf32>
    %c0_22 = arith.constant 0 : index
    %c0_23 = arith.constant 0 : index
    %25 = vector.load %arg1[%c0_22, %c0_23] : memref<64x1xf32, #tpu.memory_space<vmem>>, vector<8x1xf32>
    %cst_24 = arith.constant 5.000000e-01 : f32
    %26 = vector.broadcast %cst_24 : f32 to vector<8x1xf32>
    %27 = arith.cmpf ogt, %25, %26 : vector<8x1xf32>
    %c0_25 = arith.constant 0 : index
    %c0_26 = arith.constant 0 : index
    %28 = vector.load %arg17[%c0_25, %c0_26] : memref<64x128xf32, #tpu.memory_space<vmem>>, vector<8x128xf32>
    %cst_27 = arith.constant dense<0.000000e+00> : vector<8x128xf32>
    %29 = tpu.matmul %21, %19, %cst_27 {dimension_numbers = #tpu.dot_dimension_numbers<[1], [0], [0], [1], [0, 0, 1, 1], [], []>} : vector<8x32xf32>, vector<32x128xf32>, vector<8x128xf32> -> vector<8x128xf32>
    %30 = arith.addf %28, %29 : vector<8x128xf32>
    %31 = math.tanh %30 : vector<8x128xf32>
    %32 = arith.negf %30 : vector<8x128xf32>
    %33 = math.exp %32 : vector<8x128xf32>
    %cst_28 = arith.constant 1.000000e+00 : f32
    %34 = vector.broadcast %cst_28 : f32 to vector<8x128xf32>
    %35 = arith.addf %34, %33 : vector<8x128xf32>
    %36 = arith.divf %34, %35 : vector<8x128xf32>
    %37 = arith.select %5, %31, %36 : vector<8x128xi1>, vector<8x128xf32>
    %38 = vector.extract_strided_slice %37 {offsets = [0, 0], sizes = [8, 32], strides = [1, 1]} : vector<8x128xf32> to vector<8x32xf32>
    %39 = vector.extract_strided_slice %37 {offsets = [0, 32], sizes = [8, 32], strides = [1, 1]} : vector<8x128xf32> to vector<8x32xf32>
    %40 = vector.extract_strided_slice %37 {offsets = [0, 64], sizes = [8, 32], strides = [1, 1]} : vector<8x128xf32> to vector<8x32xf32>
    %41 = vector.extract_strided_slice %37 {offsets = [0, 96], sizes = [8, 32], strides = [1, 1]} : vector<8x128xf32> to vector<8x32xf32>
    %42 = arith.mulf %39, %22 : vector<8x32xf32>
    %43 = arith.mulf %38, %40 : vector<8x32xf32>
    %44 = arith.addf %42, %43 : vector<8x32xf32>
    %45 = math.tanh %44 : vector<8x32xf32>
    %46 = arith.mulf %41, %45 : vector<8x32xf32>
    %47 = vector.shape_cast %27 : vector<8x1xi1> to vector<8x1xi1>
    %48 = vector.broadcast %47 : vector<8x1xi1> to vector<8x32xi1>
    %49 = arith.select %48, %46, %21 : vector<8x32xi1>, vector<8x32xf32>
    %50 = vector.shape_cast %27 : vector<8x1xi1> to vector<8x1xi1>
    %51 = vector.broadcast %50 : vector<8x1xi1> to vector<8x32xi1>
    %52 = arith.select %51, %44, %22 : vector<8x32xi1>, vector<8x32xf32>
    %c56 = arith.constant 56 : index
    %c0_29 = arith.constant 0 : index
    %53 = vector.load %arg1[%c56, %c0_29] : memref<64x1xf32, #tpu.memory_space<vmem>>, vector<8x1xf32>
    %cst_30 = arith.constant 5.000000e-01 : f32
    %54 = vector.broadcast %cst_30 : f32 to vector<8x1xf32>
    %55 = arith.cmpf ogt, %53, %54 : vector<8x1xf32>
    %c56_31 = arith.constant 56 : index
    %c0_32 = arith.constant 0 : index
    %56 = vector.load %arg18[%c56_31, %c0_32] : memref<64x128xf32, #tpu.memory_space<vmem>>, vector<8x128xf32>
    %cst_33 = arith.constant dense<0.000000e+00> : vector<8x128xf32>
    %57 = tpu.matmul %23, %20, %cst_33 {dimension_numbers = #tpu.dot_dimension_numbers<[1], [0], [0], [1], [0, 0, 1, 1], [], []>} : vector<8x32xf32>, vector<32x128xf32>, vector<8x128xf32> -> vector<8x128xf32>
    %58 = arith.addf %56, %57 : vector<8x128xf32>
    %59 = math.tanh %58 : vector<8x128xf32>
    %60 = arith.negf %58 : vector<8x128xf32>
    %61 = math.exp %60 : vector<8x128xf32>
    %cst_34 = arith.constant 1.000000e+00 : f32
    %62 = vector.broadcast %cst_34 : f32 to vector<8x128xf32>
    %63 = arith.addf %62, %61 : vector<8x128xf32>
    %64 = arith.divf %62, %63 : vector<8x128xf32>
    %65 = arith.select %5, %59, %64 : vector<8x128xi1>, vector<8x128xf32>
    %66 = vector.extract_strided_slice %65 {offsets = [0, 0], sizes = [8, 32], strides = [1, 1]} : vector<8x128xf32> to vector<8x32xf32>
    %67 = vector.extract_strided_slice %65 {offsets = [0, 32], sizes = [8, 32], strides = [1, 1]} : vector<8x128xf32> to vector<8x32xf32>
    %68 = vector.extract_strided_slice %65 {offsets = [0, 64], sizes = [8, 32], strides = [1, 1]} : vector<8x128xf32> to vector<8x32xf32>
    %69 = vector.extract_strided_slice %65 {offsets = [0, 96], sizes = [8, 32], strides = [1, 1]} : vector<8x128xf32> to vector<8x32xf32>
    %70 = arith.mulf %67, %24 : vector<8x32xf32>
    %71 = arith.mulf %66, %68 : vector<8x32xf32>
    %72 = arith.addf %70, %71 : vector<8x32xf32>
    %73 = math.tanh %72 : vector<8x32xf32>
    %74 = arith.mulf %69, %73 : vector<8x32xf32>
    %75 = vector.shape_cast %55 : vector<8x1xi1> to vector<8x1xi1>
    %76 = vector.broadcast %75 : vector<8x1xi1> to vector<8x32xi1>
    %77 = arith.select %76, %74, %23 : vector<8x32xi1>, vector<8x32xf32>
    %78 = vector.shape_cast %55 : vector<8x1xi1> to vector<8x1xi1>
    %79 = vector.broadcast %78 : vector<8x1xi1> to vector<8x32xi1>
    %80 = arith.select %79, %72, %24 : vector<8x32xi1>, vector<8x32xf32>
    %c0_35 = arith.constant 0 : index
    %c0_36 = arith.constant 0 : index
    %81 = vector.load %arg19[%c0_35, %c0_36] : memref<64x32xf32, #tpu.memory_space<vmem>>, vector<8x32xf32>
    tpu.vector_store %arg19[%c0_35, %c0_36], %49 {strides = array<i32>} : memref<64x32xf32, #tpu.memory_space<vmem>>, vector<8x32xf32>,
    %c56_37 = arith.constant 56 : index
    %c0_38 = arith.constant 0 : index
    %82 = vector.load %arg20[%c56_37, %c0_38] : memref<64x32xf32, #tpu.memory_space<vmem>>, vector<8x32xf32>
    tpu.vector_store %arg20[%c56_37, %c0_38], %77 {strides = array<i32>} : memref<64x32xf32, #tpu.memory_space<vmem>>, vector<8x32xf32>,
    %c8 = arith.constant 8 : index
    %c0_39 = arith.constant 0 : index
    %83 = vector.load %arg1[%c8, %c0_39] : memref<64x1xf32, #tpu.memory_space<vmem>>, vector<8x1xf32>
    %cst_40 = arith.constant 5.000000e-01 : f32
    %84 = vector.broadcast %cst_40 : f32 to vector<8x1xf32>
    %85 = arith.cmpf ogt, %83, %84 : vector<8x1xf32>
    %c8_41 = arith.constant 8 : index
    %c0_42 = arith.constant 0 : index
    %86 = vector.load %arg17[%c8_41, %c0_42] : memref<64x128xf32, #tpu.memory_space<vmem>>, vector<8x128xf32>
    %cst_43 = arith.constant dense<0.000000e+00> : vector<8x128xf32>
    %87 = tpu.matmul %49, %19, %cst_43 {dimension_numbers = #tpu.dot_dimension_numbers<[1], [0], [0], [1], [0, 0, 1, 1], [], []>} : vector<8x32xf32>, vector<32x128xf32>, vector<8x128xf32> -> vector<8x128xf32>
    %88 = arith.addf %86, %87 : vector<8x128xf32>
    %89 = math.tanh %88 : vector<8x128xf32>
    %90 = arith.negf %88 : vector<8x128xf32>
    %91 = math.exp %90 : vector<8x128xf32>
    %cst_44 = arith.constant 1.000000e+00 : f32
    %92 = vector.broadcast %cst_44 : f32 to vector<8x128xf32>
    %93 = arith.addf %92, %91 : vector<8x128xf32>
    %94 = arith.divf %92, %93 : vector<8x128xf32>
    %95 = arith.select %5, %89, %94 : vector<8x128xi1>, vector<8x128xf32>
    %96 = vector.extract_strided_slice %95 {offsets = [0, 0], sizes = [8, 32], strides = [1, 1]} : vector<8x128xf32> to vector<8x32xf32>
    %97 = vector.extract_strided_slice %95 {offsets = [0, 32], sizes = [8, 32], strides = [1, 1]} : vector<8x128xf32> to vector<8x32xf32>
    %98 = vector.extract_strided_slice %95 {offsets = [0, 64], sizes = [8, 32], strides = [1, 1]} : vector<8x128xf32> to vector<8x32xf32>
    %99 = vector.extract_strided_slice %95 {offsets = [0, 96], sizes = [8, 32], strides = [1, 1]} : vector<8x128xf32> to vector<8x32xf32>
    %100 = arith.mulf %97, %52 : vector<8x32xf32>
    %101 = arith.mulf %96, %98 : vector<8x32xf32>
    %102 = arith.addf %100, %101 : vector<8x32xf32>
    %103 = math.tanh %102 : vector<8x32xf32>
    %104 = arith.mulf %99, %103 : vector<8x32xf32>
    %105 = vector.shape_cast %85 : vector<8x1xi1> to vector<8x1xi1>
    %106 = vector.broadcast %105 : vector<8x1xi1> to vector<8x32xi1>
    %107 = arith.select %106, %104, %49 : vector<8x32xi1>, vector<8x32xf32>
    %108 = vector.shape_cast %85 : vector<8x1xi1> to vector<8x1xi1>
    %109 = vector.broadcast %108 : vector<8x1xi1> to vector<8x32xi1>
    %110 = arith.select %109, %102, %52 : vector<8x32xi1>, vector<8x32xf32>
    %c48 = arith.constant 48 : index
    %c0_45 = arith.constant 0 : index
    %111 = vector.load %arg1[%c48, %c0_45] : memref<64x1xf32, #tpu.memory_space<vmem>>, vector<8x1xf32>
    %cst_46 = arith.constant 5.000000e-01 : f32
    %112 = vector.broadcast %cst_46 : f32 to vector<8x1xf32>
    %113 = arith.cmpf ogt, %111, %112 : vector<8x1xf32>
    %c48_47 = arith.constant 48 : index
    %c0_48 = arith.constant 0 : index
    %114 = vector.load %arg18[%c48_47, %c0_48] : memref<64x128xf32, #tpu.memory_space<vmem>>, vector<8x128xf32>
    %cst_49 = arith.constant dense<0.000000e+00> : vector<8x128xf32>
    %115 = tpu.matmul %77, %20, %cst_49 {dimension_numbers = #tpu.dot_dimension_numbers<[1], [0], [0], [1], [0, 0, 1, 1], [], []>} : vector<8x32xf32>, vector<32x128xf32>, vector<8x128xf32> -> vector<8x128xf32>
    %116 = arith.addf %114, %115 : vector<8x128xf32>
    %117 = math.tanh %116 : vector<8x128xf32>
    %118 = arith.negf %116 : vector<8x128xf32>
    %119 = math.exp %118 : vector<8x128xf32>
    %cst_50 = arith.constant 1.000000e+00 : f32
    %120 = vector.broadcast %cst_50 : f32 to vector<8x128xf32>
    %121 = arith.addf %120, %119 : vector<8x128xf32>
    %122 = arith.divf %120, %121 : vector<8x128xf32>
    %123 = arith.select %5, %117, %122 : vector<8x128xi1>, vector<8x128xf32>
    %124 = vector.extract_strided_slice %123 {offsets = [0, 0], sizes = [8, 32], strides = [1, 1]} : vector<8x128xf32> to vector<8x32xf32>
    %125 = vector.extract_strided_slice %123 {offsets = [0, 32], sizes = [8, 32], strides = [1, 1]} : vector<8x128xf32> to vector<8x32xf32>
    %126 = vector.extract_strided_slice %123 {offsets = [0, 64], sizes = [8, 32], strides = [1, 1]} : vector<8x128xf32> to vector<8x32xf32>
    %127 = vector.extract_strided_slice %123 {offsets = [0, 96], sizes = [8, 32], strides = [1, 1]} : vector<8x128xf32> to vector<8x32xf32>
    %128 = arith.mulf %125, %80 : vector<8x32xf32>
    %129 = arith.mulf %124, %126 : vector<8x32xf32>
    %130 = arith.addf %128, %129 : vector<8x32xf32>
    %131 = math.tanh %130 : vector<8x32xf32>
    %132 = arith.mulf %127, %131 : vector<8x32xf32>
    %133 = vector.shape_cast %113 : vector<8x1xi1> to vector<8x1xi1>
    %134 = vector.broadcast %133 : vector<8x1xi1> to vector<8x32xi1>
    %135 = arith.select %134, %132, %77 : vector<8x32xi1>, vector<8x32xf32>
    %136 = vector.shape_cast %113 : vector<8x1xi1> to vector<8x1xi1>
    %137 = vector.broadcast %136 : vector<8x1xi1> to vector<8x32xi1>
    %138 = arith.select %137, %130, %80 : vector<8x32xi1>, vector<8x32xf32>
    %c8_51 = arith.constant 8 : index
    %c0_52 = arith.constant 0 : index
    %139 = vector.load %arg19[%c8_51, %c0_52] : memref<64x32xf32, #tpu.memory_space<vmem>>, vector<8x32xf32>
    tpu.vector_store %arg19[%c8_51, %c0_52], %107 {strides = array<i32>} : memref<64x32xf32, #tpu.memory_space<vmem>>, vector<8x32xf32>,
    %c48_53 = arith.constant 48 : index
    %c0_54 = arith.constant 0 : index
    %140 = vector.load %arg20[%c48_53, %c0_54] : memref<64x32xf32, #tpu.memory_space<vmem>>, vector<8x32xf32>
    tpu.vector_store %arg20[%c48_53, %c0_54], %135 {strides = array<i32>} : memref<64x32xf32, #tpu.memory_space<vmem>>, vector<8x32xf32>,
    %c16 = arith.constant 16 : index
    %c0_55 = arith.constant 0 : index
    %141 = vector.load %arg1[%c16, %c0_55] : memref<64x1xf32, #tpu.memory_space<vmem>>, vector<8x1xf32>
    %cst_56 = arith.constant 5.000000e-01 : f32
    %142 = vector.broadcast %cst_56 : f32 to vector<8x1xf32>
    %143 = arith.cmpf ogt, %141, %142 : vector<8x1xf32>
    %c16_57 = arith.constant 16 : index
    %c0_58 = arith.constant 0 : index
    %144 = vector.load %arg17[%c16_57, %c0_58] : memref<64x128xf32, #tpu.memory_space<vmem>>, vector<8x128xf32>
    %cst_59 = arith.constant dense<0.000000e+00> : vector<8x128xf32>
    %145 = tpu.matmul %107, %19, %cst_59 {dimension_numbers = #tpu.dot_dimension_numbers<[1], [0], [0], [1], [0, 0, 1, 1], [], []>} : vector<8x32xf32>, vector<32x128xf32>, vector<8x128xf32> -> vector<8x128xf32>
    %146 = arith.addf %144, %145 : vector<8x128xf32>
    %147 = math.tanh %146 : vector<8x128xf32>
    %148 = arith.negf %146 : vector<8x128xf32>
    %149 = math.exp %148 : vector<8x128xf32>
    %cst_60 = arith.constant 1.000000e+00 : f32
    %150 = vector.broadcast %cst_60 : f32 to vector<8x128xf32>
    %151 = arith.addf %150, %149 : vector<8x128xf32>
    %152 = arith.divf %150, %151 : vector<8x128xf32>
    %153 = arith.select %5, %147, %152 : vector<8x128xi1>, vector<8x128xf32>
    %154 = vector.extract_strided_slice %153 {offsets = [0, 0], sizes = [8, 32], strides = [1, 1]} : vector<8x128xf32> to vector<8x32xf32>
    %155 = vector.extract_strided_slice %153 {offsets = [0, 32], sizes = [8, 32], strides = [1, 1]} : vector<8x128xf32> to vector<8x32xf32>
    %156 = vector.extract_strided_slice %153 {offsets = [0, 64], sizes = [8, 32], strides = [1, 1]} : vector<8x128xf32> to vector<8x32xf32>
    %157 = vector.extract_strided_slice %153 {offsets = [0, 96], sizes = [8, 32], strides = [1, 1]} : vector<8x128xf32> to vector<8x32xf32>
    %158 = arith.mulf %155, %110 : vector<8x32xf32>
    %159 = arith.mulf %154, %156 : vector<8x32xf32>
    %160 = arith.addf %158, %159 : vector<8x32xf32>
    %161 = math.tanh %160 : vector<8x32xf32>
    %162 = arith.mulf %157, %161 : vector<8x32xf32>
    %163 = vector.shape_cast %143 : vector<8x1xi1> to vector<8x1xi1>
    %164 = vector.broadcast %163 : vector<8x1xi1> to vector<8x32xi1>
    %165 = arith.select %164, %162, %107 : vector<8x32xi1>, vector<8x32xf32>
    %166 = vector.shape_cast %143 : vector<8x1xi1> to vector<8x1xi1>
    %167 = vector.broadcast %166 : vector<8x1xi1> to vector<8x32xi1>
    %168 = arith.select %167, %160, %110 : vector<8x32xi1>, vector<8x32xf32>
    %c40 = arith.constant 40 : index
    %c0_61 = arith.constant 0 : index
    %169 = vector.load %arg1[%c40, %c0_61] : memref<64x1xf32, #tpu.memory_space<vmem>>, vector<8x1xf32>
    %cst_62 = arith.constant 5.000000e-01 : f32
    %170 = vector.broadcast %cst_62 : f32 to vector<8x1xf32>
    %171 = arith.cmpf ogt, %169, %170 : vector<8x1xf32>
    %c40_63 = arith.constant 40 : index
    %c0_64 = arith.constant 0 : index
    %172 = vector.load %arg18[%c40_63, %c0_64] : memref<64x128xf32, #tpu.memory_space<vmem>>, vector<8x128xf32>
    %cst_65 = arith.constant dense<0.000000e+00> : vector<8x128xf32>
    %173 = tpu.matmul %135, %20, %cst_65 {dimension_numbers = #tpu.dot_dimension_numbers<[1], [0], [0], [1], [0, 0, 1, 1], [], []>} : vector<8x32xf32>, vector<32x128xf32>, vector<8x128xf32> -> vector<8x128xf32>
    %174 = arith.addf %172, %173 : vector<8x128xf32>
    %175 = math.tanh %174 : vector<8x128xf32>
    %176 = arith.negf %174 : vector<8x128xf32>
    %177 = math.exp %176 : vector<8x128xf32>
    %cst_66 = arith.constant 1.000000e+00 : f32
    %178 = vector.broadcast %cst_66 : f32 to vector<8x128xf32>
    %179 = arith.addf %178, %177 : vector<8x128xf32>
    %180 = arith.divf %178, %179 : vector<8x128xf32>
    %181 = arith.select %5, %175, %180 : vector<8x128xi1>, vector<8x128xf32>
    %182 = vector.extract_strided_slice %181 {offsets = [0, 0], sizes = [8, 32], strides = [1, 1]} : vector<8x128xf32> to vector<8x32xf32>
    %183 = vector.extract_strided_slice %181 {offsets = [0, 32], sizes = [8, 32], strides = [1, 1]} : vector<8x128xf32> to vector<8x32xf32>
    %184 = vector.extract_strided_slice %181 {offsets = [0, 64], sizes = [8, 32], strides = [1, 1]} : vector<8x128xf32> to vector<8x32xf32>
    %185 = vector.extract_strided_slice %181 {offsets = [0, 96], sizes = [8, 32], strides = [1, 1]} : vector<8x128xf32> to vector<8x32xf32>
    %186 = arith.mulf %183, %138 : vector<8x32xf32>
    %187 = arith.mulf %182, %184 : vector<8x32xf32>
    %188 = arith.addf %186, %187 : vector<8x32xf32>
    %189 = math.tanh %188 : vector<8x32xf32>
    %190 = arith.mulf %185, %189 : vector<8x32xf32>
    %191 = vector.shape_cast %171 : vector<8x1xi1> to vector<8x1xi1>
    %192 = vector.broadcast %191 : vector<8x1xi1> to vector<8x32xi1>
    %193 = arith.select %192, %190, %135 : vector<8x32xi1>, vector<8x32xf32>
    %194 = vector.shape_cast %171 : vector<8x1xi1> to vector<8x1xi1>
    %195 = vector.broadcast %194 : vector<8x1xi1> to vector<8x32xi1>
    %196 = arith.select %195, %188, %138 : vector<8x32xi1>, vector<8x32xf32>
    %c16_67 = arith.constant 16 : index
    %c0_68 = arith.constant 0 : index
    %197 = vector.load %arg19[%c16_67, %c0_68] : memref<64x32xf32, #tpu.memory_space<vmem>>, vector<8x32xf32>
    tpu.vector_store %arg19[%c16_67, %c0_68], %165 {strides = array<i32>} : memref<64x32xf32, #tpu.memory_space<vmem>>, vector<8x32xf32>,
    %c40_69 = arith.constant 40 : index
    %c0_70 = arith.constant 0 : index
    %198 = vector.load %arg20[%c40_69, %c0_70] : memref<64x32xf32, #tpu.memory_space<vmem>>, vector<8x32xf32>
    tpu.vector_store %arg20[%c40_69, %c0_70], %193 {strides = array<i32>} : memref<64x32xf32, #tpu.memory_space<vmem>>, vector<8x32xf32>,
    %c24 = arith.constant 24 : index
    %c0_71 = arith.constant 0 : index
    %199 = vector.load %arg1[%c24, %c0_71] : memref<64x1xf32, #tpu.memory_space<vmem>>, vector<8x1xf32>
    %cst_72 = arith.constant 5.000000e-01 : f32
    %200 = vector.broadcast %cst_72 : f32 to vector<8x1xf32>
    %201 = arith.cmpf ogt, %199, %200 : vector<8x1xf32>
    %c24_73 = arith.constant 24 : index
    %c0_74 = arith.constant 0 : index
    %202 = vector.load %arg17[%c24_73, %c0_74] : memref<64x128xf32, #tpu.memory_space<vmem>>, vector<8x128xf32>
    %cst_75 = arith.constant dense<0.000000e+00> : vector<8x128xf32>
    %203 = tpu.matmul %165, %19, %cst_75 {dimension_numbers = #tpu.dot_dimension_numbers<[1], [0], [0], [1], [0, 0, 1, 1], [], []>} : vector<8x32xf32>, vector<32x128xf32>, vector<8x128xf32> -> vector<8x128xf32>
    %204 = arith.addf %202, %203 : vector<8x128xf32>
    %205 = math.tanh %204 : vector<8x128xf32>
    %206 = arith.negf %204 : vector<8x128xf32>
    %207 = math.exp %206 : vector<8x128xf32>
    %cst_76 = arith.constant 1.000000e+00 : f32
    %208 = vector.broadcast %cst_76 : f32 to vector<8x128xf32>
    %209 = arith.addf %208, %207 : vector<8x128xf32>
    %210 = arith.divf %208, %209 : vector<8x128xf32>
    %211 = arith.select %5, %205, %210 : vector<8x128xi1>, vector<8x128xf32>
    %212 = vector.extract_strided_slice %211 {offsets = [0, 0], sizes = [8, 32], strides = [1, 1]} : vector<8x128xf32> to vector<8x32xf32>
    %213 = vector.extract_strided_slice %211 {offsets = [0, 32], sizes = [8, 32], strides = [1, 1]} : vector<8x128xf32> to vector<8x32xf32>
    %214 = vector.extract_strided_slice %211 {offsets = [0, 64], sizes = [8, 32], strides = [1, 1]} : vector<8x128xf32> to vector<8x32xf32>
    %215 = vector.extract_strided_slice %211 {offsets = [0, 96], sizes = [8, 32], strides = [1, 1]} : vector<8x128xf32> to vector<8x32xf32>
    %216 = arith.mulf %213, %168 : vector<8x32xf32>
    %217 = arith.mulf %212, %214 : vector<8x32xf32>
    %218 = arith.addf %216, %217 : vector<8x32xf32>
    %219 = math.tanh %218 : vector<8x32xf32>
    %220 = arith.mulf %215, %219 : vector<8x32xf32>
    %221 = vector.shape_cast %201 : vector<8x1xi1> to vector<8x1xi1>
    %222 = vector.broadcast %221 : vector<8x1xi1> to vector<8x32xi1>
    %223 = arith.select %222, %220, %165 : vector<8x32xi1>, vector<8x32xf32>
    %224 = vector.shape_cast %201 : vector<8x1xi1> to vector<8x1xi1>
    %225 = vector.broadcast %224 : vector<8x1xi1> to vector<8x32xi1>
    %226 = arith.select %225, %218, %168 : vector<8x32xi1>, vector<8x32xf32>
    %c32 = arith.constant 32 : index
    %c0_77 = arith.constant 0 : index
    %227 = vector.load %arg1[%c32, %c0_77] : memref<64x1xf32, #tpu.memory_space<vmem>>, vector<8x1xf32>
    %cst_78 = arith.constant 5.000000e-01 : f32
    %228 = vector.broadcast %cst_78 : f32 to vector<8x1xf32>
    %229 = arith.cmpf ogt, %227, %228 : vector<8x1xf32>
    %c32_79 = arith.constant 32 : index
    %c0_80 = arith.constant 0 : index
    %230 = vector.load %arg18[%c32_79, %c0_80] : memref<64x128xf32, #tpu.memory_space<vmem>>, vector<8x128xf32>
    %cst_81 = arith.constant dense<0.000000e+00> : vector<8x128xf32>
    %231 = tpu.matmul %193, %20, %cst_81 {dimension_numbers = #tpu.dot_dimension_numbers<[1], [0], [0], [1], [0, 0, 1, 1], [], []>} : vector<8x32xf32>, vector<32x128xf32>, vector<8x128xf32> -> vector<8x128xf32>
    %232 = arith.addf %230, %231 : vector<8x128xf32>
    %233 = math.tanh %232 : vector<8x128xf32>
    %234 = arith.negf %232 : vector<8x128xf32>
    %235 = math.exp %234 : vector<8x128xf32>
    %cst_82 = arith.constant 1.000000e+00 : f32
    %236 = vector.broadcast %cst_82 : f32 to vector<8x128xf32>
    %237 = arith.addf %236, %235 : vector<8x128xf32>
    %238 = arith.divf %236, %237 : vector<8x128xf32>
    %239 = arith.select %5, %233, %238 : vector<8x128xi1>, vector<8x128xf32>
    %240 = vector.extract_strided_slice %239 {offsets = [0, 0], sizes = [8, 32], strides = [1, 1]} : vector<8x128xf32> to vector<8x32xf32>
    %241 = vector.extract_strided_slice %239 {offsets = [0, 32], sizes = [8, 32], strides = [1, 1]} : vector<8x128xf32> to vector<8x32xf32>
    %242 = vector.extract_strided_slice %239 {offsets = [0, 64], sizes = [8, 32], strides = [1, 1]} : vector<8x128xf32> to vector<8x32xf32>
    %243 = vector.extract_strided_slice %239 {offsets = [0, 96], sizes = [8, 32], strides = [1, 1]} : vector<8x128xf32> to vector<8x32xf32>
    %244 = arith.mulf %241, %196 : vector<8x32xf32>
    %245 = arith.mulf %240, %242 : vector<8x32xf32>
    %246 = arith.addf %244, %245 : vector<8x32xf32>
    %247 = math.tanh %246 : vector<8x32xf32>
    %248 = arith.mulf %243, %247 : vector<8x32xf32>
    %249 = vector.shape_cast %229 : vector<8x1xi1> to vector<8x1xi1>
    %250 = vector.broadcast %249 : vector<8x1xi1> to vector<8x32xi1>
    %251 = arith.select %250, %248, %193 : vector<8x32xi1>, vector<8x32xf32>
    %252 = vector.shape_cast %229 : vector<8x1xi1> to vector<8x1xi1>
    %253 = vector.broadcast %252 : vector<8x1xi1> to vector<8x32xi1>
    %254 = arith.select %253, %246, %196 : vector<8x32xi1>, vector<8x32xf32>
    %c24_83 = arith.constant 24 : index
    %c0_84 = arith.constant 0 : index
    %255 = vector.load %arg19[%c24_83, %c0_84] : memref<64x32xf32, #tpu.memory_space<vmem>>, vector<8x32xf32>
    tpu.vector_store %arg19[%c24_83, %c0_84], %223 {strides = array<i32>} : memref<64x32xf32, #tpu.memory_space<vmem>>, vector<8x32xf32>,
    %c32_85 = arith.constant 32 : index
    %c0_86 = arith.constant 0 : index
    %256 = vector.load %arg20[%c32_85, %c0_86] : memref<64x32xf32, #tpu.memory_space<vmem>>, vector<8x32xf32>
    tpu.vector_store %arg20[%c32_85, %c0_86], %251 {strides = array<i32>} : memref<64x32xf32, #tpu.memory_space<vmem>>, vector<8x32xf32>,
    %c32_87 = arith.constant 32 : index
    %c0_88 = arith.constant 0 : index
    %257 = vector.load %arg1[%c32_87, %c0_88] : memref<64x1xf32, #tpu.memory_space<vmem>>, vector<8x1xf32>
    %cst_89 = arith.constant 5.000000e-01 : f32
    %258 = vector.broadcast %cst_89 : f32 to vector<8x1xf32>
    %259 = arith.cmpf ogt, %257, %258 : vector<8x1xf32>
    %c32_90 = arith.constant 32 : index
    %c0_91 = arith.constant 0 : index
    %260 = vector.load %arg17[%c32_90, %c0_91] : memref<64x128xf32, #tpu.memory_space<vmem>>, vector<8x128xf32>
    %cst_92 = arith.constant dense<0.000000e+00> : vector<8x128xf32>
    %261 = tpu.matmul %223, %19, %cst_92 {dimension_numbers = #tpu.dot_dimension_numbers<[1], [0], [0], [1], [0, 0, 1, 1], [], []>} : vector<8x32xf32>, vector<32x128xf32>, vector<8x128xf32> -> vector<8x128xf32>
    %262 = arith.addf %260, %261 : vector<8x128xf32>
    %263 = math.tanh %262 : vector<8x128xf32>
    %264 = arith.negf %262 : vector<8x128xf32>
    %265 = math.exp %264 : vector<8x128xf32>
    %cst_93 = arith.constant 1.000000e+00 : f32
    %266 = vector.broadcast %cst_93 : f32 to vector<8x128xf32>
    %267 = arith.addf %266, %265 : vector<8x128xf32>
    %268 = arith.divf %266, %267 : vector<8x128xf32>
    %269 = arith.select %5, %263, %268 : vector<8x128xi1>, vector<8x128xf32>
    %270 = vector.extract_strided_slice %269 {offsets = [0, 0], sizes = [8, 32], strides = [1, 1]} : vector<8x128xf32> to vector<8x32xf32>
    %271 = vector.extract_strided_slice %269 {offsets = [0, 32], sizes = [8, 32], strides = [1, 1]} : vector<8x128xf32> to vector<8x32xf32>
    %272 = vector.extract_strided_slice %269 {offsets = [0, 64], sizes = [8, 32], strides = [1, 1]} : vector<8x128xf32> to vector<8x32xf32>
    %273 = vector.extract_strided_slice %269 {offsets = [0, 96], sizes = [8, 32], strides = [1, 1]} : vector<8x128xf32> to vector<8x32xf32>
    %274 = arith.mulf %271, %226 : vector<8x32xf32>
    %275 = arith.mulf %270, %272 : vector<8x32xf32>
    %276 = arith.addf %274, %275 : vector<8x32xf32>
    %277 = math.tanh %276 : vector<8x32xf32>
    %278 = arith.mulf %273, %277 : vector<8x32xf32>
    %279 = vector.shape_cast %259 : vector<8x1xi1> to vector<8x1xi1>
    %280 = vector.broadcast %279 : vector<8x1xi1> to vector<8x32xi1>
    %281 = arith.select %280, %278, %223 : vector<8x32xi1>, vector<8x32xf32>
    %282 = vector.shape_cast %259 : vector<8x1xi1> to vector<8x1xi1>
    %283 = vector.broadcast %282 : vector<8x1xi1> to vector<8x32xi1>
    %284 = arith.select %283, %276, %226 : vector<8x32xi1>, vector<8x32xf32>
    %c24_94 = arith.constant 24 : index
    %c0_95 = arith.constant 0 : index
    %285 = vector.load %arg1[%c24_94, %c0_95] : memref<64x1xf32, #tpu.memory_space<vmem>>, vector<8x1xf32>
    %cst_96 = arith.constant 5.000000e-01 : f32
    %286 = vector.broadcast %cst_96 : f32 to vector<8x1xf32>
    %287 = arith.cmpf ogt, %285, %286 : vector<8x1xf32>
    %c24_97 = arith.constant 24 : index
    %c0_98 = arith.constant 0 : index
    %288 = vector.load %arg18[%c24_97, %c0_98] : memref<64x128xf32, #tpu.memory_space<vmem>>, vector<8x128xf32>
    %cst_99 = arith.constant dense<0.000000e+00> : vector<8x128xf32>
    %289 = tpu.matmul %251, %20, %cst_99 {dimension_numbers = #tpu.dot_dimension_numbers<[1], [0], [0], [1], [0, 0, 1, 1], [], []>} : vector<8x32xf32>, vector<32x128xf32>, vector<8x128xf32> -> vector<8x128xf32>
    %290 = arith.addf %288, %289 : vector<8x128xf32>
    %291 = math.tanh %290 : vector<8x128xf32>
    %292 = arith.negf %290 : vector<8x128xf32>
    %293 = math.exp %292 : vector<8x128xf32>
    %cst_100 = arith.constant 1.000000e+00 : f32
    %294 = vector.broadcast %cst_100 : f32 to vector<8x128xf32>
    %295 = arith.addf %294, %293 : vector<8x128xf32>
    %296 = arith.divf %294, %295 : vector<8x128xf32>
    %297 = arith.select %5, %291, %296 : vector<8x128xi1>, vector<8x128xf32>
    %298 = vector.extract_strided_slice %297 {offsets = [0, 0], sizes = [8, 32], strides = [1, 1]} : vector<8x128xf32> to vector<8x32xf32>
    %299 = vector.extract_strided_slice %297 {offsets = [0, 32], sizes = [8, 32], strides = [1, 1]} : vector<8x128xf32> to vector<8x32xf32>
    %300 = vector.extract_strided_slice %297 {offsets = [0, 64], sizes = [8, 32], strides = [1, 1]} : vector<8x128xf32> to vector<8x32xf32>
    %301 = vector.extract_strided_slice %297 {offsets = [0, 96], sizes = [8, 32], strides = [1, 1]} : vector<8x128xf32> to vector<8x32xf32>
    %302 = arith.mulf %299, %254 : vector<8x32xf32>
    %303 = arith.mulf %298, %300 : vector<8x32xf32>
    %304 = arith.addf %302, %303 : vector<8x32xf32>
    %305 = math.tanh %304 : vector<8x32xf32>
    %306 = arith.mulf %301, %305 : vector<8x32xf32>
    %307 = vector.shape_cast %287 : vector<8x1xi1> to vector<8x1xi1>
    %308 = vector.broadcast %307 : vector<8x1xi1> to vector<8x32xi1>
    %309 = arith.select %308, %306, %251 : vector<8x32xi1>, vector<8x32xf32>
    %310 = vector.shape_cast %287 : vector<8x1xi1> to vector<8x1xi1>
    %311 = vector.broadcast %310 : vector<8x1xi1> to vector<8x32xi1>
    %312 = arith.select %311, %304, %254 : vector<8x32xi1>, vector<8x32xf32>
    %c32_101 = arith.constant 32 : index
    %c0_102 = arith.constant 0 : index
    %313 = vector.load %arg19[%c32_101, %c0_102] : memref<64x32xf32, #tpu.memory_space<vmem>>, vector<8x32xf32>
    tpu.vector_store %arg19[%c32_101, %c0_102], %281 {strides = array<i32>} : memref<64x32xf32, #tpu.memory_space<vmem>>, vector<8x32xf32>,
    %c24_103 = arith.constant 24 : index
    %c0_104 = arith.constant 0 : index
    %314 = vector.load %arg20[%c24_103, %c0_104] : memref<64x32xf32, #tpu.memory_space<vmem>>, vector<8x32xf32>
    tpu.vector_store %arg20[%c24_103, %c0_104], %309 {strides = array<i32>} : memref<64x32xf32, #tpu.memory_space<vmem>>, vector<8x32xf32>,
    %c40_105 = arith.constant 40 : index
    %c0_106 = arith.constant 0 : index
    %315 = vector.load %arg1[%c40_105, %c0_106] : memref<64x1xf32, #tpu.memory_space<vmem>>, vector<8x1xf32>
    %cst_107 = arith.constant 5.000000e-01 : f32
    %316 = vector.broadcast %cst_107 : f32 to vector<8x1xf32>
    %317 = arith.cmpf ogt, %315, %316 : vector<8x1xf32>
    %c40_108 = arith.constant 40 : index
    %c0_109 = arith.constant 0 : index
    %318 = vector.load %arg17[%c40_108, %c0_109] : memref<64x128xf32, #tpu.memory_space<vmem>>, vector<8x128xf32>
    %cst_110 = arith.constant dense<0.000000e+00> : vector<8x128xf32>
    %319 = tpu.matmul %281, %19, %cst_110 {dimension_numbers = #tpu.dot_dimension_numbers<[1], [0], [0], [1], [0, 0, 1, 1], [], []>} : vector<8x32xf32>, vector<32x128xf32>, vector<8x128xf32> -> vector<8x128xf32>
    %320 = arith.addf %318, %319 : vector<8x128xf32>
    %321 = math.tanh %320 : vector<8x128xf32>
    %322 = arith.negf %320 : vector<8x128xf32>
    %323 = math.exp %322 : vector<8x128xf32>
    %cst_111 = arith.constant 1.000000e+00 : f32
    %324 = vector.broadcast %cst_111 : f32 to vector<8x128xf32>
    %325 = arith.addf %324, %323 : vector<8x128xf32>
    %326 = arith.divf %324, %325 : vector<8x128xf32>
    %327 = arith.select %5, %321, %326 : vector<8x128xi1>, vector<8x128xf32>
    %328 = vector.extract_strided_slice %327 {offsets = [0, 0], sizes = [8, 32], strides = [1, 1]} : vector<8x128xf32> to vector<8x32xf32>
    %329 = vector.extract_strided_slice %327 {offsets = [0, 32], sizes = [8, 32], strides = [1, 1]} : vector<8x128xf32> to vector<8x32xf32>
    %330 = vector.extract_strided_slice %327 {offsets = [0, 64], sizes = [8, 32], strides = [1, 1]} : vector<8x128xf32> to vector<8x32xf32>
    %331 = vector.extract_strided_slice %327 {offsets = [0, 96], sizes = [8, 32], strides = [1, 1]} : vector<8x128xf32> to vector<8x32xf32>
    %332 = arith.mulf %329, %284 : vector<8x32xf32>
    %333 = arith.mulf %328, %330 : vector<8x32xf32>
    %334 = arith.addf %332, %333 : vector<8x32xf32>
    %335 = math.tanh %334 : vector<8x32xf32>
    %336 = arith.mulf %331, %335 : vector<8x32xf32>
    %337 = vector.shape_cast %317 : vector<8x1xi1> to vector<8x1xi1>
    %338 = vector.broadcast %337 : vector<8x1xi1> to vector<8x32xi1>
    %339 = arith.select %338, %336, %281 : vector<8x32xi1>, vector<8x32xf32>
    %340 = vector.shape_cast %317 : vector<8x1xi1> to vector<8x1xi1>
    %341 = vector.broadcast %340 : vector<8x1xi1> to vector<8x32xi1>
    %342 = arith.select %341, %334, %284 : vector<8x32xi1>, vector<8x32xf32>
    %c16_112 = arith.constant 16 : index
    %c0_113 = arith.constant 0 : index
    %343 = vector.load %arg1[%c16_112, %c0_113] : memref<64x1xf32, #tpu.memory_space<vmem>>, vector<8x1xf32>
    %cst_114 = arith.constant 5.000000e-01 : f32
    %344 = vector.broadcast %cst_114 : f32 to vector<8x1xf32>
    %345 = arith.cmpf ogt, %343, %344 : vector<8x1xf32>
    %c16_115 = arith.constant 16 : index
    %c0_116 = arith.constant 0 : index
    %346 = vector.load %arg18[%c16_115, %c0_116] : memref<64x128xf32, #tpu.memory_space<vmem>>, vector<8x128xf32>
    %cst_117 = arith.constant dense<0.000000e+00> : vector<8x128xf32>
    %347 = tpu.matmul %309, %20, %cst_117 {dimension_numbers = #tpu.dot_dimension_numbers<[1], [0], [0], [1], [0, 0, 1, 1], [], []>} : vector<8x32xf32>, vector<32x128xf32>, vector<8x128xf32> -> vector<8x128xf32>
    %348 = arith.addf %346, %347 : vector<8x128xf32>
    %349 = math.tanh %348 : vector<8x128xf32>
    %350 = arith.negf %348 : vector<8x128xf32>
    %351 = math.exp %350 : vector<8x128xf32>
    %cst_118 = arith.constant 1.000000e+00 : f32
    %352 = vector.broadcast %cst_118 : f32 to vector<8x128xf32>
    %353 = arith.addf %352, %351 : vector<8x128xf32>
    %354 = arith.divf %352, %353 : vector<8x128xf32>
    %355 = arith.select %5, %349, %354 : vector<8x128xi1>, vector<8x128xf32>
    %356 = vector.extract_strided_slice %355 {offsets = [0, 0], sizes = [8, 32], strides = [1, 1]} : vector<8x128xf32> to vector<8x32xf32>
    %357 = vector.extract_strided_slice %355 {offsets = [0, 32], sizes = [8, 32], strides = [1, 1]} : vector<8x128xf32> to vector<8x32xf32>
    %358 = vector.extract_strided_slice %355 {offsets = [0, 64], sizes = [8, 32], strides = [1, 1]} : vector<8x128xf32> to vector<8x32xf32>
    %359 = vector.extract_strided_slice %355 {offsets = [0, 96], sizes = [8, 32], strides = [1, 1]} : vector<8x128xf32> to vector<8x32xf32>
    %360 = arith.mulf %357, %312 : vector<8x32xf32>
    %361 = arith.mulf %356, %358 : vector<8x32xf32>
    %362 = arith.addf %360, %361 : vector<8x32xf32>
    %363 = math.tanh %362 : vector<8x32xf32>
    %364 = arith.mulf %359, %363 : vector<8x32xf32>
    %365 = vector.shape_cast %345 : vector<8x1xi1> to vector<8x1xi1>
    %366 = vector.broadcast %365 : vector<8x1xi1> to vector<8x32xi1>
    %367 = arith.select %366, %364, %309 : vector<8x32xi1>, vector<8x32xf32>
    %368 = vector.shape_cast %345 : vector<8x1xi1> to vector<8x1xi1>
    %369 = vector.broadcast %368 : vector<8x1xi1> to vector<8x32xi1>
    %370 = arith.select %369, %362, %312 : vector<8x32xi1>, vector<8x32xf32>
    %c40_119 = arith.constant 40 : index
    %c0_120 = arith.constant 0 : index
    %371 = vector.load %arg19[%c40_119, %c0_120] : memref<64x32xf32, #tpu.memory_space<vmem>>, vector<8x32xf32>
    tpu.vector_store %arg19[%c40_119, %c0_120], %339 {strides = array<i32>} : memref<64x32xf32, #tpu.memory_space<vmem>>, vector<8x32xf32>,
    %c16_121 = arith.constant 16 : index
    %c0_122 = arith.constant 0 : index
    %372 = vector.load %arg20[%c16_121, %c0_122] : memref<64x32xf32, #tpu.memory_space<vmem>>, vector<8x32xf32>
    tpu.vector_store %arg20[%c16_121, %c0_122], %367 {strides = array<i32>} : memref<64x32xf32, #tpu.memory_space<vmem>>, vector<8x32xf32>,
    %c48_123 = arith.constant 48 : index
    %c0_124 = arith.constant 0 : index
    %373 = vector.load %arg1[%c48_123, %c0_124] : memref<64x1xf32, #tpu.memory_space<vmem>>, vector<8x1xf32>
    %cst_125 = arith.constant 5.000000e-01 : f32
    %374 = vector.broadcast %cst_125 : f32 to vector<8x1xf32>
    %375 = arith.cmpf ogt, %373, %374 : vector<8x1xf32>
    %c48_126 = arith.constant 48 : index
    %c0_127 = arith.constant 0 : index
    %376 = vector.load %arg17[%c48_126, %c0_127] : memref<64x128xf32, #tpu.memory_space<vmem>>, vector<8x128xf32>
    %cst_128 = arith.constant dense<0.000000e+00> : vector<8x128xf32>
    %377 = tpu.matmul %339, %19, %cst_128 {dimension_numbers = #tpu.dot_dimension_numbers<[1], [0], [0], [1], [0, 0, 1, 1], [], []>} : vector<8x32xf32>, vector<32x128xf32>, vector<8x128xf32> -> vector<8x128xf32>
    %378 = arith.addf %376, %377 : vector<8x128xf32>
    %379 = math.tanh %378 : vector<8x128xf32>
    %380 = arith.negf %378 : vector<8x128xf32>
    %381 = math.exp %380 : vector<8x128xf32>
    %cst_129 = arith.constant 1.000000e+00 : f32
    %382 = vector.broadcast %cst_129 : f32 to vector<8x128xf32>
    %383 = arith.addf %382, %381 : vector<8x128xf32>
    %384 = arith.divf %382, %383 : vector<8x128xf32>
    %385 = arith.select %5, %379, %384 : vector<8x128xi1>, vector<8x128xf32>
    %386 = vector.extract_strided_slice %385 {offsets = [0, 0], sizes = [8, 32], strides = [1, 1]} : vector<8x128xf32> to vector<8x32xf32>
    %387 = vector.extract_strided_slice %385 {offsets = [0, 32], sizes = [8, 32], strides = [1, 1]} : vector<8x128xf32> to vector<8x32xf32>
    %388 = vector.extract_strided_slice %385 {offsets = [0, 64], sizes = [8, 32], strides = [1, 1]} : vector<8x128xf32> to vector<8x32xf32>
    %389 = vector.extract_strided_slice %385 {offsets = [0, 96], sizes = [8, 32], strides = [1, 1]} : vector<8x128xf32> to vector<8x32xf32>
    %390 = arith.mulf %387, %342 : vector<8x32xf32>
    %391 = arith.mulf %386, %388 : vector<8x32xf32>
    %392 = arith.addf %390, %391 : vector<8x32xf32>
    %393 = math.tanh %392 : vector<8x32xf32>
    %394 = arith.mulf %389, %393 : vector<8x32xf32>
    %395 = vector.shape_cast %375 : vector<8x1xi1> to vector<8x1xi1>
    %396 = vector.broadcast %395 : vector<8x1xi1> to vector<8x32xi1>
    %397 = arith.select %396, %394, %339 : vector<8x32xi1>, vector<8x32xf32>
    %398 = vector.shape_cast %375 : vector<8x1xi1> to vector<8x1xi1>
    %399 = vector.broadcast %398 : vector<8x1xi1> to vector<8x32xi1>
    %400 = arith.select %399, %392, %342 : vector<8x32xi1>, vector<8x32xf32>
    %c8_130 = arith.constant 8 : index
    %c0_131 = arith.constant 0 : index
    %401 = vector.load %arg1[%c8_130, %c0_131] : memref<64x1xf32, #tpu.memory_space<vmem>>, vector<8x1xf32>
    %cst_132 = arith.constant 5.000000e-01 : f32
    %402 = vector.broadcast %cst_132 : f32 to vector<8x1xf32>
    %403 = arith.cmpf ogt, %401, %402 : vector<8x1xf32>
    %c8_133 = arith.constant 8 : index
    %c0_134 = arith.constant 0 : index
    %404 = vector.load %arg18[%c8_133, %c0_134] : memref<64x128xf32, #tpu.memory_space<vmem>>, vector<8x128xf32>
    %cst_135 = arith.constant dense<0.000000e+00> : vector<8x128xf32>
    %405 = tpu.matmul %367, %20, %cst_135 {dimension_numbers = #tpu.dot_dimension_numbers<[1], [0], [0], [1], [0, 0, 1, 1], [], []>} : vector<8x32xf32>, vector<32x128xf32>, vector<8x128xf32> -> vector<8x128xf32>
    %406 = arith.addf %404, %405 : vector<8x128xf32>
    %407 = math.tanh %406 : vector<8x128xf32>
    %408 = arith.negf %406 : vector<8x128xf32>
    %409 = math.exp %408 : vector<8x128xf32>
    %cst_136 = arith.constant 1.000000e+00 : f32
    %410 = vector.broadcast %cst_136 : f32 to vector<8x128xf32>
    %411 = arith.addf %410, %409 : vector<8x128xf32>
    %412 = arith.divf %410, %411 : vector<8x128xf32>
    %413 = arith.select %5, %407, %412 : vector<8x128xi1>, vector<8x128xf32>
    %414 = vector.extract_strided_slice %413 {offsets = [0, 0], sizes = [8, 32], strides = [1, 1]} : vector<8x128xf32> to vector<8x32xf32>
    %415 = vector.extract_strided_slice %413 {offsets = [0, 32], sizes = [8, 32], strides = [1, 1]} : vector<8x128xf32> to vector<8x32xf32>
    %416 = vector.extract_strided_slice %413 {offsets = [0, 64], sizes = [8, 32], strides = [1, 1]} : vector<8x128xf32> to vector<8x32xf32>
    %417 = vector.extract_strided_slice %413 {offsets = [0, 96], sizes = [8, 32], strides = [1, 1]} : vector<8x128xf32> to vector<8x32xf32>
    %418 = arith.mulf %415, %370 : vector<8x32xf32>
    %419 = arith.mulf %414, %416 : vector<8x32xf32>
    %420 = arith.addf %418, %419 : vector<8x32xf32>
    %421 = math.tanh %420 : vector<8x32xf32>
    %422 = arith.mulf %417, %421 : vector<8x32xf32>
    %423 = vector.shape_cast %403 : vector<8x1xi1> to vector<8x1xi1>
    %424 = vector.broadcast %423 : vector<8x1xi1> to vector<8x32xi1>
    %425 = arith.select %424, %422, %367 : vector<8x32xi1>, vector<8x32xf32>
    %426 = vector.shape_cast %403 : vector<8x1xi1> to vector<8x1xi1>
    %427 = vector.broadcast %426 : vector<8x1xi1> to vector<8x32xi1>
    %428 = arith.select %427, %420, %370 : vector<8x32xi1>, vector<8x32xf32>
    %c48_137 = arith.constant 48 : index
    %c0_138 = arith.constant 0 : index
    %429 = vector.load %arg19[%c48_137, %c0_138] : memref<64x32xf32, #tpu.memory_space<vmem>>, vector<8x32xf32>
    tpu.vector_store %arg19[%c48_137, %c0_138], %397 {strides = array<i32>} : memref<64x32xf32, #tpu.memory_space<vmem>>, vector<8x32xf32>,
    %c8_139 = arith.constant 8 : index
    %c0_140 = arith.constant 0 : index
    %430 = vector.load %arg20[%c8_139, %c0_140] : memref<64x32xf32, #tpu.memory_space<vmem>>, vector<8x32xf32>
    tpu.vector_store %arg20[%c8_139, %c0_140], %425 {strides = array<i32>} : memref<64x32xf32, #tpu.memory_space<vmem>>, vector<8x32xf32>,
    %c56_141 = arith.constant 56 : index
    %c0_142 = arith.constant 0 : index
    %431 = vector.load %arg1[%c56_141, %c0_142] : memref<64x1xf32, #tpu.memory_space<vmem>>, vector<8x1xf32>
    %cst_143 = arith.constant 5.000000e-01 : f32
    %432 = vector.broadcast %cst_143 : f32 to vector<8x1xf32>
    %433 = arith.cmpf ogt, %431, %432 : vector<8x1xf32>
    %c56_144 = arith.constant 56 : index
    %c0_145 = arith.constant 0 : index
    %434 = vector.load %arg17[%c56_144, %c0_145] : memref<64x128xf32, #tpu.memory_space<vmem>>, vector<8x128xf32>
    %cst_146 = arith.constant dense<0.000000e+00> : vector<8x128xf32>
    %435 = tpu.matmul %397, %19, %cst_146 {dimension_numbers = #tpu.dot_dimension_numbers<[1], [0], [0], [1], [0, 0, 1, 1], [], []>} : vector<8x32xf32>, vector<32x128xf32>, vector<8x128xf32> -> vector<8x128xf32>
    %436 = arith.addf %434, %435 : vector<8x128xf32>
    %437 = math.tanh %436 : vector<8x128xf32>
    %438 = arith.negf %436 : vector<8x128xf32>
    %439 = math.exp %438 : vector<8x128xf32>
    %cst_147 = arith.constant 1.000000e+00 : f32
    %440 = vector.broadcast %cst_147 : f32 to vector<8x128xf32>
    %441 = arith.addf %440, %439 : vector<8x128xf32>
    %442 = arith.divf %440, %441 : vector<8x128xf32>
    %443 = arith.select %5, %437, %442 : vector<8x128xi1>, vector<8x128xf32>
    %444 = vector.extract_strided_slice %443 {offsets = [0, 0], sizes = [8, 32], strides = [1, 1]} : vector<8x128xf32> to vector<8x32xf32>
    %445 = vector.extract_strided_slice %443 {offsets = [0, 32], sizes = [8, 32], strides = [1, 1]} : vector<8x128xf32> to vector<8x32xf32>
    %446 = vector.extract_strided_slice %443 {offsets = [0, 64], sizes = [8, 32], strides = [1, 1]} : vector<8x128xf32> to vector<8x32xf32>
    %447 = vector.extract_strided_slice %443 {offsets = [0, 96], sizes = [8, 32], strides = [1, 1]} : vector<8x128xf32> to vector<8x32xf32>
    %448 = arith.mulf %445, %400 : vector<8x32xf32>
    %449 = arith.mulf %444, %446 : vector<8x32xf32>
    %450 = arith.addf %448, %449 : vector<8x32xf32>
    %451 = math.tanh %450 : vector<8x32xf32>
    %452 = arith.mulf %447, %451 : vector<8x32xf32>
    %453 = vector.shape_cast %433 : vector<8x1xi1> to vector<8x1xi1>
    %454 = vector.broadcast %453 : vector<8x1xi1> to vector<8x32xi1>
    %455 = arith.select %454, %452, %397 : vector<8x32xi1>, vector<8x32xf32>
    %c0_148 = arith.constant 0 : index
    %c0_149 = arith.constant 0 : index
    %456 = vector.load %arg1[%c0_148, %c0_149] : memref<64x1xf32, #tpu.memory_space<vmem>>, vector<8x1xf32>
    %cst_150 = arith.constant 5.000000e-01 : f32
    %457 = vector.broadcast %cst_150 : f32 to vector<8x1xf32>
    %458 = arith.cmpf ogt, %456, %457 : vector<8x1xf32>
    %c0_151 = arith.constant 0 : index
    %c0_152 = arith.constant 0 : index
    %459 = vector.load %arg18[%c0_151, %c0_152] : memref<64x128xf32, #tpu.memory_space<vmem>>, vector<8x128xf32>
    %cst_153 = arith.constant dense<0.000000e+00> : vector<8x128xf32>
    %460 = tpu.matmul %425, %20, %cst_153 {dimension_numbers = #tpu.dot_dimension_numbers<[1], [0], [0], [1], [0, 0, 1, 1], [], []>} : vector<8x32xf32>, vector<32x128xf32>, vector<8x128xf32> -> vector<8x128xf32>
    %461 = arith.addf %459, %460 : vector<8x128xf32>
    %462 = math.tanh %461 : vector<8x128xf32>
    %463 = arith.negf %461 : vector<8x128xf32>
    %464 = math.exp %463 : vector<8x128xf32>
    %cst_154 = arith.constant 1.000000e+00 : f32
    %465 = vector.broadcast %cst_154 : f32 to vector<8x128xf32>
    %466 = arith.addf %465, %464 : vector<8x128xf32>
    %467 = arith.divf %465, %466 : vector<8x128xf32>
    %468 = arith.select %5, %462, %467 : vector<8x128xi1>, vector<8x128xf32>
    %469 = vector.extract_strided_slice %468 {offsets = [0, 0], sizes = [8, 32], strides = [1, 1]} : vector<8x128xf32> to vector<8x32xf32>
    %470 = vector.extract_strided_slice %468 {offsets = [0, 32], sizes = [8, 32], strides = [1, 1]} : vector<8x128xf32> to vector<8x32xf32>
    %471 = vector.extract_strided_slice %468 {offsets = [0, 64], sizes = [8, 32], strides = [1, 1]} : vector<8x128xf32> to vector<8x32xf32>
    %472 = vector.extract_strided_slice %468 {offsets = [0, 96], sizes = [8, 32], strides = [1, 1]} : vector<8x128xf32> to vector<8x32xf32>
    %473 = arith.mulf %470, %428 : vector<8x32xf32>
    %474 = arith.mulf %469, %471 : vector<8x32xf32>
    %475 = arith.addf %473, %474 : vector<8x32xf32>
    %476 = math.tanh %475 : vector<8x32xf32>
    %477 = arith.mulf %472, %476 : vector<8x32xf32>
    %478 = vector.shape_cast %458 : vector<8x1xi1> to vector<8x1xi1>
    %479 = vector.broadcast %478 : vector<8x1xi1> to vector<8x32xi1>
    %480 = arith.select %479, %477, %425 : vector<8x32xi1>, vector<8x32xf32>
    %c56_155 = arith.constant 56 : index
    %c0_156 = arith.constant 0 : index
    %481 = vector.load %arg19[%c56_155, %c0_156] : memref<64x32xf32, #tpu.memory_space<vmem>>, vector<8x32xf32>
    tpu.vector_store %arg19[%c56_155, %c0_156], %455 {strides = array<i32>} : memref<64x32xf32, #tpu.memory_space<vmem>>, vector<8x32xf32>,
    %c0_157 = arith.constant 0 : index
    %c0_158 = arith.constant 0 : index
    %482 = vector.load %arg20[%c0_157, %c0_158] : memref<64x32xf32, #tpu.memory_space<vmem>>, vector<8x32xf32>
    tpu.vector_store %arg20[%c0_157, %c0_158], %480 {strides = array<i32>} : memref<64x32xf32, #tpu.memory_space<vmem>>, vector<8x32xf32>,
    %c0_159 = arith.constant 0 : index
    %c0_160 = arith.constant 0 : index
    %483 = vector.load %arg19[%c0_159, %c0_160] : memref<64x32xf32, #tpu.memory_space<vmem>>, vector<64x32xf32>
    %c0_161 = arith.constant 0 : index
    %c0_162 = arith.constant 0 : index
    %484 = vector.load %arg20[%c0_161, %c0_162] : memref<64x32xf32, #tpu.memory_space<vmem>>, vector<64x32xf32>
    %c0_163 = arith.constant 0 : index
    %c0_164 = arith.constant 0 : index
    %485 = vector.load %arg8[%c0_163, %c0_164] : memref<64x128xf32, #tpu.memory_space<vmem>>, vector<32x128xf32>
    %cst_165 = arith.constant dense<0.000000e+00> : vector<64x128xf32>
    %486 = tpu.matmul %483, %485, %cst_165 {dimension_numbers = #tpu.dot_dimension_numbers<[1], [0], [0], [1], [0, 0, 1, 1], [], []>} : vector<64x32xf32>, vector<32x128xf32>, vector<64x128xf32> -> vector<64x128xf32>
    %c32_166 = arith.constant 32 : index
    %c0_167 = arith.constant 0 : index
    %487 = vector.load %arg8[%c32_166, %c0_167] : memref<64x128xf32, #tpu.memory_space<vmem>>, vector<32x128xf32>
    %cst_168 = arith.constant dense<0.000000e+00> : vector<64x128xf32>
    %488 = tpu.matmul %484, %487, %cst_168 {dimension_numbers = #tpu.dot_dimension_numbers<[1], [0], [0], [1], [0, 0, 1, 1], [], []>} : vector<64x32xf32>, vector<32x128xf32>, vector<64x128xf32> -> vector<64x128xf32>
    %489 = arith.addf %486, %488 : vector<64x128xf32>
    %c0_169 = arith.constant 0 : index
    %c0_170 = arith.constant 0 : index
    %490 = vector.load %arg10[%c0_169, %c0_170] : memref<1x128xf32, #tpu.memory_space<vmem>>, vector<1x128xf32>
    %491 = vector.broadcast %490 : vector<1x128xf32> to vector<64x128xf32>
    %492 = arith.addf %489, %491 : vector<64x128xf32>
    %c0_171 = arith.constant 0 : index
    %c0_172 = arith.constant 0 : index
    %493 = vector.load %arg17[%c0_171, %c0_172] : memref<64x128xf32, #tpu.memory_space<vmem>>, vector<64x128xf32>
    tpu.vector_store %arg17[%c0_171, %c0_172], %492 {strides = array<i32>} : memref<64x128xf32, #tpu.memory_space<vmem>>, vector<64x128xf32>,
    %c0_173 = arith.constant 0 : index
    %c0_174 = arith.constant 0 : index
    %494 = vector.load %arg11[%c0_173, %c0_174] : memref<64x128xf32, #tpu.memory_space<vmem>>, vector<32x128xf32>
    %cst_175 = arith.constant dense<0.000000e+00> : vector<64x128xf32>
    %495 = tpu.matmul %483, %494, %cst_175 {dimension_numbers = #tpu.dot_dimension_numbers<[1], [0], [0], [1], [0, 0, 1, 1], [], []>} : vector<64x32xf32>, vector<32x128xf32>, vector<64x128xf32> -> vector<64x128xf32>
    %c32_176 = arith.constant 32 : index
    %c0_177 = arith.constant 0 : index
    %496 = vector.load %arg11[%c32_176, %c0_177] : memref<64x128xf32, #tpu.memory_space<vmem>>, vector<32x128xf32>
    %cst_178 = arith.constant dense<0.000000e+00> : vector<64x128xf32>
    %497 = tpu.matmul %484, %496, %cst_178 {dimension_numbers = #tpu.dot_dimension_numbers<[1], [0], [0], [1], [0, 0, 1, 1], [], []>} : vector<64x32xf32>, vector<32x128xf32>, vector<64x128xf32> -> vector<64x128xf32>
    %498 = arith.addf %495, %497 : vector<64x128xf32>
    %c0_179 = arith.constant 0 : index
    %c0_180 = arith.constant 0 : index
    %499 = vector.load %arg13[%c0_179, %c0_180] : memref<1x128xf32, #tpu.memory_space<vmem>>, vector<1x128xf32>
    %500 = vector.broadcast %499 : vector<1x128xf32> to vector<64x128xf32>
    %501 = arith.addf %498, %500 : vector<64x128xf32>
    %c0_181 = arith.constant 0 : index
    %c0_182 = arith.constant 0 : index
    %502 = vector.load %arg18[%c0_181, %c0_182] : memref<64x128xf32, #tpu.memory_space<vmem>>, vector<64x128xf32>
    tpu.vector_store %arg18[%c0_181, %c0_182], %501 {strides = array<i32>} : memref<64x128xf32, #tpu.memory_space<vmem>>, vector<64x128xf32>,
    %c0_183 = arith.constant 0 : index
    %c0_184 = arith.constant 0 : index
    %503 = vector.load %arg9[%c0_183, %c0_184] : memref<32x128xf32, #tpu.memory_space<vmem>>, vector<32x128xf32>
    %c0_185 = arith.constant 0 : index
    %c0_186 = arith.constant 0 : index
    %504 = vector.load %arg12[%c0_185, %c0_186] : memref<32x128xf32, #tpu.memory_space<vmem>>, vector<32x128xf32>
    %cst_187 = arith.constant 0.000000e+00 : f32
    %505 = vector.broadcast %cst_187 : f32 to vector<8x32xf32>
    %cst_188 = arith.constant 0.000000e+00 : f32
    %506 = vector.broadcast %cst_188 : f32 to vector<8x32xf32>
    %cst_189 = arith.constant 0.000000e+00 : f32
    %507 = vector.broadcast %cst_189 : f32 to vector<8x32xf32>
    %cst_190 = arith.constant 0.000000e+00 : f32
    %508 = vector.broadcast %cst_190 : f32 to vector<8x32xf32>
    %c0_191 = arith.constant 0 : index
    %c0_192 = arith.constant 0 : index
    %509 = vector.load %arg1[%c0_191, %c0_192] : memref<64x1xf32, #tpu.memory_space<vmem>>, vector<8x1xf32>
    %cst_193 = arith.constant 5.000000e-01 : f32
    %510 = vector.broadcast %cst_193 : f32 to vector<8x1xf32>
    %511 = arith.cmpf ogt, %509, %510 : vector<8x1xf32>
    %c0_194 = arith.constant 0 : index
    %c0_195 = arith.constant 0 : index
    %512 = vector.load %arg17[%c0_194, %c0_195] : memref<64x128xf32, #tpu.memory_space<vmem>>, vector<8x128xf32>
    %cst_196 = arith.constant dense<0.000000e+00> : vector<8x128xf32>
    %513 = tpu.matmul %505, %503, %cst_196 {dimension_numbers = #tpu.dot_dimension_numbers<[1], [0], [0], [1], [0, 0, 1, 1], [], []>} : vector<8x32xf32>, vector<32x128xf32>, vector<8x128xf32> -> vector<8x128xf32>
    %514 = arith.addf %512, %513 : vector<8x128xf32>
    %515 = math.tanh %514 : vector<8x128xf32>
    %516 = arith.negf %514 : vector<8x128xf32>
    %517 = math.exp %516 : vector<8x128xf32>
    %cst_197 = arith.constant 1.000000e+00 : f32
    %518 = vector.broadcast %cst_197 : f32 to vector<8x128xf32>
    %519 = arith.addf %518, %517 : vector<8x128xf32>
    %520 = arith.divf %518, %519 : vector<8x128xf32>
    %521 = arith.select %5, %515, %520 : vector<8x128xi1>, vector<8x128xf32>
    %522 = vector.extract_strided_slice %521 {offsets = [0, 0], sizes = [8, 32], strides = [1, 1]} : vector<8x128xf32> to vector<8x32xf32>
    %523 = vector.extract_strided_slice %521 {offsets = [0, 32], sizes = [8, 32], strides = [1, 1]} : vector<8x128xf32> to vector<8x32xf32>
    %524 = vector.extract_strided_slice %521 {offsets = [0, 64], sizes = [8, 32], strides = [1, 1]} : vector<8x128xf32> to vector<8x32xf32>
    %525 = vector.extract_strided_slice %521 {offsets = [0, 96], sizes = [8, 32], strides = [1, 1]} : vector<8x128xf32> to vector<8x32xf32>
    %526 = arith.mulf %523, %506 : vector<8x32xf32>
    %527 = arith.mulf %522, %524 : vector<8x32xf32>
    %528 = arith.addf %526, %527 : vector<8x32xf32>
    %529 = math.tanh %528 : vector<8x32xf32>
    %530 = arith.mulf %525, %529 : vector<8x32xf32>
    %531 = vector.shape_cast %511 : vector<8x1xi1> to vector<8x1xi1>
    %532 = vector.broadcast %531 : vector<8x1xi1> to vector<8x32xi1>
    %533 = arith.select %532, %530, %505 : vector<8x32xi1>, vector<8x32xf32>
    %534 = vector.shape_cast %511 : vector<8x1xi1> to vector<8x1xi1>
    %535 = vector.broadcast %534 : vector<8x1xi1> to vector<8x32xi1>
    %536 = arith.select %535, %528, %506 : vector<8x32xi1>, vector<8x32xf32>
    %c56_198 = arith.constant 56 : index
    %c0_199 = arith.constant 0 : index
    %537 = vector.load %arg1[%c56_198, %c0_199] : memref<64x1xf32, #tpu.memory_space<vmem>>, vector<8x1xf32>
    %cst_200 = arith.constant 5.000000e-01 : f32
    %538 = vector.broadcast %cst_200 : f32 to vector<8x1xf32>
    %539 = arith.cmpf ogt, %537, %538 : vector<8x1xf32>
    %c56_201 = arith.constant 56 : index
    %c0_202 = arith.constant 0 : index
    %540 = vector.load %arg18[%c56_201, %c0_202] : memref<64x128xf32, #tpu.memory_space<vmem>>, vector<8x128xf32>
    %cst_203 = arith.constant dense<0.000000e+00> : vector<8x128xf32>
    %541 = tpu.matmul %507, %504, %cst_203 {dimension_numbers = #tpu.dot_dimension_numbers<[1], [0], [0], [1], [0, 0, 1, 1], [], []>} : vector<8x32xf32>, vector<32x128xf32>, vector<8x128xf32> -> vector<8x128xf32>
    %542 = arith.addf %540, %541 : vector<8x128xf32>
    %543 = math.tanh %542 : vector<8x128xf32>
    %544 = arith.negf %542 : vector<8x128xf32>
    %545 = math.exp %544 : vector<8x128xf32>
    %cst_204 = arith.constant 1.000000e+00 : f32
    %546 = vector.broadcast %cst_204 : f32 to vector<8x128xf32>
    %547 = arith.addf %546, %545 : vector<8x128xf32>
    %548 = arith.divf %546, %547 : vector<8x128xf32>
    %549 = arith.select %5, %543, %548 : vector<8x128xi1>, vector<8x128xf32>
    %550 = vector.extract_strided_slice %549 {offsets = [0, 0], sizes = [8, 32], strides = [1, 1]} : vector<8x128xf32> to vector<8x32xf32>
    %551 = vector.extract_strided_slice %549 {offsets = [0, 32], sizes = [8, 32], strides = [1, 1]} : vector<8x128xf32> to vector<8x32xf32>
    %552 = vector.extract_strided_slice %549 {offsets = [0, 64], sizes = [8, 32], strides = [1, 1]} : vector<8x128xf32> to vector<8x32xf32>
    %553 = vector.extract_strided_slice %549 {offsets = [0, 96], sizes = [8, 32], strides = [1, 1]} : vector<8x128xf32> to vector<8x32xf32>
    %554 = arith.mulf %551, %508 : vector<8x32xf32>
    %555 = arith.mulf %550, %552 : vector<8x32xf32>
    %556 = arith.addf %554, %555 : vector<8x32xf32>
    %557 = math.tanh %556 : vector<8x32xf32>
    %558 = arith.mulf %553, %557 : vector<8x32xf32>
    %559 = vector.shape_cast %539 : vector<8x1xi1> to vector<8x1xi1>
    %560 = vector.broadcast %559 : vector<8x1xi1> to vector<8x32xi1>
    %561 = arith.select %560, %558, %507 : vector<8x32xi1>, vector<8x32xf32>
    %562 = vector.shape_cast %539 : vector<8x1xi1> to vector<8x1xi1>
    %563 = vector.broadcast %562 : vector<8x1xi1> to vector<8x32xi1>
    %564 = arith.select %563, %556, %508 : vector<8x32xi1>, vector<8x32xf32>
    %c8_205 = arith.constant 8 : index
    %c0_206 = arith.constant 0 : index
    %565 = vector.load %arg1[%c8_205, %c0_206] : memref<64x1xf32, #tpu.memory_space<vmem>>, vector<8x1xf32>
    %cst_207 = arith.constant 5.000000e-01 : f32
    %566 = vector.broadcast %cst_207 : f32 to vector<8x1xf32>
    %567 = arith.cmpf ogt, %565, %566 : vector<8x1xf32>
    %c8_208 = arith.constant 8 : index
    %c0_209 = arith.constant 0 : index
    %568 = vector.load %arg17[%c8_208, %c0_209] : memref<64x128xf32, #tpu.memory_space<vmem>>, vector<8x128xf32>
    %cst_210 = arith.constant dense<0.000000e+00> : vector<8x128xf32>
    %569 = tpu.matmul %533, %503, %cst_210 {dimension_numbers = #tpu.dot_dimension_numbers<[1], [0], [0], [1], [0, 0, 1, 1], [], []>} : vector<8x32xf32>, vector<32x128xf32>, vector<8x128xf32> -> vector<8x128xf32>
    %570 = arith.addf %568, %569 : vector<8x128xf32>
    %571 = math.tanh %570 : vector<8x128xf32>
    %572 = arith.negf %570 : vector<8x128xf32>
    %573 = math.exp %572 : vector<8x128xf32>
    %cst_211 = arith.constant 1.000000e+00 : f32
    %574 = vector.broadcast %cst_211 : f32 to vector<8x128xf32>
    %575 = arith.addf %574, %573 : vector<8x128xf32>
    %576 = arith.divf %574, %575 : vector<8x128xf32>
    %577 = arith.select %5, %571, %576 : vector<8x128xi1>, vector<8x128xf32>
    %578 = vector.extract_strided_slice %577 {offsets = [0, 0], sizes = [8, 32], strides = [1, 1]} : vector<8x128xf32> to vector<8x32xf32>
    %579 = vector.extract_strided_slice %577 {offsets = [0, 32], sizes = [8, 32], strides = [1, 1]} : vector<8x128xf32> to vector<8x32xf32>
    %580 = vector.extract_strided_slice %577 {offsets = [0, 64], sizes = [8, 32], strides = [1, 1]} : vector<8x128xf32> to vector<8x32xf32>
    %581 = vector.extract_strided_slice %577 {offsets = [0, 96], sizes = [8, 32], strides = [1, 1]} : vector<8x128xf32> to vector<8x32xf32>
    %582 = arith.mulf %579, %536 : vector<8x32xf32>
    %583 = arith.mulf %578, %580 : vector<8x32xf32>
    %584 = arith.addf %582, %583 : vector<8x32xf32>
    %585 = math.tanh %584 : vector<8x32xf32>
    %586 = arith.mulf %581, %585 : vector<8x32xf32>
    %587 = vector.shape_cast %567 : vector<8x1xi1> to vector<8x1xi1>
    %588 = vector.broadcast %587 : vector<8x1xi1> to vector<8x32xi1>
    %589 = arith.select %588, %586, %533 : vector<8x32xi1>, vector<8x32xf32>
    %590 = vector.shape_cast %567 : vector<8x1xi1> to vector<8x1xi1>
    %591 = vector.broadcast %590 : vector<8x1xi1> to vector<8x32xi1>
    %592 = arith.select %591, %584, %536 : vector<8x32xi1>, vector<8x32xf32>
    %c48_212 = arith.constant 48 : index
    %c0_213 = arith.constant 0 : index
    %593 = vector.load %arg1[%c48_212, %c0_213] : memref<64x1xf32, #tpu.memory_space<vmem>>, vector<8x1xf32>
    %cst_214 = arith.constant 5.000000e-01 : f32
    %594 = vector.broadcast %cst_214 : f32 to vector<8x1xf32>
    %595 = arith.cmpf ogt, %593, %594 : vector<8x1xf32>
    %c48_215 = arith.constant 48 : index
    %c0_216 = arith.constant 0 : index
    %596 = vector.load %arg18[%c48_215, %c0_216] : memref<64x128xf32, #tpu.memory_space<vmem>>, vector<8x128xf32>
    %cst_217 = arith.constant dense<0.000000e+00> : vector<8x128xf32>
    %597 = tpu.matmul %561, %504, %cst_217 {dimension_numbers = #tpu.dot_dimension_numbers<[1], [0], [0], [1], [0, 0, 1, 1], [], []>} : vector<8x32xf32>, vector<32x128xf32>, vector<8x128xf32> -> vector<8x128xf32>
    %598 = arith.addf %596, %597 : vector<8x128xf32>
    %599 = math.tanh %598 : vector<8x128xf32>
    %600 = arith.negf %598 : vector<8x128xf32>
    %601 = math.exp %600 : vector<8x128xf32>
    %cst_218 = arith.constant 1.000000e+00 : f32
    %602 = vector.broadcast %cst_218 : f32 to vector<8x128xf32>
    %603 = arith.addf %602, %601 : vector<8x128xf32>
    %604 = arith.divf %602, %603 : vector<8x128xf32>
    %605 = arith.select %5, %599, %604 : vector<8x128xi1>, vector<8x128xf32>
    %606 = vector.extract_strided_slice %605 {offsets = [0, 0], sizes = [8, 32], strides = [1, 1]} : vector<8x128xf32> to vector<8x32xf32>
    %607 = vector.extract_strided_slice %605 {offsets = [0, 32], sizes = [8, 32], strides = [1, 1]} : vector<8x128xf32> to vector<8x32xf32>
    %608 = vector.extract_strided_slice %605 {offsets = [0, 64], sizes = [8, 32], strides = [1, 1]} : vector<8x128xf32> to vector<8x32xf32>
    %609 = vector.extract_strided_slice %605 {offsets = [0, 96], sizes = [8, 32], strides = [1, 1]} : vector<8x128xf32> to vector<8x32xf32>
    %610 = arith.mulf %607, %564 : vector<8x32xf32>
    %611 = arith.mulf %606, %608 : vector<8x32xf32>
    %612 = arith.addf %610, %611 : vector<8x32xf32>
    %613 = math.tanh %612 : vector<8x32xf32>
    %614 = arith.mulf %609, %613 : vector<8x32xf32>
    %615 = vector.shape_cast %595 : vector<8x1xi1> to vector<8x1xi1>
    %616 = vector.broadcast %615 : vector<8x1xi1> to vector<8x32xi1>
    %617 = arith.select %616, %614, %561 : vector<8x32xi1>, vector<8x32xf32>
    %618 = vector.shape_cast %595 : vector<8x1xi1> to vector<8x1xi1>
    %619 = vector.broadcast %618 : vector<8x1xi1> to vector<8x32xi1>
    %620 = arith.select %619, %612, %564 : vector<8x32xi1>, vector<8x32xf32>
    %c16_219 = arith.constant 16 : index
    %c0_220 = arith.constant 0 : index
    %621 = vector.load %arg1[%c16_219, %c0_220] : memref<64x1xf32, #tpu.memory_space<vmem>>, vector<8x1xf32>
    %cst_221 = arith.constant 5.000000e-01 : f32
    %622 = vector.broadcast %cst_221 : f32 to vector<8x1xf32>
    %623 = arith.cmpf ogt, %621, %622 : vector<8x1xf32>
    %c16_222 = arith.constant 16 : index
    %c0_223 = arith.constant 0 : index
    %624 = vector.load %arg17[%c16_222, %c0_223] : memref<64x128xf32, #tpu.memory_space<vmem>>, vector<8x128xf32>
    %cst_224 = arith.constant dense<0.000000e+00> : vector<8x128xf32>
    %625 = tpu.matmul %589, %503, %cst_224 {dimension_numbers = #tpu.dot_dimension_numbers<[1], [0], [0], [1], [0, 0, 1, 1], [], []>} : vector<8x32xf32>, vector<32x128xf32>, vector<8x128xf32> -> vector<8x128xf32>
    %626 = arith.addf %624, %625 : vector<8x128xf32>
    %627 = math.tanh %626 : vector<8x128xf32>
    %628 = arith.negf %626 : vector<8x128xf32>
    %629 = math.exp %628 : vector<8x128xf32>
    %cst_225 = arith.constant 1.000000e+00 : f32
    %630 = vector.broadcast %cst_225 : f32 to vector<8x128xf32>
    %631 = arith.addf %630, %629 : vector<8x128xf32>
    %632 = arith.divf %630, %631 : vector<8x128xf32>
    %633 = arith.select %5, %627, %632 : vector<8x128xi1>, vector<8x128xf32>
    %634 = vector.extract_strided_slice %633 {offsets = [0, 0], sizes = [8, 32], strides = [1, 1]} : vector<8x128xf32> to vector<8x32xf32>
    %635 = vector.extract_strided_slice %633 {offsets = [0, 32], sizes = [8, 32], strides = [1, 1]} : vector<8x128xf32> to vector<8x32xf32>
    %636 = vector.extract_strided_slice %633 {offsets = [0, 64], sizes = [8, 32], strides = [1, 1]} : vector<8x128xf32> to vector<8x32xf32>
    %637 = vector.extract_strided_slice %633 {offsets = [0, 96], sizes = [8, 32], strides = [1, 1]} : vector<8x128xf32> to vector<8x32xf32>
    %638 = arith.mulf %635, %592 : vector<8x32xf32>
    %639 = arith.mulf %634, %636 : vector<8x32xf32>
    %640 = arith.addf %638, %639 : vector<8x32xf32>
    %641 = math.tanh %640 : vector<8x32xf32>
    %642 = arith.mulf %637, %641 : vector<8x32xf32>
    %643 = vector.shape_cast %623 : vector<8x1xi1> to vector<8x1xi1>
    %644 = vector.broadcast %643 : vector<8x1xi1> to vector<8x32xi1>
    %645 = arith.select %644, %642, %589 : vector<8x32xi1>, vector<8x32xf32>
    %646 = vector.shape_cast %623 : vector<8x1xi1> to vector<8x1xi1>
    %647 = vector.broadcast %646 : vector<8x1xi1> to vector<8x32xi1>
    %648 = arith.select %647, %640, %592 : vector<8x32xi1>, vector<8x32xf32>
    %c40_226 = arith.constant 40 : index
    %c0_227 = arith.constant 0 : index
    %649 = vector.load %arg1[%c40_226, %c0_227] : memref<64x1xf32, #tpu.memory_space<vmem>>, vector<8x1xf32>
    %cst_228 = arith.constant 5.000000e-01 : f32
    %650 = vector.broadcast %cst_228 : f32 to vector<8x1xf32>
    %651 = arith.cmpf ogt, %649, %650 : vector<8x1xf32>
    %c40_229 = arith.constant 40 : index
    %c0_230 = arith.constant 0 : index
    %652 = vector.load %arg18[%c40_229, %c0_230] : memref<64x128xf32, #tpu.memory_space<vmem>>, vector<8x128xf32>
    %cst_231 = arith.constant dense<0.000000e+00> : vector<8x128xf32>
    %653 = tpu.matmul %617, %504, %cst_231 {dimension_numbers = #tpu.dot_dimension_numbers<[1], [0], [0], [1], [0, 0, 1, 1], [], []>} : vector<8x32xf32>, vector<32x128xf32>, vector<8x128xf32> -> vector<8x128xf32>
    %654 = arith.addf %652, %653 : vector<8x128xf32>
    %655 = math.tanh %654 : vector<8x128xf32>
    %656 = arith.negf %654 : vector<8x128xf32>
    %657 = math.exp %656 : vector<8x128xf32>
    %cst_232 = arith.constant 1.000000e+00 : f32
    %658 = vector.broadcast %cst_232 : f32 to vector<8x128xf32>
    %659 = arith.addf %658, %657 : vector<8x128xf32>
    %660 = arith.divf %658, %659 : vector<8x128xf32>
    %661 = arith.select %5, %655, %660 : vector<8x128xi1>, vector<8x128xf32>
    %662 = vector.extract_strided_slice %661 {offsets = [0, 0], sizes = [8, 32], strides = [1, 1]} : vector<8x128xf32> to vector<8x32xf32>
    %663 = vector.extract_strided_slice %661 {offsets = [0, 32], sizes = [8, 32], strides = [1, 1]} : vector<8x128xf32> to vector<8x32xf32>
    %664 = vector.extract_strided_slice %661 {offsets = [0, 64], sizes = [8, 32], strides = [1, 1]} : vector<8x128xf32> to vector<8x32xf32>
    %665 = vector.extract_strided_slice %661 {offsets = [0, 96], sizes = [8, 32], strides = [1, 1]} : vector<8x128xf32> to vector<8x32xf32>
    %666 = arith.mulf %663, %620 : vector<8x32xf32>
    %667 = arith.mulf %662, %664 : vector<8x32xf32>
    %668 = arith.addf %666, %667 : vector<8x32xf32>
    %669 = math.tanh %668 : vector<8x32xf32>
    %670 = arith.mulf %665, %669 : vector<8x32xf32>
    %671 = vector.shape_cast %651 : vector<8x1xi1> to vector<8x1xi1>
    %672 = vector.broadcast %671 : vector<8x1xi1> to vector<8x32xi1>
    %673 = arith.select %672, %670, %617 : vector<8x32xi1>, vector<8x32xf32>
    %674 = vector.shape_cast %651 : vector<8x1xi1> to vector<8x1xi1>
    %675 = vector.broadcast %674 : vector<8x1xi1> to vector<8x32xi1>
    %676 = arith.select %675, %668, %620 : vector<8x32xi1>, vector<8x32xf32>
    %c24_233 = arith.constant 24 : index
    %c0_234 = arith.constant 0 : index
    %677 = vector.load %arg1[%c24_233, %c0_234] : memref<64x1xf32, #tpu.memory_space<vmem>>, vector<8x1xf32>
    %cst_235 = arith.constant 5.000000e-01 : f32
    %678 = vector.broadcast %cst_235 : f32 to vector<8x1xf32>
    %679 = arith.cmpf ogt, %677, %678 : vector<8x1xf32>
    %c24_236 = arith.constant 24 : index
    %c0_237 = arith.constant 0 : index
    %680 = vector.load %arg17[%c24_236, %c0_237] : memref<64x128xf32, #tpu.memory_space<vmem>>, vector<8x128xf32>
    %cst_238 = arith.constant dense<0.000000e+00> : vector<8x128xf32>
    %681 = tpu.matmul %645, %503, %cst_238 {dimension_numbers = #tpu.dot_dimension_numbers<[1], [0], [0], [1], [0, 0, 1, 1], [], []>} : vector<8x32xf32>, vector<32x128xf32>, vector<8x128xf32> -> vector<8x128xf32>
    %682 = arith.addf %680, %681 : vector<8x128xf32>
    %683 = math.tanh %682 : vector<8x128xf32>
    %684 = arith.negf %682 : vector<8x128xf32>
    %685 = math.exp %684 : vector<8x128xf32>
    %cst_239 = arith.constant 1.000000e+00 : f32
    %686 = vector.broadcast %cst_239 : f32 to vector<8x128xf32>
    %687 = arith.addf %686, %685 : vector<8x128xf32>
    %688 = arith.divf %686, %687 : vector<8x128xf32>
    %689 = arith.select %5, %683, %688 : vector<8x128xi1>, vector<8x128xf32>
    %690 = vector.extract_strided_slice %689 {offsets = [0, 0], sizes = [8, 32], strides = [1, 1]} : vector<8x128xf32> to vector<8x32xf32>
    %691 = vector.extract_strided_slice %689 {offsets = [0, 32], sizes = [8, 32], strides = [1, 1]} : vector<8x128xf32> to vector<8x32xf32>
    %692 = vector.extract_strided_slice %689 {offsets = [0, 64], sizes = [8, 32], strides = [1, 1]} : vector<8x128xf32> to vector<8x32xf32>
    %693 = vector.extract_strided_slice %689 {offsets = [0, 96], sizes = [8, 32], strides = [1, 1]} : vector<8x128xf32> to vector<8x32xf32>
    %694 = arith.mulf %691, %648 : vector<8x32xf32>
    %695 = arith.mulf %690, %692 : vector<8x32xf32>
    %696 = arith.addf %694, %695 : vector<8x32xf32>
    %697 = math.tanh %696 : vector<8x32xf32>
    %698 = arith.mulf %693, %697 : vector<8x32xf32>
    %699 = vector.shape_cast %679 : vector<8x1xi1> to vector<8x1xi1>
    %700 = vector.broadcast %699 : vector<8x1xi1> to vector<8x32xi1>
    %701 = arith.select %700, %698, %645 : vector<8x32xi1>, vector<8x32xf32>
    %702 = vector.shape_cast %679 : vector<8x1xi1> to vector<8x1xi1>
    %703 = vector.broadcast %702 : vector<8x1xi1> to vector<8x32xi1>
    %704 = arith.select %703, %696, %648 : vector<8x32xi1>, vector<8x32xf32>
    %c32_240 = arith.constant 32 : index
    %c0_241 = arith.constant 0 : index
    %705 = vector.load %arg1[%c32_240, %c0_241] : memref<64x1xf32, #tpu.memory_space<vmem>>, vector<8x1xf32>
    %cst_242 = arith.constant 5.000000e-01 : f32
    %706 = vector.broadcast %cst_242 : f32 to vector<8x1xf32>
    %707 = arith.cmpf ogt, %705, %706 : vector<8x1xf32>
    %c32_243 = arith.constant 32 : index
    %c0_244 = arith.constant 0 : index
    %708 = vector.load %arg18[%c32_243, %c0_244] : memref<64x128xf32, #tpu.memory_space<vmem>>, vector<8x128xf32>
    %cst_245 = arith.constant dense<0.000000e+00> : vector<8x128xf32>
    %709 = tpu.matmul %673, %504, %cst_245 {dimension_numbers = #tpu.dot_dimension_numbers<[1], [0], [0], [1], [0, 0, 1, 1], [], []>} : vector<8x32xf32>, vector<32x128xf32>, vector<8x128xf32> -> vector<8x128xf32>
    %710 = arith.addf %708, %709 : vector<8x128xf32>
    %711 = math.tanh %710 : vector<8x128xf32>
    %712 = arith.negf %710 : vector<8x128xf32>
    %713 = math.exp %712 : vector<8x128xf32>
    %cst_246 = arith.constant 1.000000e+00 : f32
    %714 = vector.broadcast %cst_246 : f32 to vector<8x128xf32>
    %715 = arith.addf %714, %713 : vector<8x128xf32>
    %716 = arith.divf %714, %715 : vector<8x128xf32>
    %717 = arith.select %5, %711, %716 : vector<8x128xi1>, vector<8x128xf32>
    %718 = vector.extract_strided_slice %717 {offsets = [0, 0], sizes = [8, 32], strides = [1, 1]} : vector<8x128xf32> to vector<8x32xf32>
    %719 = vector.extract_strided_slice %717 {offsets = [0, 32], sizes = [8, 32], strides = [1, 1]} : vector<8x128xf32> to vector<8x32xf32>
    %720 = vector.extract_strided_slice %717 {offsets = [0, 64], sizes = [8, 32], strides = [1, 1]} : vector<8x128xf32> to vector<8x32xf32>
    %721 = vector.extract_strided_slice %717 {offsets = [0, 96], sizes = [8, 32], strides = [1, 1]} : vector<8x128xf32> to vector<8x32xf32>
    %722 = arith.mulf %719, %676 : vector<8x32xf32>
    %723 = arith.mulf %718, %720 : vector<8x32xf32>
    %724 = arith.addf %722, %723 : vector<8x32xf32>
    %725 = math.tanh %724 : vector<8x32xf32>
    %726 = arith.mulf %721, %725 : vector<8x32xf32>
    %727 = vector.shape_cast %707 : vector<8x1xi1> to vector<8x1xi1>
    %728 = vector.broadcast %727 : vector<8x1xi1> to vector<8x32xi1>
    %729 = arith.select %728, %726, %673 : vector<8x32xi1>, vector<8x32xf32>
    %730 = vector.shape_cast %707 : vector<8x1xi1> to vector<8x1xi1>
    %731 = vector.broadcast %730 : vector<8x1xi1> to vector<8x32xi1>
    %732 = arith.select %731, %724, %676 : vector<8x32xi1>, vector<8x32xf32>
    %c32_247 = arith.constant 32 : index
    %c0_248 = arith.constant 0 : index
    %733 = vector.load %arg1[%c32_247, %c0_248] : memref<64x1xf32, #tpu.memory_space<vmem>>, vector<8x1xf32>
    %cst_249 = arith.constant 5.000000e-01 : f32
    %734 = vector.broadcast %cst_249 : f32 to vector<8x1xf32>
    %735 = arith.cmpf ogt, %733, %734 : vector<8x1xf32>
    %c32_250 = arith.constant 32 : index
    %c0_251 = arith.constant 0 : index
    %736 = vector.load %arg17[%c32_250, %c0_251] : memref<64x128xf32, #tpu.memory_space<vmem>>, vector<8x128xf32>
    %cst_252 = arith.constant dense<0.000000e+00> : vector<8x128xf32>
    %737 = tpu.matmul %701, %503, %cst_252 {dimension_numbers = #tpu.dot_dimension_numbers<[1], [0], [0], [1], [0, 0, 1, 1], [], []>} : vector<8x32xf32>, vector<32x128xf32>, vector<8x128xf32> -> vector<8x128xf32>
    %738 = arith.addf %736, %737 : vector<8x128xf32>
    %739 = math.tanh %738 : vector<8x128xf32>
    %740 = arith.negf %738 : vector<8x128xf32>
    %741 = math.exp %740 : vector<8x128xf32>
    %cst_253 = arith.constant 1.000000e+00 : f32
    %742 = vector.broadcast %cst_253 : f32 to vector<8x128xf32>
    %743 = arith.addf %742, %741 : vector<8x128xf32>
    %744 = arith.divf %742, %743 : vector<8x128xf32>
    %745 = arith.select %5, %739, %744 : vector<8x128xi1>, vector<8x128xf32>
    %746 = vector.extract_strided_slice %745 {offsets = [0, 0], sizes = [8, 32], strides = [1, 1]} : vector<8x128xf32> to vector<8x32xf32>
    %747 = vector.extract_strided_slice %745 {offsets = [0, 32], sizes = [8, 32], strides = [1, 1]} : vector<8x128xf32> to vector<8x32xf32>
    %748 = vector.extract_strided_slice %745 {offsets = [0, 64], sizes = [8, 32], strides = [1, 1]} : vector<8x128xf32> to vector<8x32xf32>
    %749 = vector.extract_strided_slice %745 {offsets = [0, 96], sizes = [8, 32], strides = [1, 1]} : vector<8x128xf32> to vector<8x32xf32>
    %750 = arith.mulf %747, %704 : vector<8x32xf32>
    %751 = arith.mulf %746, %748 : vector<8x32xf32>
    %752 = arith.addf %750, %751 : vector<8x32xf32>
    %753 = math.tanh %752 : vector<8x32xf32>
    %754 = arith.mulf %749, %753 : vector<8x32xf32>
    %755 = vector.shape_cast %735 : vector<8x1xi1> to vector<8x1xi1>
    %756 = vector.broadcast %755 : vector<8x1xi1> to vector<8x32xi1>
    %757 = arith.select %756, %754, %701 : vector<8x32xi1>, vector<8x32xf32>
    %758 = vector.shape_cast %735 : vector<8x1xi1> to vector<8x1xi1>
    %759 = vector.broadcast %758 : vector<8x1xi1> to vector<8x32xi1>
    %760 = arith.select %759, %752, %704 : vector<8x32xi1>, vector<8x32xf32>
    %c24_254 = arith.constant 24 : index
    %c0_255 = arith.constant 0 : index
    %761 = vector.load %arg1[%c24_254, %c0_255] : memref<64x1xf32, #tpu.memory_space<vmem>>, vector<8x1xf32>
    %cst_256 = arith.constant 5.000000e-01 : f32
    %762 = vector.broadcast %cst_256 : f32 to vector<8x1xf32>
    %763 = arith.cmpf ogt, %761, %762 : vector<8x1xf32>
    %c24_257 = arith.constant 24 : index
    %c0_258 = arith.constant 0 : index
    %764 = vector.load %arg18[%c24_257, %c0_258] : memref<64x128xf32, #tpu.memory_space<vmem>>, vector<8x128xf32>
    %cst_259 = arith.constant dense<0.000000e+00> : vector<8x128xf32>
    %765 = tpu.matmul %729, %504, %cst_259 {dimension_numbers = #tpu.dot_dimension_numbers<[1], [0], [0], [1], [0, 0, 1, 1], [], []>} : vector<8x32xf32>, vector<32x128xf32>, vector<8x128xf32> -> vector<8x128xf32>
    %766 = arith.addf %764, %765 : vector<8x128xf32>
    %767 = math.tanh %766 : vector<8x128xf32>
    %768 = arith.negf %766 : vector<8x128xf32>
    %769 = math.exp %768 : vector<8x128xf32>
    %cst_260 = arith.constant 1.000000e+00 : f32
    %770 = vector.broadcast %cst_260 : f32 to vector<8x128xf32>
    %771 = arith.addf %770, %769 : vector<8x128xf32>
    %772 = arith.divf %770, %771 : vector<8x128xf32>
    %773 = arith.select %5, %767, %772 : vector<8x128xi1>, vector<8x128xf32>
    %774 = vector.extract_strided_slice %773 {offsets = [0, 0], sizes = [8, 32], strides = [1, 1]} : vector<8x128xf32> to vector<8x32xf32>
    %775 = vector.extract_strided_slice %773 {offsets = [0, 32], sizes = [8, 32], strides = [1, 1]} : vector<8x128xf32> to vector<8x32xf32>
    %776 = vector.extract_strided_slice %773 {offsets = [0, 64], sizes = [8, 32], strides = [1, 1]} : vector<8x128xf32> to vector<8x32xf32>
    %777 = vector.extract_strided_slice %773 {offsets = [0, 96], sizes = [8, 32], strides = [1, 1]} : vector<8x128xf32> to vector<8x32xf32>
    %778 = arith.mulf %775, %732 : vector<8x32xf32>
    %779 = arith.mulf %774, %776 : vector<8x32xf32>
    %780 = arith.addf %778, %779 : vector<8x32xf32>
    %781 = math.tanh %780 : vector<8x32xf32>
    %782 = arith.mulf %777, %781 : vector<8x32xf32>
    %783 = vector.shape_cast %763 : vector<8x1xi1> to vector<8x1xi1>
    %784 = vector.broadcast %783 : vector<8x1xi1> to vector<8x32xi1>
    %785 = arith.select %784, %782, %729 : vector<8x32xi1>, vector<8x32xf32>
    %786 = vector.shape_cast %763 : vector<8x1xi1> to vector<8x1xi1>
    %787 = vector.broadcast %786 : vector<8x1xi1> to vector<8x32xi1>
    %788 = arith.select %787, %780, %732 : vector<8x32xi1>, vector<8x32xf32>
    %c40_261 = arith.constant 40 : index
    %c0_262 = arith.constant 0 : index
    %789 = vector.load %arg1[%c40_261, %c0_262] : memref<64x1xf32, #tpu.memory_space<vmem>>, vector<8x1xf32>
    %cst_263 = arith.constant 5.000000e-01 : f32
    %790 = vector.broadcast %cst_263 : f32 to vector<8x1xf32>
    %791 = arith.cmpf ogt, %789, %790 : vector<8x1xf32>
    %c40_264 = arith.constant 40 : index
    %c0_265 = arith.constant 0 : index
    %792 = vector.load %arg17[%c40_264, %c0_265] : memref<64x128xf32, #tpu.memory_space<vmem>>, vector<8x128xf32>
    %cst_266 = arith.constant dense<0.000000e+00> : vector<8x128xf32>
    %793 = tpu.matmul %757, %503, %cst_266 {dimension_numbers = #tpu.dot_dimension_numbers<[1], [0], [0], [1], [0, 0, 1, 1], [], []>} : vector<8x32xf32>, vector<32x128xf32>, vector<8x128xf32> -> vector<8x128xf32>
    %794 = arith.addf %792, %793 : vector<8x128xf32>
    %795 = math.tanh %794 : vector<8x128xf32>
    %796 = arith.negf %794 : vector<8x128xf32>
    %797 = math.exp %796 : vector<8x128xf32>
    %cst_267 = arith.constant 1.000000e+00 : f32
    %798 = vector.broadcast %cst_267 : f32 to vector<8x128xf32>
    %799 = arith.addf %798, %797 : vector<8x128xf32>
    %800 = arith.divf %798, %799 : vector<8x128xf32>
    %801 = arith.select %5, %795, %800 : vector<8x128xi1>, vector<8x128xf32>
    %802 = vector.extract_strided_slice %801 {offsets = [0, 0], sizes = [8, 32], strides = [1, 1]} : vector<8x128xf32> to vector<8x32xf32>
    %803 = vector.extract_strided_slice %801 {offsets = [0, 32], sizes = [8, 32], strides = [1, 1]} : vector<8x128xf32> to vector<8x32xf32>
    %804 = vector.extract_strided_slice %801 {offsets = [0, 64], sizes = [8, 32], strides = [1, 1]} : vector<8x128xf32> to vector<8x32xf32>
    %805 = vector.extract_strided_slice %801 {offsets = [0, 96], sizes = [8, 32], strides = [1, 1]} : vector<8x128xf32> to vector<8x32xf32>
    %806 = arith.mulf %803, %760 : vector<8x32xf32>
    %807 = arith.mulf %802, %804 : vector<8x32xf32>
    %808 = arith.addf %806, %807 : vector<8x32xf32>
    %809 = math.tanh %808 : vector<8x32xf32>
    %810 = arith.mulf %805, %809 : vector<8x32xf32>
    %811 = vector.shape_cast %791 : vector<8x1xi1> to vector<8x1xi1>
    %812 = vector.broadcast %811 : vector<8x1xi1> to vector<8x32xi1>
    %813 = arith.select %812, %810, %757 : vector<8x32xi1>, vector<8x32xf32>
    %814 = vector.shape_cast %791 : vector<8x1xi1> to vector<8x1xi1>
    %815 = vector.broadcast %814 : vector<8x1xi1> to vector<8x32xi1>
    %816 = arith.select %815, %808, %760 : vector<8x32xi1>, vector<8x32xf32>
    %c16_268 = arith.constant 16 : index
    %c0_269 = arith.constant 0 : index
    %817 = vector.load %arg1[%c16_268, %c0_269] : memref<64x1xf32, #tpu.memory_space<vmem>>, vector<8x1xf32>
    %cst_270 = arith.constant 5.000000e-01 : f32
    %818 = vector.broadcast %cst_270 : f32 to vector<8x1xf32>
    %819 = arith.cmpf ogt, %817, %818 : vector<8x1xf32>
    %c16_271 = arith.constant 16 : index
    %c0_272 = arith.constant 0 : index
    %820 = vector.load %arg18[%c16_271, %c0_272] : memref<64x128xf32, #tpu.memory_space<vmem>>, vector<8x128xf32>
    %cst_273 = arith.constant dense<0.000000e+00> : vector<8x128xf32>
    %821 = tpu.matmul %785, %504, %cst_273 {dimension_numbers = #tpu.dot_dimension_numbers<[1], [0], [0], [1], [0, 0, 1, 1], [], []>} : vector<8x32xf32>, vector<32x128xf32>, vector<8x128xf32> -> vector<8x128xf32>
    %822 = arith.addf %820, %821 : vector<8x128xf32>
    %823 = math.tanh %822 : vector<8x128xf32>
    %824 = arith.negf %822 : vector<8x128xf32>
    %825 = math.exp %824 : vector<8x128xf32>
    %cst_274 = arith.constant 1.000000e+00 : f32
    %826 = vector.broadcast %cst_274 : f32 to vector<8x128xf32>
    %827 = arith.addf %826, %825 : vector<8x128xf32>
    %828 = arith.divf %826, %827 : vector<8x128xf32>
    %829 = arith.select %5, %823, %828 : vector<8x128xi1>, vector<8x128xf32>
    %830 = vector.extract_strided_slice %829 {offsets = [0, 0], sizes = [8, 32], strides = [1, 1]} : vector<8x128xf32> to vector<8x32xf32>
    %831 = vector.extract_strided_slice %829 {offsets = [0, 32], sizes = [8, 32], strides = [1, 1]} : vector<8x128xf32> to vector<8x32xf32>
    %832 = vector.extract_strided_slice %829 {offsets = [0, 64], sizes = [8, 32], strides = [1, 1]} : vector<8x128xf32> to vector<8x32xf32>
    %833 = vector.extract_strided_slice %829 {offsets = [0, 96], sizes = [8, 32], strides = [1, 1]} : vector<8x128xf32> to vector<8x32xf32>
    %834 = arith.mulf %831, %788 : vector<8x32xf32>
    %835 = arith.mulf %830, %832 : vector<8x32xf32>
    %836 = arith.addf %834, %835 : vector<8x32xf32>
    %837 = math.tanh %836 : vector<8x32xf32>
    %838 = arith.mulf %833, %837 : vector<8x32xf32>
    %839 = vector.shape_cast %819 : vector<8x1xi1> to vector<8x1xi1>
    %840 = vector.broadcast %839 : vector<8x1xi1> to vector<8x32xi1>
    %841 = arith.select %840, %838, %785 : vector<8x32xi1>, vector<8x32xf32>
    %842 = vector.shape_cast %819 : vector<8x1xi1> to vector<8x1xi1>
    %843 = vector.broadcast %842 : vector<8x1xi1> to vector<8x32xi1>
    %844 = arith.select %843, %836, %788 : vector<8x32xi1>, vector<8x32xf32>
    %c48_275 = arith.constant 48 : index
    %c0_276 = arith.constant 0 : index
    %845 = vector.load %arg1[%c48_275, %c0_276] : memref<64x1xf32, #tpu.memory_space<vmem>>, vector<8x1xf32>
    %cst_277 = arith.constant 5.000000e-01 : f32
    %846 = vector.broadcast %cst_277 : f32 to vector<8x1xf32>
    %847 = arith.cmpf ogt, %845, %846 : vector<8x1xf32>
    %c48_278 = arith.constant 48 : index
    %c0_279 = arith.constant 0 : index
    %848 = vector.load %arg17[%c48_278, %c0_279] : memref<64x128xf32, #tpu.memory_space<vmem>>, vector<8x128xf32>
    %cst_280 = arith.constant dense<0.000000e+00> : vector<8x128xf32>
    %849 = tpu.matmul %813, %503, %cst_280 {dimension_numbers = #tpu.dot_dimension_numbers<[1], [0], [0], [1], [0, 0, 1, 1], [], []>} : vector<8x32xf32>, vector<32x128xf32>, vector<8x128xf32> -> vector<8x128xf32>
    %850 = arith.addf %848, %849 : vector<8x128xf32>
    %851 = math.tanh %850 : vector<8x128xf32>
    %852 = arith.negf %850 : vector<8x128xf32>
    %853 = math.exp %852 : vector<8x128xf32>
    %cst_281 = arith.constant 1.000000e+00 : f32
    %854 = vector.broadcast %cst_281 : f32 to vector<8x128xf32>
    %855 = arith.addf %854, %853 : vector<8x128xf32>
    %856 = arith.divf %854, %855 : vector<8x128xf32>
    %857 = arith.select %5, %851, %856 : vector<8x128xi1>, vector<8x128xf32>
    %858 = vector.extract_strided_slice %857 {offsets = [0, 0], sizes = [8, 32], strides = [1, 1]} : vector<8x128xf32> to vector<8x32xf32>
    %859 = vector.extract_strided_slice %857 {offsets = [0, 32], sizes = [8, 32], strides = [1, 1]} : vector<8x128xf32> to vector<8x32xf32>
    %860 = vector.extract_strided_slice %857 {offsets = [0, 64], sizes = [8, 32], strides = [1, 1]} : vector<8x128xf32> to vector<8x32xf32>
    %861 = vector.extract_strided_slice %857 {offsets = [0, 96], sizes = [8, 32], strides = [1, 1]} : vector<8x128xf32> to vector<8x32xf32>
    %862 = arith.mulf %859, %816 : vector<8x32xf32>
    %863 = arith.mulf %858, %860 : vector<8x32xf32>
    %864 = arith.addf %862, %863 : vector<8x32xf32>
    %865 = math.tanh %864 : vector<8x32xf32>
    %866 = arith.mulf %861, %865 : vector<8x32xf32>
    %867 = vector.shape_cast %847 : vector<8x1xi1> to vector<8x1xi1>
    %868 = vector.broadcast %867 : vector<8x1xi1> to vector<8x32xi1>
    %869 = arith.select %868, %866, %813 : vector<8x32xi1>, vector<8x32xf32>
    %870 = vector.shape_cast %847 : vector<8x1xi1> to vector<8x1xi1>
    %871 = vector.broadcast %870 : vector<8x1xi1> to vector<8x32xi1>
    %872 = arith.select %871, %864, %816 : vector<8x32xi1>, vector<8x32xf32>
    %c8_282 = arith.constant 8 : index
    %c0_283 = arith.constant 0 : index
    %873 = vector.load %arg1[%c8_282, %c0_283] : memref<64x1xf32, #tpu.memory_space<vmem>>, vector<8x1xf32>
    %cst_284 = arith.constant 5.000000e-01 : f32
    %874 = vector.broadcast %cst_284 : f32 to vector<8x1xf32>
    %875 = arith.cmpf ogt, %873, %874 : vector<8x1xf32>
    %c8_285 = arith.constant 8 : index
    %c0_286 = arith.constant 0 : index
    %876 = vector.load %arg18[%c8_285, %c0_286] : memref<64x128xf32, #tpu.memory_space<vmem>>, vector<8x128xf32>
    %cst_287 = arith.constant dense<0.000000e+00> : vector<8x128xf32>
    %877 = tpu.matmul %841, %504, %cst_287 {dimension_numbers = #tpu.dot_dimension_numbers<[1], [0], [0], [1], [0, 0, 1, 1], [], []>} : vector<8x32xf32>, vector<32x128xf32>, vector<8x128xf32> -> vector<8x128xf32>
    %878 = arith.addf %876, %877 : vector<8x128xf32>
    %879 = math.tanh %878 : vector<8x128xf32>
    %880 = arith.negf %878 : vector<8x128xf32>
    %881 = math.exp %880 : vector<8x128xf32>
    %cst_288 = arith.constant 1.000000e+00 : f32
    %882 = vector.broadcast %cst_288 : f32 to vector<8x128xf32>
    %883 = arith.addf %882, %881 : vector<8x128xf32>
    %884 = arith.divf %882, %883 : vector<8x128xf32>
    %885 = arith.select %5, %879, %884 : vector<8x128xi1>, vector<8x128xf32>
    %886 = vector.extract_strided_slice %885 {offsets = [0, 0], sizes = [8, 32], strides = [1, 1]} : vector<8x128xf32> to vector<8x32xf32>
    %887 = vector.extract_strided_slice %885 {offsets = [0, 32], sizes = [8, 32], strides = [1, 1]} : vector<8x128xf32> to vector<8x32xf32>
    %888 = vector.extract_strided_slice %885 {offsets = [0, 64], sizes = [8, 32], strides = [1, 1]} : vector<8x128xf32> to vector<8x32xf32>
    %889 = vector.extract_strided_slice %885 {offsets = [0, 96], sizes = [8, 32], strides = [1, 1]} : vector<8x128xf32> to vector<8x32xf32>
    %890 = arith.mulf %887, %844 : vector<8x32xf32>
    %891 = arith.mulf %886, %888 : vector<8x32xf32>
    %892 = arith.addf %890, %891 : vector<8x32xf32>
    %893 = math.tanh %892 : vector<8x32xf32>
    %894 = arith.mulf %889, %893 : vector<8x32xf32>
    %895 = vector.shape_cast %875 : vector<8x1xi1> to vector<8x1xi1>
    %896 = vector.broadcast %895 : vector<8x1xi1> to vector<8x32xi1>
    %897 = arith.select %896, %894, %841 : vector<8x32xi1>, vector<8x32xf32>
    %898 = vector.shape_cast %875 : vector<8x1xi1> to vector<8x1xi1>
    %899 = vector.broadcast %898 : vector<8x1xi1> to vector<8x32xi1>
    %900 = arith.select %899, %892, %844 : vector<8x32xi1>, vector<8x32xf32>
    %c56_289 = arith.constant 56 : index
    %c0_290 = arith.constant 0 : index
    %901 = vector.load %arg1[%c56_289, %c0_290] : memref<64x1xf32, #tpu.memory_space<vmem>>, vector<8x1xf32>
    %cst_291 = arith.constant 5.000000e-01 : f32
    %902 = vector.broadcast %cst_291 : f32 to vector<8x1xf32>
    %903 = arith.cmpf ogt, %901, %902 : vector<8x1xf32>
    %c56_292 = arith.constant 56 : index
    %c0_293 = arith.constant 0 : index
    %904 = vector.load %arg17[%c56_292, %c0_293] : memref<64x128xf32, #tpu.memory_space<vmem>>, vector<8x128xf32>
    %cst_294 = arith.constant dense<0.000000e+00> : vector<8x128xf32>
    %905 = tpu.matmul %869, %503, %cst_294 {dimension_numbers = #tpu.dot_dimension_numbers<[1], [0], [0], [1], [0, 0, 1, 1], [], []>} : vector<8x32xf32>, vector<32x128xf32>, vector<8x128xf32> -> vector<8x128xf32>
    %906 = arith.addf %904, %905 : vector<8x128xf32>
    %907 = math.tanh %906 : vector<8x128xf32>
    %908 = arith.negf %906 : vector<8x128xf32>
    %909 = math.exp %908 : vector<8x128xf32>
    %cst_295 = arith.constant 1.000000e+00 : f32
    %910 = vector.broadcast %cst_295 : f32 to vector<8x128xf32>
    %911 = arith.addf %910, %909 : vector<8x128xf32>
    %912 = arith.divf %910, %911 : vector<8x128xf32>
    %913 = arith.select %5, %907, %912 : vector<8x128xi1>, vector<8x128xf32>
    %914 = vector.extract_strided_slice %913 {offsets = [0, 0], sizes = [8, 32], strides = [1, 1]} : vector<8x128xf32> to vector<8x32xf32>
    %915 = vector.extract_strided_slice %913 {offsets = [0, 32], sizes = [8, 32], strides = [1, 1]} : vector<8x128xf32> to vector<8x32xf32>
    %916 = vector.extract_strided_slice %913 {offsets = [0, 64], sizes = [8, 32], strides = [1, 1]} : vector<8x128xf32> to vector<8x32xf32>
    %917 = vector.extract_strided_slice %913 {offsets = [0, 96], sizes = [8, 32], strides = [1, 1]} : vector<8x128xf32> to vector<8x32xf32>
    %918 = arith.mulf %915, %872 : vector<8x32xf32>
    %919 = arith.mulf %914, %916 : vector<8x32xf32>
    %920 = arith.addf %918, %919 : vector<8x32xf32>
    %921 = math.tanh %920 : vector<8x32xf32>
    %922 = arith.mulf %917, %921 : vector<8x32xf32>
    %923 = vector.shape_cast %903 : vector<8x1xi1> to vector<8x1xi1>
    %924 = vector.broadcast %923 : vector<8x1xi1> to vector<8x32xi1>
    %925 = arith.select %924, %922, %869 : vector<8x32xi1>, vector<8x32xf32>
    %c0_296 = arith.constant 0 : index
    %c0_297 = arith.constant 0 : index
    %926 = vector.load %arg1[%c0_296, %c0_297] : memref<64x1xf32, #tpu.memory_space<vmem>>, vector<8x1xf32>
    %cst_298 = arith.constant 5.000000e-01 : f32
    %927 = vector.broadcast %cst_298 : f32 to vector<8x1xf32>
    %928 = arith.cmpf ogt, %926, %927 : vector<8x1xf32>
    %c0_299 = arith.constant 0 : index
    %c0_300 = arith.constant 0 : index
    %929 = vector.load %arg18[%c0_299, %c0_300] : memref<64x128xf32, #tpu.memory_space<vmem>>, vector<8x128xf32>
    %cst_301 = arith.constant dense<0.000000e+00> : vector<8x128xf32>
    %930 = tpu.matmul %897, %504, %cst_301 {dimension_numbers = #tpu.dot_dimension_numbers<[1], [0], [0], [1], [0, 0, 1, 1], [], []>} : vector<8x32xf32>, vector<32x128xf32>, vector<8x128xf32> -> vector<8x128xf32>
    %931 = arith.addf %929, %930 : vector<8x128xf32>
    %932 = math.tanh %931 : vector<8x128xf32>
    %933 = arith.negf %931 : vector<8x128xf32>
    %934 = math.exp %933 : vector<8x128xf32>
    %cst_302 = arith.constant 1.000000e+00 : f32
    %935 = vector.broadcast %cst_302 : f32 to vector<8x128xf32>
    %936 = arith.addf %935, %934 : vector<8x128xf32>
    %937 = arith.divf %935, %936 : vector<8x128xf32>
    %938 = arith.select %5, %932, %937 : vector<8x128xi1>, vector<8x128xf32>
    %939 = vector.extract_strided_slice %938 {offsets = [0, 0], sizes = [8, 32], strides = [1, 1]} : vector<8x128xf32> to vector<8x32xf32>
    %940 = vector.extract_strided_slice %938 {offsets = [0, 32], sizes = [8, 32], strides = [1, 1]} : vector<8x128xf32> to vector<8x32xf32>
    %941 = vector.extract_strided_slice %938 {offsets = [0, 64], sizes = [8, 32], strides = [1, 1]} : vector<8x128xf32> to vector<8x32xf32>
    %942 = vector.extract_strided_slice %938 {offsets = [0, 96], sizes = [8, 32], strides = [1, 1]} : vector<8x128xf32> to vector<8x32xf32>
    %943 = arith.mulf %940, %900 : vector<8x32xf32>
    %944 = arith.mulf %939, %941 : vector<8x32xf32>
    %945 = arith.addf %943, %944 : vector<8x32xf32>
    %946 = math.tanh %945 : vector<8x32xf32>
    %947 = arith.mulf %942, %946 : vector<8x32xf32>
    %948 = vector.shape_cast %928 : vector<8x1xi1> to vector<8x1xi1>
    %949 = vector.broadcast %948 : vector<8x1xi1> to vector<8x32xi1>
    %950 = arith.select %949, %947, %897 : vector<8x32xi1>, vector<8x32xf32>
    %c0_303 = arith.constant 0 : index
    %c0_304 = arith.constant 0 : index
    %951 = vector.load %arg14[%c0_303, %c0_304] : memref<64x4xf32, #tpu.memory_space<vmem>>, vector<32x4xf32>
    %cst_305 = arith.constant dense<0.000000e+00> : vector<8x4xf32>
    %952 = tpu.matmul %950, %951, %cst_305 {dimension_numbers = #tpu.dot_dimension_numbers<[1], [0], [0], [1], [0, 0, 1, 1], [], []>} : vector<8x32xf32>, vector<32x4xf32>, vector<8x4xf32> -> vector<8x4xf32>
    %c32_306 = arith.constant 32 : index
    %c0_307 = arith.constant 0 : index
    %953 = vector.load %arg14[%c32_306, %c0_307] : memref<64x4xf32, #tpu.memory_space<vmem>>, vector<32x4xf32>
    %cst_308 = arith.constant dense<0.000000e+00> : vector<8x4xf32>
    %954 = tpu.matmul %925, %953, %cst_308 {dimension_numbers = #tpu.dot_dimension_numbers<[1], [0], [0], [1], [0, 0, 1, 1], [], []>} : vector<8x32xf32>, vector<32x4xf32>, vector<8x4xf32> -> vector<8x4xf32>
    %955 = arith.addf %952, %954 : vector<8x4xf32>
    %c0_309 = arith.constant 0 : index
    %c0_310 = arith.constant 0 : index
    %956 = vector.load %arg15[%c0_309, %c0_310] : memref<1x4xf32, #tpu.memory_space<vmem>>, vector<1x4xf32>
    %957 = vector.broadcast %956 : vector<1x4xf32> to vector<8x4xf32>
    %958 = arith.addf %955, %957 : vector<8x4xf32>
    %c0_311 = arith.constant 0 : index
    %c0_312 = arith.constant 0 : index
    %959 = vector.load %arg16[%c0_311, %c0_312] : memref<8x4xf32, #tpu.memory_space<vmem>>, vector<8x4xf32>
    tpu.vector_store %arg16[%c0_311, %c0_312], %958 {strides = array<i32>} : memref<8x4xf32, #tpu.memory_space<vmem>>, vector<8x4xf32>,
    return
  }
}

</mosaic_0001>

<bundles_post_ra>
// kernel: tpu_custom_call.1
= control target key start
LH: loop header
LB: loop body
LE: loop exit
PB: predicated region body
PF: predicated region fallthrough
CT: control target
= control target key end

     0   :  { %s7572_s0 = inlined_call_operand.vmem [shape: f32[64,16], index: 0, kind: input, shape index: {}]   ;;  %s7573_s1 = inlined_call_operand.vmem [shape: f32[64,1], index: 1, kind: input, shape index: {}]   ;;  %s7574_s2 = inlined_call_operand.hbm [shape: f32[16,128], index: 2, kind: input, shape index: {}]   ;;  %s7575_s3 = inlined_call_operand.vmem [shape: f32[32,128], index: 3, kind: input, shape index: {}]   ;;  %s7576_s4 = inlined_call_operand.vmem [shape: f32[1,128], index: 4, kind: input, shape index: {}]   ;;  %s7577_s5 = inlined_call_operand.hbm [shape: f32[16,128], index: 5, kind: input, shape index: {}]   ;;  %s7578_s6 = inlined_call_operand.vmem [shape: f32[32,128], index: 6, kind: input, shape index: {}]   ;;  %s7579_s7 = inlined_call_operand.vmem [shape: f32[1,128], index: 7, kind: input, shape index: {}]   ;;  %s7580_s8 = inlined_call_operand.vmem [shape: f32[64,128], index: 8, kind: input, shape index: {}]   ;;  %s7581_s9 = inlined_call_operand.vmem [shape: f32[32,128], index: 9, kind: input, shape index: {}]   ;;  %s7582_s10 = inlined_call_operand.hbm [shape: f32[1,128], index: 10, kind: input, shape index: {}]   ;;  %s7583_s11 = inlined_call_operand.vmem [shape: f32[64,128], index: 11, kind: input, shape index: {}]   ;;  %s7584_s12 = inlined_call_operand.vmem [shape: f32[32,128], index: 12, kind: input, shape index: {}]   ;;  %s7585_s13 = inlined_call_operand.hbm [shape: f32[1,128], index: 13, kind: input, shape index: {}]   ;;  %s7586_s14 = inlined_call_operand.vmem [shape: f32[64,4], index: 14, kind: input, shape index: {}]   ;;  %s7587_s15 = inlined_call_operand.vmem [shape: f32[1,4], index: 15, kind: input, shape index: {}]   ;;  %s7588_s16 = inlined_call_operand.vmem [shape: f32[8,4], index: 16, kind: output, shape index: {}]  }
   0x1   :  { %7590 = sst [smem:[#allocation16_spill]] %s7572_s0 }
   0x2   :  { %21 = vsyncpa [#allocation7], 0 }
   0x3   :  { %22 = vsyncpa [#allocation9], 0 }
   0x4   :  { %23 = vsyncpa [#allocation12], 0  ;;  %s6100_s21 = smov [#allocation8]   ;;  %s6101_s23 = smov [#allocation6]  }
   0x5   :  { %s49_s22 = sshll.u32 %s6100_s21, 4  ;;  %s33_s24 = sshll.u32 %s6101_s23, 4  ;;  %s50_s22 = int_to_ptr.vmem [resolvable:$true] %s49_s22  ;;  %s6197_s24 = int_to_ptr.vmem [resolvable:$true] %s33_s24 }
   0x6   :  { %s6006_s27 = scalar_lea.hbm %s7577_s5, 256 }
   0x7   :  { %p6007_p0 = scmp.ne.s32.totalorder %s7577_s5, %s6006_s27  ;;  %p6010_p1 = scmp.lt.u32.totalorder %s6006_s27, %s7577_s5 }
   0x9   :  { %p6012_p2 = pnand %p6010_p1, %p6007_p0 }
   0xb   :  { %6015 = shalt.err (!%p6012_p2)
}
   0xc   :  { %s6016_s17 = scalar_lea.vmem %s50_s22, 256  ;;  %p6021_p4 = scmp.lt.s32.totalorder %s50_s22, %s50_s22 }
   0xd   :  { %p6017_p3 = scmp.ne.s32.totalorder %s50_s22, %s6016_s17  ;;  %p6022_p5 = scmp.lt.s32.totalorder %s6016_s17, %s6016_s17 }
   0xf   :  { %p6023_p6 = por %p6022_p5, %p6021_p4 }
  0x11   :  { %p6024_p7 = pnand %p6023_p6, %p6017_p3 }
  0x13   :  { %6027 = shalt.err (!%p6024_p7)
}
  0x14   :  { %s6102_s18 = smov 128   ;;  %s6103_s19 = smov 8  }
  0x15   :  { %55 = dma.hbm_to_vmem [thread:$0]  %s7577_s5, 256, %s50_s22, [#allocation9], %s6102_s18, %s6102_s18, %s6103_s19  }
  0x16   :  { %s6028_s26 = scalar_lea.hbm %s7574_s2, 256 }
  0x17   :  { %p6029_p8 = scmp.ne.s32.totalorder %s7574_s2, %s6028_s26  ;;  %p6032_p9 = scmp.lt.u32.totalorder %s6028_s26, %s7574_s2 }
  0x19   :  { %p6034_p10 = pnand %p6032_p9, %p6029_p8 }
  0x1b   :  { %6037 = shalt.err (!%p6034_p10)
}
  0x1c   :  { %s6038_s0 = scalar_lea.vmem %s6197_s24, 256  ;;  %p6043_p12 = scmp.lt.s32.totalorder %s6197_s24, %s6197_s24 }
  0x1d   :  { %p6039_p11 = scmp.ne.s32.totalorder %s6197_s24, %s6038_s0  ;;  %p6044_p13 = scmp.lt.s32.totalorder %s6038_s0, %s6038_s0 }
  0x1f   :  { %p6045_p0 = por %p6044_p13, %p6043_p12 }
  0x21   :  { %p6046_p1 = pnand %p6045_p0, %p6039_p11 }
  0x23   :  { %6049 = shalt.err (!%p6046_p1)
}
  0x24   :  { %39 = dma.hbm_to_vmem [thread:$0]  %s7574_s2, 256, %s6197_s24, [#allocation7], %s6102_s18, %s6102_s18, %s6103_s19  }
  0x25   :  { %s6104_s17 = smov [#allocation10]   ;;  %s6105_s21 = smov [#allocation11]  }
  0x26   :  { %s70_s20 = sshll.u32 %s6104_s17, 4  ;;  %s84_s23 = sshll.u32 %s6105_s21, 4  ;;  %s71_s20 = int_to_ptr.vmem [resolvable:$true] %s70_s20  ;;  %s85_s23 = int_to_ptr.vmem [resolvable:$true] %s84_s23 }
  0x27   :  { %s6050_s27 = scalar_lea.hbm %s7582_s10, 16 }
  0x28   :  { %p6051_p2 = scmp.ne.s32.totalorder %s7582_s10, %s6050_s27  ;;  %p6054_p3 = scmp.lt.u32.totalorder %s6050_s27, %s7582_s10 }
  0x2a   :  { %p6056_p4 = pnand %p6054_p3, %p6051_p2 }
  0x2c   :  { %6059 = shalt.err (!%p6056_p4)
}
  0x2d   :  { %s6060_s2 = scalar_lea.vmem %s71_s20, 16  ;;  %s6064_s24 = scalar_lea.vmem %s71_s20, 32 }
  0x2e   :  { %p6061_p5 = scmp.ne.s32.totalorder %s71_s20, %s6060_s2  ;;  %p6065_p6 = scmp.lt.s32.totalorder %s71_s20, %s71_s20 }
  0x2f   :  { %p6066_p7 = scmp.lt.s32.totalorder %s6064_s24, %s6060_s2 }
  0x31   :  { %p6067_p8 = por %p6066_p7, %p6065_p6 }
  0x33   :  { %p6068_p9 = pnand %p6067_p8, %p6061_p5 }
  0x35   :  { %6071 = shalt.err (!%p6068_p9)
}
  0x36   :  { %73 = dma.hbm_to_vmem [thread:$0]  %s7582_s10, 16, %s71_s20, [#allocation9]  }
  0x37   :  { %s6072_s17 = scalar_lea.hbm %s7585_s13, 16 }
  0x38   :  { %p6073_p10 = scmp.ne.s32.totalorder %s7585_s13, %s6072_s17  ;;  %p6076_p11 = scmp.lt.u32.totalorder %s6072_s17, %s7585_s13 }
  0x3a   :  { %p6078_p12 = pnand %p6076_p11, %p6073_p10 }
  0x3c   :  { %6081 = shalt.err (!%p6078_p12)
}
  0x3d   :  { %s6082_s28 = scalar_lea.vmem %s85_s23, 16  ;;  %s6086_s29 = scalar_lea.vmem %s85_s23, 32 }
  0x3e   :  { %p6083_p13 = scmp.ne.s32.totalorder %s85_s23, %s6082_s28  ;;  %p6087_p0 = scmp.lt.s32.totalorder %s85_s23, %s85_s23 }
  0x3f   :  { %p6088_p1 = scmp.lt.s32.totalorder %s6086_s29, %s6082_s28 }
  0x41   :  { %p6089_p2 = por %p6088_p1, %p6087_p0 }
  0x43   :  { %p6090_p3 = pnand %p6089_p2, %p6083_p13 }
  0x45   :  { %6093 = shalt.err (!%p6090_p3)
}
  0x46   :  { %87 = dma.hbm_to_vmem [thread:$0]  %s7585_s13, 16, %s85_s23, [#allocation12]  }
  0x47   :  { %6094 = dma.done.wait [#allocation7], 256  }
  0x48   :  { %6095 = vsyncadd [#allocation7], 4294967040 }
  0x49   :  { %6096 = dma.done.wait [#allocation9], 272  }
  0x4a   :  { %6097 = vsyncadd [#allocation9], 4294967024 }
  0x4b   :  { %6098 = dma.done.wait [#allocation12], 16  }
  0x4c   :  { %6099 = vsyncadd [#allocation12], 4294967280  ;;  %vm126_vm0 = vcmask 130048   ;;  %v264_v0 = vld [vmem:[#allocation8] sm:$0xff]  ;;  %v265_v1 = vld [vmem:[#allocation8 + $0x8] sm:$0xff]  ;;  %s7591_s2 = sld [smem:[#allocation16_spill]] }
  0x4d   :  { %v117_v2 = vld [vmem:[#allocation6] sm:$0xff]  ;;  %v5480_v3 = vpack.c.bf16 %v265_v1, %v264_v0  ;;  %v118_v4 = vld [vmem:[#allocation6 + $0x8] sm:$0xff]  ;;  %v6106_v12 = vmov 0.0|0.0   ;;  %v392_v15 = vld [vmem:[%s7578_s6 + $0x10] sm:$0xff]  ;;  %vm6107_vm1 = vmmov 0   ;;  %v6108_v27 = vmov 0.0  }
  0x4e   :  { %v5476_v6 = vpack.c.bf16 %v118_v4, %v117_v2  ;;  %v390_v7 = vld [vmem:[%s7578_s6] sm:$0xff]  ;;  %v391_v8 = vld [vmem:[%s7578_s6 + $0x8] sm:$0xff]  ;;  %v393_v16 = vld [vmem:[%s7578_s6 + $0x18] sm:$0xff]  ;;  %v6109_v28 = vmov 0   ;;  %s6110_s29 = smov 64   ;;  %s6111_s10 = smov 32  }
  0x4f   :  { %5481 = vmatprep.subr.bf16.mxu1 %v5480_v3  ;;  %v6266_v10 = vpack.c.bf16 %v391_v8, %v390_v7  ;;  %v386_v11 = vld [vmem:[%s7575_s3] sm:$0xff]  ;;  %v387_v13 = vld [vmem:[%s7575_s3 + $0x8] sm:$0xff]  ;;  %v388_v18 = vld [vmem:[%s7575_s3 + $0x10] sm:$0xff]  ;;  %v6304_v22 = vpack.c.bf16 %v393_v16, %v392_v15  ;;  %5748 = vset.pattern.permute.xlu0 %v6109_v28  ;;  %v104_v8 = vlaneseq  ;;  %vm397_vm9 = vcmask 261120  }
  0x50   :  { %5477 = vmatprep.subr.bf16.mxu0 %v5476_v6  ;;  %5483 = vmatpush3.bf16.msra.mxu1 %v5480_v3  ;;  %v6285_v17 = vpack.c.bf16 %v387_v13, %v386_v11  ;;  %v389_v19 = vld [vmem:[%s7575_s3 + $0x18] sm:$0xff]  ;;  %v4646_v29 = vld [vmem:[%s7579_s7] ss:$0 sm:$0xff] }
  0x51   :  { %5479 = vmatpush3.bf16.msra.mxu0 %v5476_v6  ;;  %5490 = vmatprep.subr.bf16.mxu1 %v6106_v12  ;;  %v6308_v23 = vpack.c.bf16 %v389_v19, %v388_v18  ;;  %v4637_v34 = vld [vmem:[%s7576_s4] ss:$0 sm:$0xff] }
  0x52   :  { %v109_v5 = vld [vmem:[%s7591_s2] sm:$0xff]  ;;  %v110_v9 = vld [vmem:[%s7591_s2 + $0x8] sm:$0xff]  ;;  %v111_v14 = vld [vmem:[%s7591_s2 + $0x10] sm:$0xff]  ;;  %5484 = vmatprep.subr.bf16.mxu0 %v6106_v12  ;;  %5749 = vset.pattern.permute.xlu1 %v6109_v28 }
  0x53   :  { %5010 = vmatprep.mubr.msk.f32.mxu1 %vm126_vm0, %v109_v5  ;;  %4994 = vmatprep.mubr.msk.f32.mxu0 %vm126_vm0, %v109_v5  ;;  %v112_v20 = vld [vmem:[%s7591_s2 + $0x18] sm:$0xff]  ;;  %v113_v21 = vld [vmem:[%s7591_s2 + $0x20] sm:$0xff]  ;;  %v114_v24 = vld [vmem:[%s7591_s2 + $0x28] sm:$0xff] }
  0x54   :  { %5011 = vmatmul.mubr.msk.f32.vlgmr.msra.gmra.mrb[0].mxu1 %vm126_vm0, %v110_v9  ;;  %4995 = vmatmul.mubr.msk.f32.vlgmr.msra.gmra.mrb[0].mxu0 %vm126_vm0, %v110_v9  ;;  %v115_v25 = vld [vmem:[%s7591_s2 + $0x30] sm:$0xff]  ;;  %v116_v26 = vld [vmem:[%s7591_s2 + $0x38] sm:$0xff] }
  0x55   :  { %5492 = vmatpush3.bf16.msra.mxu1 %v6266_v10  ;;  %5013 = vmatprep.mubr.msk.f32.mxu1 %vm126_vm0, %v111_v14 }
  0x56   :  { %4997 = vmatprep.mubr.msk.f32.mxu0 %vm126_vm0, %v111_v14  ;;  %5493 = vmatprep.subr.bf16.mxu1 %v6106_v12  ;;  %v105_v14 = vand.u32 127, %v104_v8 }
  0x57   :  { %5486 = vmatpush3.bf16.msra.mxu0 %v6285_v17 }
  0x58   :  { %5014 = vmatmul.mubr.msk.f32.gmra.mrb[2].mxu1 %vm126_vm0, %v112_v20  ;;  %5487 = vmatprep.subr.bf16.mxu0 %v6106_v12  ;;  %vm106_vm2 = vcmp.ge.s32.totalorder %v105_v14, 64  ;;  %vm107_vm3 = vcmp.lt.s32.totalorder %v105_v14, 96 }
  0x59   :  { %4998 = vmatmul.mubr.msk.f32.gmra.mrb[2].mxu0 %vm126_vm0, %v112_v20  ;;  %5016 = vmatprep.mubr.msk.f32.mxu1 %vm126_vm0, %v113_v21  ;;  %vm6388_vm4 = vmand %vm106_vm2, %vm107_vm3 }
  0x5a   :  { %5000 = vmatprep.mubr.msk.f32.mxu0 %vm126_vm0, %v113_v21  ;;  %5495 = vmatpush3.bf16.msra.mxu1 %v6304_v22  ;;  %v504_v21 = vld [vmem:[%s7573_s1 + $0x38] sm:$0xff] }
  0x5b   :  { %5489 = vmatpush3.bf16.msra.mxu0 %v6308_v23  ;;  %5502 = vmatprep.subr.bf16.mxu1 %v6106_v12  ;;  %vm505_vm5 = vcmp.gt.f32.partialorder %v504_v21, 0.5 }
  0x5c   :  { %5017 = vmatmul.mubr.msk.f32.gmra.mrb[4].mxu1 %vm126_vm0, %v114_v24  ;;  %5496 = vmatprep.subr.bf16.mxu0 %v6106_v12 }
  0x5d   :  { %5001 = vmatmul.mubr.msk.f32.gmra.mrb[4].mxu0 %vm126_vm0, %v114_v24  ;;  %5019 = vmatprep.mubr.msk.f32.mxu1 %vm126_vm0, %v115_v25 }
  0x5e   :  { %5003 = vmatprep.mubr.msk.f32.mxu0 %vm126_vm0, %v115_v25 }
  0x60   :  { %5020 = vmatmul.mubr.msk.f32.gmra.mrb[6].mxu1 %vm126_vm0, %v116_v26 }
  0x61   :  { %5004 = vmatmul.mubr.msk.f32.gmra.mrb[6].mxu0 %vm126_vm0, %v116_v26  ;;  %5041 = vmatprep.mubr.msk.f32.mxu1 %vm6107_vm1, %v6108_v27  ;;  %v603_v26 = vsel %vm505_vm5, 1, %v6109_v28 }
  0x62   :  { %5030 = vmatprep.mubr.msk.f32.mxu0 %vm6107_vm1, %v6108_v27 }
  0x64   :  { %5042 = vmatmul.mubr.f32.vlgmr.msra.gmra.mrb[8].mxu1 %v6108_v27 }
  0x65   :  { %5031 = vmatmul.mubr.f32.vlgmr.msra.gmra.mrb[8].mxu0 %v6108_v27  ;;  %5504 = vmatpush3.bf16.msra.mxu1 %v6266_v10 }
  0x66   :  { %5505 = vmatprep.subr.bf16.mxu1 %v6106_v12  ;;  %5063 = vmatprep.mubr.msk.f32.mxu1 %vm6107_vm1, %v6108_v27 }
  0x67   :  { %5498 = vmatpush3.bf16.msra.mxu0 %v6285_v17  ;;  %5052 = vmatprep.mubr.msk.f32.mxu0 %vm6107_vm1, %v6108_v27 }
  0x68   :  { %5499 = vmatprep.subr.bf16.mxu0 %v6106_v12 }
  0x69   :  { %5507 = vmatpush3.bf16.msra.mxu1 %v6304_v22 }
  0x6a   :  { %5514 = vmatprep.subr.bf16.mxu1 %v6106_v12 }
  0x6b   :  { %5501 = vmatpush3.bf16.msra.mxu0 %v6308_v23 }
  0x6c   :  { %5508 = vmatprep.subr.bf16.mxu0 %v6106_v12 }
 0x127   :  { %v5012_v30 = vpop.f32.mrb[0].mxu1  ;;  %v4996_v33 = vpop.f32.mrb[0].mxu0 }
 0x128   :  { %v6357_v31 = vadd.f32 %v5012_v30, %v4646_v29  ;;  %v339_v32 = vpop.f32.mrb[1].mxu1  ;;  %v6364_v36 = vadd.f32 %v4996_v33, %v4637_v34  ;;  %v217_v37 = vpop.f32.mrb[1].mxu0 }
 0x129   :  { %v6362_v35 = vadd.f32 %v4646_v29, %v339_v32  ;;  %v218_v57 = vadd.f32 %v4637_v34, %v217_v37 }
 0x12b   :  { %v5015_v38 = vpop.f32.mrb[2].mxu1 }
 0x12c   :  { %v6366_v39 = vadd.f32 %v5015_v38, %v4646_v29  ;;  %v349_v40 = vpop.f32.mrb[3].mxu1  ;;  %v4999_v41 = vpop.f32.mrb[2].mxu0 }
 0x12d   :  { %v6368_v42 = vadd.f32 %v4646_v29, %v349_v40  ;;  %v6370_v43 = vadd.f32 %v4999_v41, %v4637_v34  ;;  %v227_v44 = vpop.f32.mrb[3].mxu0 }
 0x12e   :  { %v6372_v45 = vadd.f32 %v4637_v34, %v227_v44 }
 0x12f   :  { %v5018_v46 = vpop.f32.mrb[4].mxu1 }
 0x130   :  { %v6374_v47 = vadd.f32 %v5018_v46, %v4646_v29  ;;  %v359_v48 = vpop.f32.mrb[5].mxu1  ;;  %v5002_v49 = vpop.f32.mrb[4].mxu0  ;;  %v394_v46 = vld [vmem:[%s7573_s1] sm:$0xff] }
 0x131   :  { %v6376_v50 = vadd.f32 %v4646_v29, %v359_v48  ;;  %v6378_v51 = vadd.f32 %v5002_v49, %v4637_v34  ;;  %v237_v52 = vpop.f32.mrb[5].mxu0  ;;  %vm395_vm6 = vcmp.gt.f32.partialorder %v394_v46, 0.5 }
 0x132   :  { %v6380_v53 = vadd.f32 %v4637_v34, %v237_v52  ;;  %v6415_v49 = vsel %vm395_vm6, 1, %v6109_v28 }
 0x133   :  { %v5021_v54 = vpop.f32.mrb[6].mxu1 }
 0x134   :  { %v369_v55 = vpop.f32.mrb[7].mxu1  ;;  %v5005_v56 = vpop.f32.mrb[6].mxu0  ;;  %v375_v61 = vadd.f32 %v5021_v54, %v4646_v29 }
 0x135   :  { %v6382_v58 = vadd.f32 %v4646_v29, %v369_v55  ;;  %v6384_v59 = vadd.f32 %v5005_v56, %v4637_v34  ;;  %v247_v60 = vpop.f32.mrb[7].mxu0 }
 0x136   :  { %v6386_v62 = vadd.f32 %v4637_v34, %v247_v60 }
 0x137   :  { %v573_v63 = vpop.f32.mrb[8].mxu1 }
 0x138   :  { %v577_v0 = vadd.f32 %v573_v63, %v375_v61  ;;  %v467_v1 = vpop.f32.mrb[8].mxu0  ;;  %v5043_v2 = vpop.f32.mrb[9].mxu1 }
 0x139   :  { %v471_v3 = vadd.f32 %v467_v1, %v218_v57  ;;  %v5032_v4 = vpop.f32.mrb[9].mxu0 }
 0x13a   :  { %v4656_v5 = vmul.f32 -1.442695, %v577_v0 }
 0x13b   :  { %v4655_v6 = vmul.f32 -1.442695, %v471_v3 }
 0x13c   :  { %5750 = vpow2.f32 %v4656_v5 }
 0x13d   :  { %5752 = vpow2.f32 %v4655_v6 }
 0x13e   :  { %5754 = vtanh.f32 %v577_v0 }
 0x146   :  { %v5751_v7 = vpop.eup %5750 }
 0x147   :  { %v5753_v9 = vpop.eup %5752  ;;  %v582_v11 = vadd.f32 1.0, %v5751_v7 }
 0x148   :  { %v476_v13 = vadd.f32 1.0, %v5753_v9  ;;  %v5755_v16 = vpop.eup %5754 }
 0x149   :  { %5756 = vrcp.f32 %v582_v11 }
 0x14a   :  { %5758 = vtanh.f32 %v471_v3 }
 0x14b   :  { %5760 = vrcp.f32 %v476_v13 }
 0x153   :  { %v5757_v18 = vpop.eup %5756 }
 0x154   :  { %v5759_v19 = vpop.eup %5758  ;;  %v585_v20 = vsel %vm6388_vm4, %v5755_v16, %v5757_v18 }
 0x155   :  { %v5761_v24 = vpop.eup %5760  ;;  %588 = vrot.lane.b32.xlu0 %v585_v20, %s6110_s29  ;;  %v586_v34 = vmul.f32 0.0, %v585_v20 }
 0x156   :  { %v479_v25 = vsel %vm6388_vm4, %v5759_v19, %v5761_v24 }
 0x157   :  { %v480_v40 = vmul.f32 0.0, %v479_v25 }
 0x159   :  { %482 = vrot.lane.b32.xlu0 %v479_v25, %s6110_s29 }
 0x15d   :  { %605 = vperm.xlu0 %5748, %v603_v26  }
 0x1c7   :  { %v589_v29 = vpop.permute.xlu0 %588 }
 0x1c8   :  { %v591_v30 = vmul.f32 %v589_v29, %v585_v20 }
 0x1ca   :  { %593 = vrot.lane.b32.xlu1 %v591_v30, %s6111_s10  ;;  %v620_v30 = vld [vmem:[%s7573_s1 + $0x8] sm:$0xff] }
 0x1cb   :  { %v483_v32 = vpop.permute.xlu0 %482  ;;  %vm621_vm11 = vcmp.gt.f32.partialorder %v620_v30, 0.5 }
 0x1cc   :  { %v485_v33 = vmul.f32 %v483_v32, %v479_v25 }
 0x1ce   :  { %487 = vrot.lane.b32.xlu1 %v485_v33, %s6111_s10  ;;  %v6473_v33 = vsel %vm621_vm11, 1, %v6109_v28 }
 0x1dc   :  { %v6419_v54 = vpop.permute.xlu0 %605 }
 0x1dd   :  { %vm607_vm7 = vcmp.eq.s32.totalorder %v6419_v54, 1 }
 0x23c   :  { %v594_v37 = vpop.permute.xlu1 %593 }
 0x23d   :  { %v6404_v38 = vadd.f32 %v594_v37, %v586_v34 }
 0x23f   :  { %5762 = vtanh.f32 %v6404_v38 }
 0x240   :  { %v488_v41 = vpop.permute.xlu1 %487 }
 0x241   :  { %v6407_v44 = vadd.f32 %v488_v41, %v480_v40  ;;  %v6480_v40 = vsel %vm607_vm7, %v6404_v38, 0.0 }
 0x243   :  { %5764 = vtanh.f32 %v6407_v44 }
 0x249   :  { %v5763_v48 = vpop.eup %5762 }
 0x24a   :  { %599 = vrot.lane.b32.xlu1 %v5763_v48, %s6110_s29 }
 0x24d   :  { %v5765_v52 = vpop.eup %5764 }
 0x24e   :  { %499 = vperm.xlu1 %5749, %v6415_v49   ;;  %493 = vrot.lane.b32.xlu0 %v5765_v52, %s6110_s29 }
 0x2bc   :  { %v600_v55 = vpop.permute.xlu1 %599 }
 0x2bd   :  { %v602_v56 = vmul.f32 %v600_v55, %v585_v20 }
 0x2bf   :  { %v6424_v57 = vsel %vm607_vm7, %v602_v56, 0.0 }
 0x2c0   :  { %616 = vrot.lane.b32.xlu1 %v6424_v57, %s6111_s10  ;;  %v494_v60 = vpop.permute.xlu0 %493 }
 0x2c1   :  { %v496_v61 = vmul.f32 %v494_v60, %v479_v25  ;;  %v728_v25 = vld [vmem:[%s7573_s1 + $0x30] sm:$0xff] }
 0x2c2   :  { %vm729_vm10 = vcmp.gt.f32.partialorder %v728_v25, 0.5 }
 0x2c3   :  { %v6469_v32 = vsel %vm729_vm10, 1, %v6109_v28 }
 0x2cd   :  { %v6428_v63 = vpop.permute.xlu1 %499 }
 0x2ce   :  { %vm501_vm8 = vcmp.eq.s32.totalorder %v6428_v63, 1 }
 0x2cf   :  { %v6433_v0 = vsel %vm501_vm8, %v496_v61, 0.0  ;;  %v6489_v55 = vsel %vm501_vm8, %v6407_v44, 0.0 }
 0x2d0   :  { %611 = vrot.lane.b32.xlu0 %v6433_v0, %s6111_s10 }
 0x332   :  { %v617_v1 = vpop.permute.xlu1 %616 }
 0x333   :  { %619 = vst.msk [vmem:[#allocation5 + $0x38] sm:$0xff] %vm397_vm9, %v617_v1  ;;  %5064 = vmatmul.mubr.msk.f32.vlgmr.msra.gmra.mrb[10].mxu1 %vm397_vm9, %v617_v1 }
 0x334   :  { %5516 = vmatpush3.bf16.msra.mxu1 %v6266_v10  ;;  %5085 = vmatprep.mubr.msk.f32.mxu1 %vm6107_vm1, %v6108_v27 }
 0x335   :  { %5517 = vmatprep.subr.bf16.mxu1 %v6106_v12 }
 0x338   :  { %5519 = vmatpush3.bf16.msra.mxu1 %v6304_v22 }
 0x339   :  { %5526 = vmatprep.subr.bf16.mxu1 %v6106_v12 }
 0x342   :  { %v612_v2 = vpop.permute.xlu0 %611 }
 0x343   :  { %614 = vst.msk [vmem:[#allocation4] sm:$0xff] %vm397_vm9, %v612_v2  ;;  %5053 = vmatmul.mubr.msk.f32.vlgmr.msra.gmra.mrb[10].mxu0 %vm397_vm9, %v612_v2 }
 0x344   :  { %5510 = vmatpush3.bf16.msra.mxu0 %v6285_v17  ;;  %5074 = vmatprep.mubr.msk.f32.mxu0 %vm6107_vm1, %v6108_v27 }
 0x345   :  { %5511 = vmatprep.subr.bf16.mxu0 %v6106_v12 }
 0x348   :  { %5513 = vmatpush3.bf16.msra.mxu0 %v6308_v23 }
 0x349   :  { %5520 = vmatprep.subr.bf16.mxu0 %v6106_v12 }
 0x406   :  { %v799_v3 = vpop.f32.mrb[10].mxu1 }
 0x407   :  { %v803_v4 = vadd.f32 %v799_v3, %v6382_v58  ;;  %v5065_v5 = vpop.f32.mrb[11].mxu1 }
 0x409   :  { %v4660_v6 = vmul.f32 -1.442695, %v803_v4 }
 0x40b   :  { %5766 = vpow2.f32 %v4660_v6 }
 0x40c   :  { %5768 = vtanh.f32 %v803_v4 }
 0x415   :  { %v5767_v7 = vpop.eup %5766 }
 0x416   :  { %v808_v8 = vadd.f32 1.0, %v5767_v7  ;;  %v691_v9 = vpop.f32.mrb[10].mxu0  ;;  %v5769_v16 = vpop.eup %5768 }
 0x417   :  { %v695_v11 = vadd.f32 %v691_v9, %v6364_v36  ;;  %v5054_v13 = vpop.f32.mrb[11].mxu0 }
 0x418   :  { %5770 = vrcp.f32 %v808_v8 }
 0x419   :  { %v4658_v14 = vmul.f32 -1.442695, %v695_v11 }
 0x41b   :  { %5772 = vpow2.f32 %v4658_v14 }
 0x41c   :  { %5774 = vtanh.f32 %v695_v11 }
 0x422   :  { %v5771_v18 = vpop.eup %5770 }
 0x423   :  { %v811_v19 = vsel %vm6388_vm4, %v5769_v16, %v5771_v18 }
 0x424   :  { %814 = vrot.lane.b32.xlu1 %v811_v19, %s6110_s29  ;;  %v812_v41 = vmul.f32 %v811_v19, %v6480_v40 }
 0x425   :  { %v5773_v58 = vpop.eup %5772 }
 0x426   :  { %v700_v20 = vadd.f32 1.0, %v5773_v58  ;;  %v5775_v21 = vpop.eup %5774 }
 0x428   :  { %5776 = vrcp.f32 %v700_v20 }
 0x432   :  { %v5777_v24 = vpop.eup %5776 }
 0x433   :  { %v703_v36 = vsel %vm6388_vm4, %v5775_v21, %v5777_v24 }
 0x434   :  { %706 = vrot.lane.b32.xlu0 %v703_v36, %s6110_s29  ;;  %v704_v56 = vmul.f32 %v703_v36, %v6489_v55 }
 0x496   :  { %v815_v26 = vpop.permute.xlu1 %814 }
 0x497   :  { %v817_v29 = vmul.f32 %v815_v26, %v811_v19  ;;  %v954_v26 = vld [vmem:[%s7573_s1 + $0x28] sm:$0xff] }
 0x498   :  { %vm955_vm14 = vcmp.gt.f32.partialorder %v954_v26, 0.5 }
 0x499   :  { %819 = vrot.lane.b32.xlu1 %v817_v29, %s6111_s10 }
 0x49d   :  { %831 = vperm.xlu1 %5749, %v6469_v32  }
 0x4a1   :  { %723 = vperm.xlu1 %5749, %v6473_v33  }
 0x4a6   :  { %v707_v34 = vpop.permute.xlu0 %706 }
 0x4a7   :  { %v709_v37 = vmul.f32 %v707_v34, %v703_v36  ;;  %v846_v34 = vld [vmem:[%s7573_s1 + $0x10] sm:$0xff] }
 0x4a8   :  { %vm847_vm15 = vcmp.gt.f32.partialorder %v846_v34, 0.5 }
 0x4a9   :  { %711 = vrot.lane.b32.xlu0 %v709_v37, %s6111_s10  ;;  %v6549_v37 = vsel %vm955_vm14, 1, %v6109_v28 }
 0x50b   :  { %v820_v46 = vpop.permute.xlu1 %819 }
 0x50c   :  { %v6483_v48 = vadd.f32 %v820_v46, %v812_v41  ;;  %v6553_v41 = vsel %vm847_vm15, 1, %v6109_v28 }
 0x50e   :  { %5778 = vtanh.f32 %v6483_v48 }
 0x518   :  { %v5779_v52 = vpop.eup %5778 }
 0x519   :  { %825 = vrot.lane.b32.xlu0 %v5779_v52, %s6110_s29 }
 0x51b   :  { %v712_v54 = vpop.permute.xlu0 %711 }
 0x51c   :  { %v6493_v38 = vadd.f32 %v712_v54, %v704_v56  ;;  %v6497_v61 = vpop.permute.xlu1 %831 }
 0x51d   :  { %vm833_vm12 = vcmp.eq.s32.totalorder %v6497_v61, 1 }
 0x51e   :  { %5780 = vtanh.f32 %v6493_v38  ;;  %v6561_v56 = vsel %vm833_vm12, %v6483_v48, %v6480_v40 }
 0x520   :  { %v6507_v63 = vpop.permute.xlu1 %723 }
 0x521   :  { %vm725_vm13 = vcmp.eq.s32.totalorder %v6507_v63, 1 }
 0x528   :  { %v5781_v60 = vpop.eup %5780 }
 0x529   :  { %717 = vrot.lane.b32.xlu0 %v5781_v60, %s6110_s29 }
 0x58b   :  { %v826_v1 = vpop.permute.xlu0 %825 }
 0x58c   :  { %v828_v2 = vmul.f32 %v826_v1, %v811_v19 }
 0x58e   :  { %v6503_v44 = vsel %vm833_vm12, %v828_v2, %v6424_v57 }
 0x58f   :  { %842 = vrot.lane.b32.xlu1 %v6503_v44, %s6111_s10 }
 0x59b   :  { %v718_v3 = vpop.permute.xlu0 %717 }
 0x59c   :  { %v720_v4 = vmul.f32 %v718_v3, %v703_v36  ;;  %v6571_v3 = vsel %vm725_vm13, %v6493_v38, %v6489_v55 }
 0x59e   :  { %v6513_v5 = vsel %vm725_vm13, %v720_v4, %v6433_v0 }
 0x59f   :  { %837 = vrot.lane.b32.xlu0 %v6513_v5, %s6111_s10 }
 0x601   :  { %v843_v6 = vpop.permute.xlu1 %842 }
 0x602   :  { %845 = vst.msk [vmem:[#allocation5 + $0x30] sm:$0xff] %vm397_vm9, %v843_v6  ;;  %5086 = vmatmul.mubr.msk.f32.vlgmr.msra.gmra.mrb[12].mxu1 %vm397_vm9, %v843_v6 }
 0x603   :  { %5528 = vmatpush3.bf16.msra.mxu1 %v6266_v10  ;;  %5107 = vmatprep.mubr.msk.f32.mxu1 %vm6107_vm1, %v6108_v27 }
 0x604   :  { %5529 = vmatprep.subr.bf16.mxu1 %v6106_v12 }
 0x607   :  { %5531 = vmatpush3.bf16.msra.mxu1 %v6304_v22 }
 0x608   :  { %5538 = vmatprep.subr.bf16.mxu1 %v6106_v12 }
 0x611   :  { %v838_v57 = vpop.permute.xlu0 %837 }
 0x612   :  { %840 = vst.msk [vmem:[#allocation4 + $0x8] sm:$0xff] %vm397_vm9, %v838_v57  ;;  %5075 = vmatmul.mubr.msk.f32.vlgmr.msra.gmra.mrb[12].mxu0 %vm397_vm9, %v838_v57 }
 0x613   :  { %5522 = vmatpush3.bf16.msra.mxu0 %v6285_v17  ;;  %5096 = vmatprep.mubr.msk.f32.mxu0 %vm6107_vm1, %v6108_v27 }
 0x614   :  { %5523 = vmatprep.subr.bf16.mxu0 %v6106_v12 }
 0x617   :  { %5525 = vmatpush3.bf16.msra.mxu0 %v6308_v23 }
 0x618   :  { %5532 = vmatprep.subr.bf16.mxu0 %v6106_v12 }
 0x6d5   :  { %v1025_v0 = vpop.f32.mrb[12].mxu1 }
 0x6d6   :  { %v1029_v7 = vadd.f32 %v1025_v0, %v6374_v47  ;;  %v5087_v8 = vpop.f32.mrb[13].mxu1 }
 0x6d8   :  { %v4664_v9 = vmul.f32 -1.442695, %v1029_v7 }
 0x6da   :  { %5782 = vpow2.f32 %v4664_v9 }
 0x6db   :  { %5784 = vtanh.f32 %v1029_v7 }
 0x6e4   :  { %v5783_v11 = vpop.eup %5782 }
 0x6e5   :  { %v1034_v13 = vadd.f32 1.0, %v5783_v11  ;;  %v917_v14 = vpop.f32.mrb[12].mxu0  ;;  %v5785_v58 = vpop.eup %5784 }
 0x6e6   :  { %v921_v16 = vadd.f32 %v917_v14, %v6372_v45  ;;  %v5076_v18 = vpop.f32.mrb[13].mxu0 }
 0x6e7   :  { %5786 = vrcp.f32 %v1034_v13 }
 0x6e8   :  { %v4662_v19 = vmul.f32 -1.442695, %v921_v16 }
 0x6ea   :  { %5788 = vpow2.f32 %v4662_v19 }
 0x6eb   :  { %5790 = vtanh.f32 %v921_v16 }
 0x6f1   :  { %v5787_v20 = vpop.eup %5786 }
 0x6f2   :  { %v1037_v21 = vsel %vm6388_vm4, %v5785_v58, %v5787_v20 }
 0x6f3   :  { %1040 = vrot.lane.b32.xlu1 %v1037_v21, %s6110_s29  ;;  %v1038_v54 = vmul.f32 %v1037_v21, %v6561_v56 }
 0x6f4   :  { %v5789_v47 = vpop.eup %5788 }
 0x6f5   :  { %v926_v24 = vadd.f32 1.0, %v5789_v47  ;;  %v5791_v36 = vpop.eup %5790 }
 0x6f7   :  { %5792 = vrcp.f32 %v926_v24 }
 0x701   :  { %v5793_v25 = vpop.eup %5792 }
 0x702   :  { %v929_v45 = vsel %vm6388_vm4, %v5791_v36, %v5793_v25 }
 0x703   :  { %932 = vrot.lane.b32.xlu0 %v929_v45, %s6110_s29  ;;  %v930_v61 = vmul.f32 %v929_v45, %v6571_v3 }
 0x765   :  { %v1041_v29 = vpop.permute.xlu1 %1040 }
 0x766   :  { %v1043_v30 = vmul.f32 %v1041_v29, %v1037_v21  ;;  %v1180_v29 = vld [vmem:[%s7573_s1 + $0x20] sm:$0xff] }
 0x767   :  { %vm1181_vm3 = vcmp.gt.f32.partialorder %v1180_v29, 0.5 }
 0x768   :  { %1045 = vrot.lane.b32.xlu1 %v1043_v30, %s6111_s10 }
 0x76c   :  { %1057 = vperm.xlu1 %5749, %v6549_v37  }
 0x770   :  { %949 = vperm.xlu1 %5749, %v6553_v41  }
 0x775   :  { %v933_v46 = vpop.permute.xlu0 %932 }
 0x776   :  { %v935_v52 = vmul.f32 %v933_v46, %v929_v45  ;;  %v1072_v46 = vld [vmem:[%s7573_s1 + $0x18] sm:$0xff] }
 0x777   :  { %vm1073_vm5 = vcmp.gt.f32.partialorder %v1072_v46, 0.5 }
 0x778   :  { %937 = vrot.lane.b32.xlu0 %v935_v52, %s6111_s10  ;;  %v6631_v52 = vsel %vm1181_vm3, 1, %v6109_v28 }
 0x7da   :  { %v1046_v60 = vpop.permute.xlu1 %1045 }
 0x7db   :  { %v6564_v1 = vadd.f32 %v1046_v60, %v1038_v54  ;;  %v6635_v54 = vsel %vm1073_vm5, 1, %v6109_v28 }
 0x7dd   :  { %5794 = vtanh.f32 %v6564_v1 }
 0x7e7   :  { %v5795_v2 = vpop.eup %5794 }
 0x7e8   :  { %1051 = vrot.lane.b32.xlu0 %v5795_v2, %s6110_s29 }
 0x7ea   :  { %v938_v40 = vpop.permute.xlu0 %937 }
 0x7eb   :  { %v6575_v48 = vadd.f32 %v938_v40, %v930_v61  ;;  %v6579_v6 = vpop.permute.xlu1 %1057 }
 0x7ec   :  { %vm1059_vm0 = vcmp.eq.s32.totalorder %v6579_v6, 1 }
 0x7ed   :  { %5796 = vtanh.f32 %v6575_v48  ;;  %v6643_v61 = vsel %vm1059_vm0, %v6564_v1, %v6561_v56 }
 0x7ef   :  { %v6589_v38 = vpop.permute.xlu1 %949 }
 0x7f0   :  { %vm951_vm2 = vcmp.eq.s32.totalorder %v6589_v38, 1 }
 0x7f7   :  { %v5797_v4 = vpop.eup %5796 }
 0x7f8   :  { %943 = vrot.lane.b32.xlu0 %v5797_v4, %s6110_s29 }
 0x85a   :  { %v1052_v57 = vpop.permute.xlu0 %1051 }
 0x85b   :  { %v1054_v0 = vmul.f32 %v1052_v57, %v1037_v21 }
 0x85d   :  { %v6585_v55 = vsel %vm1059_vm0, %v1054_v0, %v6503_v44 }
 0x85e   :  { %1068 = vrot.lane.b32.xlu1 %v6585_v55, %s6111_s10 }
 0x86a   :  { %v944_v63 = vpop.permute.xlu0 %943 }
 0x86b   :  { %v946_v7 = vmul.f32 %v944_v63, %v929_v45  ;;  %v6653_v63 = vsel %vm951_vm2, %v6575_v48, %v6571_v3 }
 0x86d   :  { %v6595_v8 = vsel %vm951_vm2, %v946_v7, %v6513_v5 }
 0x86e   :  { %1063 = vrot.lane.b32.xlu0 %v6595_v8, %s6111_s10 }
 0x8d0   :  { %v1069_v9 = vpop.permute.xlu1 %1068 }
 0x8d1   :  { %1071 = vst.msk [vmem:[#allocation5 + $0x28] sm:$0xff] %vm397_vm9, %v1069_v9  ;;  %5108 = vmatmul.mubr.msk.f32.vlgmr.msra.gmra.mrb[14].mxu1 %vm397_vm9, %v1069_v9 }
 0x8d2   :  { %5540 = vmatpush3.bf16.msra.mxu1 %v6266_v10  ;;  %5129 = vmatprep.mubr.msk.f32.mxu1 %vm6107_vm1, %v6108_v27 }
 0x8d3   :  { %5541 = vmatprep.subr.bf16.mxu1 %v6106_v12 }
 0x8d6   :  { %5543 = vmatpush3.bf16.msra.mxu1 %v6304_v22 }
 0x8d7   :  { %5550 = vmatprep.subr.bf16.mxu1 %v6106_v12 }
 0x8e0   :  { %v1064_v44 = vpop.permute.xlu0 %1063 }
 0x8e1   :  { %1066 = vst.msk [vmem:[#allocation4 + $0x10] sm:$0xff] %vm397_vm9, %v1064_v44  ;;  %5097 = vmatmul.mubr.msk.f32.vlgmr.msra.gmra.mrb[14].mxu0 %vm397_vm9, %v1064_v44 }
 0x8e2   :  { %5534 = vmatpush3.bf16.msra.mxu0 %v6285_v17  ;;  %5118 = vmatprep.mubr.msk.f32.mxu0 %vm6107_vm1, %v6108_v27 }
 0x8e3   :  { %5535 = vmatprep.subr.bf16.mxu0 %v6106_v12 }
 0x8e6   :  { %5537 = vmatpush3.bf16.msra.mxu0 %v6308_v23 }
 0x8e7   :  { %5544 = vmatprep.subr.bf16.mxu0 %v6106_v12 }
 0x9a4   :  { %v1251_v5 = vpop.f32.mrb[14].mxu1 }
 0x9a5   :  { %v1255_v11 = vadd.f32 %v1251_v5, %v6376_v50  ;;  %v5109_v13 = vpop.f32.mrb[15].mxu1 }
 0x9a7   :  { %v4668_v14 = vmul.f32 -1.442695, %v1255_v11 }
 0x9a9   :  { %5798 = vpow2.f32 %v4668_v14 }
 0x9aa   :  { %5800 = vtanh.f32 %v1255_v11 }
 0x9b3   :  { %v5799_v16 = vpop.eup %5798 }
 0x9b4   :  { %v1260_v18 = vadd.f32 1.0, %v5799_v16  ;;  %v1143_v19 = vpop.f32.mrb[14].mxu0  ;;  %v5801_v47 = vpop.eup %5800 }
 0x9b5   :  { %v1147_v58 = vadd.f32 %v1143_v19, %v6370_v43  ;;  %v5098_v20 = vpop.f32.mrb[15].mxu0 }
 0x9b6   :  { %5802 = vrcp.f32 %v1260_v18 }
 0x9b7   :  { %v4666_v21 = vmul.f32 -1.442695, %v1147_v58 }
 0x9b9   :  { %5804 = vpow2.f32 %v4666_v21 }
 0x9ba   :  { %5806 = vtanh.f32 %v1147_v58 }
 0x9c0   :  { %v5803_v24 = vpop.eup %5802 }
 0x9c1   :  { %v1263_v36 = vsel %vm6388_vm4, %v5801_v47, %v5803_v24 }
 0x9c2   :  { %1266 = vrot.lane.b32.xlu1 %v1263_v36, %s6110_s29  ;;  %v1264_v40 = vmul.f32 %v1263_v36, %v6643_v61 }
 0x9c3   :  { %v5805_v50 = vpop.eup %5804 }
 0x9c4   :  { %v1152_v25 = vadd.f32 1.0, %v5805_v50  ;;  %v5807_v45 = vpop.eup %5806 }
 0x9c6   :  { %5808 = vrcp.f32 %v1152_v25 }
 0x9d0   :  { %v5809_v26 = vpop.eup %5808 }
 0x9d1   :  { %v1155_v43 = vsel %vm6388_vm4, %v5807_v45, %v5809_v26 }
 0x9d2   :  { %1158 = vrot.lane.b32.xlu0 %v1155_v43, %s6110_s29  ;;  %v1156_v6 = vmul.f32 %v1155_v43, %v6653_v63 }
 0xa34   :  { %v1267_v30 = vpop.permute.xlu1 %1266 }
 0xa35   :  { %v1269_v34 = vmul.f32 %v1267_v30, %v1263_v36 }
 0xa37   :  { %1271 = vrot.lane.b32.xlu1 %v1269_v34, %s6111_s10 }
 0xa3b   :  { %1283 = vperm.xlu1 %5749, %v6631_v52  }
 0xa3f   :  { %1175 = vperm.xlu1 %5749, %v6635_v54  }
 0xa44   :  { %v1159_v60 = vpop.permute.xlu0 %1158 }
 0xa45   :  { %v1161_v2 = vmul.f32 %v1159_v60, %v1155_v43 }
 0xa47   :  { %1163 = vrot.lane.b32.xlu0 %v1161_v2, %s6111_s10 }
 0xaa9   :  { %v1272_v4 = vpop.permute.xlu1 %1271 }
 0xaaa   :  { %v6646_v57 = vadd.f32 %v1272_v4, %v1264_v40 }
 0xaac   :  { %5810 = vtanh.f32 %v6646_v57 }
 0xab6   :  { %v5811_v0 = vpop.eup %5810 }
 0xab7   :  { %1277 = vrot.lane.b32.xlu0 %v5811_v0, %s6110_s29 }
 0xab9   :  { %v1164_v56 = vpop.permute.xlu0 %1163 }
 0xaba   :  { %v6657_v1 = vadd.f32 %v1164_v56, %v1156_v6  ;;  %v6661_v9 = vpop.permute.xlu1 %1283 }
 0xabb   :  { %vm1285_vm6 = vcmp.eq.s32.totalorder %v6661_v9, 1 }
 0xabc   :  { %5812 = vtanh.f32 %v6657_v1  ;;  %v6713_v2 = vsel %vm1285_vm6, %v6646_v57, %v6643_v61 }
 0xabe   :  { %v6671_v48 = vpop.permute.xlu1 %1175 }
 0xabf   :  { %vm1177_vm7 = vcmp.eq.s32.totalorder %v6671_v48, 1 }
 0xac6   :  { %v5813_v7 = vpop.eup %5812 }
 0xac7   :  { %1169 = vrot.lane.b32.xlu0 %v5813_v7, %s6110_s29 }
 0xb29   :  { %v1278_v44 = vpop.permute.xlu0 %1277 }
 0xb2a   :  { %v1280_v5 = vmul.f32 %v1278_v44, %v1263_v36 }
 0xb2c   :  { %v6667_v3 = vsel %vm1285_vm6, %v1280_v5, %v6585_v55 }
 0xb2d   :  { %1294 = vrot.lane.b32.xlu1 %v6667_v3, %s6111_s10 }
 0xb39   :  { %v1170_v38 = vpop.permute.xlu0 %1169 }
 0xb3a   :  { %v1172_v11 = vmul.f32 %v1170_v38, %v1155_v43 }
 0xb3c   :  { %v6677_v13 = vsel %vm1177_vm7, %v1172_v11, %v6595_v8 }
 0xb3d   :  { %1289 = vrot.lane.b32.xlu0 %v6677_v13, %s6111_s10 }
 0xb9f   :  { %v1295_v14 = vpop.permute.xlu1 %1294 }
 0xba0   :  { %1297 = vst.msk [vmem:[#allocation5 + $0x20] sm:$0xff] %vm397_vm9, %v1295_v14  ;;  %5130 = vmatmul.mubr.msk.f32.vlgmr.msra.gmra.mrb[16].mxu1 %vm397_vm9, %v1295_v14 }
 0xba1   :  { %5552 = vmatpush3.bf16.msra.mxu1 %v6266_v10  ;;  %5151 = vmatprep.mubr.msk.f32.mxu1 %vm6107_vm1, %v6108_v27 }
 0xba2   :  { %5553 = vmatprep.subr.bf16.mxu1 %v6106_v12 }
 0xba5   :  { %5555 = vmatpush3.bf16.msra.mxu1 %v6304_v22 }
 0xba6   :  { %5562 = vmatprep.subr.bf16.mxu1 %v6106_v12 }
 0xbaf   :  { %v1290_v55 = vpop.permute.xlu0 %1289 }
 0xbb0   :  { %1292 = vst.msk [vmem:[#allocation4 + $0x18] sm:$0xff] %vm397_vm9, %v1290_v55  ;;  %5119 = vmatmul.mubr.msk.f32.vlgmr.msra.gmra.mrb[16].mxu0 %vm397_vm9, %v1290_v55 }
 0xbb1   :  { %5546 = vmatpush3.bf16.msra.mxu0 %v6285_v17  ;;  %5140 = vmatprep.mubr.msk.f32.mxu0 %vm6107_vm1, %v6108_v27 }
 0xbb2   :  { %5547 = vmatprep.subr.bf16.mxu0 %v6106_v12 }
 0xbb5   :  { %5549 = vmatpush3.bf16.msra.mxu0 %v6308_v23 }
 0xbb6   :  { %5556 = vmatprep.subr.bf16.mxu0 %v6106_v12 }
 0xc73   :  { %v1477_v8 = vpop.f32.mrb[16].mxu1 }
 0xc74   :  { %v1481_v16 = vadd.f32 %v1477_v8, %v6366_v39  ;;  %v5131_v18 = vpop.f32.mrb[17].mxu1 }
 0xc76   :  { %v4672_v19 = vmul.f32 -1.442695, %v1481_v16 }
 0xc78   :  { %5814 = vpow2.f32 %v4672_v19 }
 0xc79   :  { %5816 = vtanh.f32 %v1481_v16 }
 0xc82   :  { %v5815_v58 = vpop.eup %5814 }
 0xc83   :  { %v1486_v20 = vadd.f32 1.0, %v5815_v58  ;;  %v1369_v21 = vpop.f32.mrb[16].mxu0  ;;  %v5817_v50 = vpop.eup %5816 }
 0xc84   :  { %v1373_v47 = vadd.f32 %v1369_v21, %v6380_v53  ;;  %v5120_v24 = vpop.f32.mrb[17].mxu0 }
 0xc85   :  { %5818 = vrcp.f32 %v1486_v20 }
 0xc86   :  { %v4670_v36 = vmul.f32 -1.442695, %v1373_v47 }
 0xc88   :  { %5820 = vpow2.f32 %v4670_v36 }
 0xc89   :  { %5822 = vtanh.f32 %v1373_v47 }
 0xc8f   :  { %v5819_v25 = vpop.eup %5818 }
 0xc90   :  { %v1489_v45 = vsel %vm6388_vm4, %v5817_v50, %v5819_v25 }
 0xc91   :  { %1492 = vrot.lane.b32.xlu1 %v1489_v45, %s6110_s29  ;;  %v1490_v40 = vmul.f32 %v1489_v45, %v6713_v2 }
 0xc92   :  { %v5821_v39 = vpop.eup %5820 }
 0xc93   :  { %v1378_v26 = vadd.f32 1.0, %v5821_v39  ;;  %v5823_v43 = vpop.eup %5822 }
 0xc95   :  { %5824 = vrcp.f32 %v1378_v26 }
 0xc9f   :  { %v5825_v29 = vpop.eup %5824 }
 0xca0   :  { %v1381_v53 = vsel %vm6388_vm4, %v5823_v43, %v5825_v29 }
 0xca1   :  { %1384 = vrot.lane.b32.xlu0 %v1381_v53, %s6110_s29 }
 0xd03   :  { %v1493_v30 = vpop.permute.xlu1 %1492 }
 0xd04   :  { %v1495_v34 = vmul.f32 %v1493_v30, %v1489_v45 }
 0xd06   :  { %1497 = vrot.lane.b32.xlu1 %v1495_v34, %s6111_s10 }
 0xd0a   :  { %1509 = vperm.xlu1 %5749, %v6635_v54  }
 0xd0e   :  { %1401 = vperm.xlu1 %5749, %v6631_v52   ;;  %v6723_v52 = vsel %vm1177_vm7, %v6657_v1, %v6653_v63 }
 0xd0f   :  { %v1382_v6 = vmul.f32 %v1381_v53, %v6723_v52 }
 0xd13   :  { %v1385_v46 = vpop.permute.xlu0 %1384 }
 0xd14   :  { %v1387_v60 = vmul.f32 %v1385_v46, %v1381_v53 }
 0xd16   :  { %1389 = vrot.lane.b32.xlu0 %v1387_v60, %s6111_s10 }
 0xd78   :  { %v1498_v4 = vpop.permute.xlu1 %1497 }
 0xd79   :  { %v6716_v0 = vadd.f32 %v1498_v4, %v1490_v40 }
 0xd7b   :  { %5826 = vtanh.f32 %v6716_v0 }
 0xd85   :  { %v5827_v54 = vpop.eup %5826 }
 0xd86   :  { %1503 = vrot.lane.b32.xlu0 %v5827_v54, %s6110_s29 }
 0xd88   :  { %v1390_v61 = vpop.permute.xlu0 %1389 }
 0xd89   :  { %v6727_v57 = vadd.f32 %v1390_v61, %v1382_v6  ;;  %v6731_v7 = vpop.permute.xlu1 %1509 }
 0xd8a   :  { %vm1511_vm8 = vcmp.eq.s32.totalorder %v6731_v7, 1 }
 0xd8b   :  { %5828 = vtanh.f32 %v6727_v57 }
 0xd8d   :  { %v6741_v1 = vpop.permute.xlu1 %1401 }
 0xd8e   :  { %vm1403_vm10 = vcmp.eq.s32.totalorder %v6741_v1, 1 }
 0xd95   :  { %v5829_v56 = vpop.eup %5828 }
 0xd96   :  { %1395 = vrot.lane.b32.xlu0 %v5829_v56, %s6110_s29 }
 0xdf8   :  { %v1504_v9 = vpop.permute.xlu0 %1503 }
 0xdf9   :  { %v1506_v44 = vmul.f32 %v1504_v9, %v1489_v45 }
 0xdfb   :  { %v6737_v63 = vsel %vm1511_vm8, %v1506_v44, %v6667_v3 }
 0xdfc   :  { %1520 = vrot.lane.b32.xlu1 %v6737_v63, %s6111_s10 }
 0xe08   :  { %v1396_v5 = vpop.permute.xlu0 %1395 }
 0xe09   :  { %v1398_v48 = vmul.f32 %v1396_v5, %v1381_v53  ;;  %v6783_v53 = vsel %vm1511_vm8, %v6716_v0, %v6713_v2 }
 0xe0b   :  { %v6747_v38 = vsel %vm1403_vm10, %v1398_v48, %v6677_v13 }
 0xe0c   :  { %1515 = vrot.lane.b32.xlu0 %v6747_v38, %s6111_s10 }
 0xe6e   :  { %v1521_v11 = vpop.permute.xlu1 %1520 }
 0xe6f   :  { %1523 = vst.msk [vmem:[#allocation5 + $0x18] sm:$0xff] %vm397_vm9, %v1521_v11  ;;  %5152 = vmatmul.mubr.msk.f32.vlgmr.msra.gmra.mrb[18].mxu1 %vm397_vm9, %v1521_v11 }
 0xe70   :  { %5564 = vmatpush3.bf16.msra.mxu1 %v6266_v10  ;;  %5173 = vmatprep.mubr.msk.f32.mxu1 %vm6107_vm1, %v6108_v27 }
 0xe71   :  { %5565 = vmatprep.subr.bf16.mxu1 %v6106_v12 }
 0xe74   :  { %5567 = vmatpush3.bf16.msra.mxu1 %v6304_v22 }
 0xe75   :  { %5574 = vmatprep.subr.bf16.mxu1 %v6106_v12 }
 0xe7e   :  { %v1516_v3 = vpop.permute.xlu0 %1515 }
 0xe7f   :  { %1518 = vst.msk [vmem:[#allocation4 + $0x20] sm:$0xff] %vm397_vm9, %v1516_v3  ;;  %5141 = vmatmul.mubr.msk.f32.vlgmr.msra.gmra.mrb[18].mxu0 %vm397_vm9, %v1516_v3 }
 0xe80   :  { %5558 = vmatpush3.bf16.msra.mxu0 %v6285_v17  ;;  %5162 = vmatprep.mubr.msk.f32.mxu0 %vm6107_vm1, %v6108_v27 }
 0xe81   :  { %5559 = vmatprep.subr.bf16.mxu0 %v6106_v12 }
 0xe84   :  { %5561 = vmatpush3.bf16.msra.mxu0 %v6308_v23 }
 0xe85   :  { %5568 = vmatprep.subr.bf16.mxu0 %v6106_v12 }
 0xf42   :  { %v1703_v13 = vpop.f32.mrb[18].mxu1 }
 0xf43   :  { %v1707_v14 = vadd.f32 %v1703_v13, %v6368_v42  ;;  %v5153_v55 = vpop.f32.mrb[19].mxu1 }
 0xf45   :  { %v4676_v8 = vmul.f32 -1.442695, %v1707_v14 }
 0xf47   :  { %5830 = vpow2.f32 %v4676_v8 }
 0xf48   :  { %5832 = vtanh.f32 %v1707_v14 }
 0xf51   :  { %v5831_v16 = vpop.eup %5830 }
 0xf52   :  { %v1712_v18 = vadd.f32 1.0, %v5831_v16  ;;  %v1595_v19 = vpop.f32.mrb[18].mxu0  ;;  %v5833_v47 = vpop.eup %5832 }
 0xf53   :  { %v1599_v58 = vadd.f32 %v1595_v19, %v6378_v51  ;;  %v5142_v20 = vpop.f32.mrb[19].mxu0 }
 0xf54   :  { %5834 = vrcp.f32 %v1712_v18 }
 0xf55   :  { %v4674_v21 = vmul.f32 -1.442695, %v1599_v58 }
 0xf57   :  { %5836 = vpow2.f32 %v4674_v21 }
 0xf58   :  { %5838 = vtanh.f32 %v1599_v58 }
 0xf5e   :  { %v5835_v24 = vpop.eup %5834 }
 0xf5f   :  { %v1715_v36 = vsel %vm6388_vm4, %v5833_v47, %v5835_v24 }
 0xf60   :  { %1718 = vrot.lane.b32.xlu1 %v1715_v36, %s6110_s29  ;;  %v1716_v30 = vmul.f32 %v1715_v36, %v6783_v53 }
 0xf61   :  { %v5837_v42 = vpop.eup %5836 }
 0xf62   :  { %v1604_v50 = vadd.f32 1.0, %v5837_v42  ;;  %v5839_v25 = vpop.eup %5838 }
 0xf64   :  { %5840 = vrcp.f32 %v1604_v50 }
 0xf6e   :  { %v5841_v45 = vpop.eup %5840 }
 0xf6f   :  { %v1607_v51 = vsel %vm6388_vm4, %v5839_v25, %v5841_v45 }
 0xf70   :  { %1610 = vrot.lane.b32.xlu0 %v1607_v51, %s6110_s29 }
 0xfd2   :  { %v1719_v39 = vpop.permute.xlu1 %1718 }
 0xfd3   :  { %v1721_v26 = vmul.f32 %v1719_v39, %v1715_v36 }
 0xfd5   :  { %1723 = vrot.lane.b32.xlu1 %v1721_v26, %s6111_s10 }
 0xfd9   :  { %1735 = vperm.xlu1 %5749, %v6553_v41  }
 0xfdd   :  { %1627 = vperm.xlu1 %5749, %v6549_v37   ;;  %v6793_v37 = vsel %vm1403_vm10, %v6727_v57, %v6723_v52 }
 0xfde   :  { %v1608_v60 = vmul.f32 %v1607_v51, %v6793_v37 }
 0xfe2   :  { %v1611_v43 = vpop.permute.xlu0 %1610 }
 0xfe3   :  { %v1613_v29 = vmul.f32 %v1611_v43, %v1607_v51 }
 0xfe5   :  { %1615 = vrot.lane.b32.xlu0 %v1613_v29, %s6111_s10 }
0x1047   :  { %v1724_v34 = vpop.permute.xlu1 %1723 }
0x1048   :  { %v6786_v46 = vadd.f32 %v1724_v34, %v1716_v30 }
0x104a   :  { %5842 = vtanh.f32 %v6786_v46 }
0x1054   :  { %v5843_v41 = vpop.eup %5842 }
0x1055   :  { %1729 = vrot.lane.b32.xlu0 %v5843_v41, %s6110_s29 }
0x1057   :  { %v1616_v2 = vpop.permute.xlu0 %1615 }
0x1058   :  { %v6797_v40 = vadd.f32 %v1616_v2, %v1608_v60  ;;  %v1736_v0 = vpop.permute.xlu1 %1735 }
0x1059   :  { %vm1737_vm11 = vcmp.eq.s32.totalorder %v1736_v0, 1 }
0x105a   :  { %5844 = vtanh.f32 %v6797_v40  ;;  %v6842_v21 = vsel %vm1737_vm11, %v6786_v46, %v6783_v53 }
0x105c   :  { %v1628_v61 = vpop.permute.xlu1 %1627 }
0x105d   :  { %vm1629_vm12 = vcmp.eq.s32.totalorder %v1628_v61, 1 }
0x1064   :  { %v5845_v4 = vpop.eup %5844 }
0x1065   :  { %1621 = vrot.lane.b32.xlu0 %v5845_v4, %s6110_s29 }
0x10c7   :  { %v1730_v54 = vpop.permute.xlu0 %1729 }
0x10c8   :  { %v1732_v6 = vmul.f32 %v1730_v54, %v1715_v36 }
0x10ca   :  { %v6803_v52 = vsel %vm1737_vm11, %v1732_v6, %v6737_v63 }
0x10cb   :  { %1746 = vrot.lane.b32.xlu1 %v6803_v52, %s6111_s10 }
0x10d7   :  { %v1622_v57 = vpop.permute.xlu0 %1621 }
0x10d8   :  { %v1624_v56 = vmul.f32 %v1622_v57, %v1607_v51 }
0x10da   :  { %v6809_v7 = vsel %vm1629_vm12, %v1624_v56, %v6747_v38 }
0x10db   :  { %1741 = vrot.lane.b32.xlu0 %v6809_v7, %s6111_s10 }
0x113d   :  { %v1747_v9 = vpop.permute.xlu1 %1746 }
0x113e   :  { %1749 = vst.msk [vmem:[#allocation5 + $0x10] sm:$0xff] %vm397_vm9, %v1747_v9  ;;  %5174 = vmatmul.mubr.msk.f32.vlgmr.msra.gmra.mrb[20].mxu1 %vm397_vm9, %v1747_v9 }
0x113f   :  { %5576 = vmatpush3.bf16.msra.mxu1 %v6266_v10  ;;  %5195 = vmatprep.mubr.msk.f32.mxu1 %vm6107_vm1, %v6108_v27 }
0x1140   :  { %5577 = vmatprep.subr.bf16.mxu1 %v6106_v12 }
0x1143   :  { %5579 = vmatpush3.bf16.msra.mxu1 %v6304_v22 }
0x114d   :  { %v1742_v44 = vpop.permute.xlu0 %1741 }
0x114e   :  { %1744 = vst.msk [vmem:[#allocation4 + $0x28] sm:$0xff] %vm397_vm9, %v1742_v44  ;;  %5163 = vmatmul.mubr.msk.f32.vlgmr.msra.gmra.mrb[20].mxu0 %vm397_vm9, %v1742_v44 }
0x114f   :  { %5570 = vmatpush3.bf16.msra.mxu0 %v6285_v17  ;;  %5184 = vmatprep.mubr.msk.f32.mxu0 %vm6107_vm1, %v6108_v27 }
0x1150   :  { %5571 = vmatprep.subr.bf16.mxu0 %v6106_v12 }
0x1153   :  { %5573 = vmatpush3.bf16.msra.mxu0 %v6308_v23 }
0x1211   :  { %v1929_v10 = vpop.f32.mrb[20].mxu1 }
0x1212   :  { %v1933_v63 = vadd.f32 %v1929_v10, %v6357_v31  ;;  %v5175_v1 = vpop.f32.mrb[21].mxu1 }
0x1214   :  { %v4680_v5 = vmul.f32 -1.442695, %v1933_v63 }
0x1216   :  { %5846 = vpow2.f32 %v4680_v5  ;;  %v1976_v5 = vld [vmem:[%s7573_s1 + $0x38] sm:$0xff] }
0x1217   :  { %5848 = vtanh.f32 %v1933_v63  ;;  %vm1977_vm15 = vcmp.gt.f32.partialorder %v1976_v5, 0.5  ;;  %v2200_v5 = vld [vmem:[#allocation4] sm:$0xff] }
0x1220   :  { %v5847_v22 = vpop.eup %5846 }
0x1221   :  { %v1938_v48 = vadd.f32 1.0, %v5847_v22  ;;  %v1821_v38 = vpop.f32.mrb[20].mxu0  ;;  %v5849_v13 = vpop.eup %5848  ;;  %v6892_v22 = vsel %vm1977_vm15, 1, %v6109_v28 }
0x1222   :  { %v1825_v11 = vadd.f32 %v1821_v38, %v6386_v62  ;;  %v5164_v17 = vpop.f32.mrb[21].mxu0 }
0x1223   :  { %5850 = vrcp.f32 %v1938_v48 }
0x1224   :  { %v4678_v3 = vmul.f32 -1.442695, %v1825_v11 }
0x1226   :  { %5852 = vpow2.f32 %v4678_v3 }
0x1227   :  { %5854 = vtanh.f32 %v1825_v11 }
0x122d   :  { %v5851_v14 = vpop.eup %5850 }
0x122e   :  { %v1941_v23 = vsel %vm6388_vm4, %v5849_v13, %v5851_v14 }
0x122f   :  { %1944 = vrot.lane.b32.xlu1 %v1941_v23, %s6110_s29  ;;  %v1942_v47 = vmul.f32 %v1941_v23, %v6842_v21 }
0x1230   :  { %v5853_v31 = vpop.eup %5852 }
0x1231   :  { %v1830_v55 = vadd.f32 1.0, %v5853_v31  ;;  %v5855_v8 = vpop.eup %5854 }
0x1233   :  { %5856 = vrcp.f32 %v1830_v55 }
0x123d   :  { %v5857_v16 = vpop.eup %5856 }
0x123e   :  { %v1833_v62 = vsel %vm6388_vm4, %v5855_v8, %v5857_v16  ;;  %v2220_v16 = vld [vmem:[%s7580_s8 + $0x20] sm:$0xff] }
0x123f   :  { %1836 = vrot.lane.b32.xlu0 %v1833_v62, %s6110_s29 }
0x12a1   :  { %v1945_v18 = vpop.permute.xlu1 %1944 }
0x12a2   :  { %v1947_v19 = vmul.f32 %v1945_v18, %v1941_v23  ;;  %v2509_v18 = vld [vmem:[%s7583_s11 + $0x20] sm:$0xff] }
0x12a4   :  { %1949 = vrot.lane.b32.xlu1 %v1947_v19, %s6111_s10 }
0x12a8   :  { %1961 = vperm.xlu1 %5749, %v6473_v33  }
0x12ac   :  { %1853 = vperm.xlu1 %5749, %v6469_v32   ;;  %v6851_v32 = vsel %vm1629_vm12, %v6797_v40, %v6793_v37 }
0x12ad   :  { %v1834_v33 = vmul.f32 %v1833_v62, %v6851_v32 }
0x12b1   :  { %v1837_v58 = vpop.permute.xlu0 %1836 }
0x12b2   :  { %v1839_v20 = vmul.f32 %v1837_v58, %v1833_v62  ;;  %v2510_v58 = vld [vmem:[%s7583_s11 + $0x28] sm:$0xff] }
0x12b4   :  { %1841 = vrot.lane.b32.xlu0 %v1839_v20, %s6111_s10  ;;  %v2222_v20 = vld [vmem:[%s7580_s8 + $0x30] sm:$0xff] }
0x1316   :  { %v1950_v24 = vpop.permute.xlu1 %1949 }
0x1317   :  { %v6845_v36 = vadd.f32 %v1950_v24, %v1942_v47  ;;  %v5596_v47 = vpack.c.bf16 %v2510_v58, %v2509_v18  ;;  %v4718_v58 = vld [vmem:[#allocation11] ss:$0 sm:$0xff] }
0x1319   :  { %5858 = vtanh.f32 %v6845_v36  ;;  %5597 = vmatprep.subr.bf16.mxu1 %v5596_v47 }
0x1323   :  { %v5859_v42 = vpop.eup %5858 }
0x1324   :  { %1955 = vrot.lane.b32.xlu0 %v5859_v42, %s6110_s29  ;;  %v2512_v42 = vld [vmem:[%s7583_s11 + $0x38] sm:$0xff] }
0x1326   :  { %v1842_v50 = vpop.permute.xlu0 %1841 }
0x1327   :  { %v6855_v25 = vadd.f32 %v1842_v50, %v1834_v33  ;;  %v1962_v51 = vpop.permute.xlu1 %1961 }
0x1328   :  { %vm1963_vm13 = vcmp.eq.s32.totalorder %v1962_v51, 1  ;;  %v2505_v51 = vld [vmem:[%s7583_s11] sm:$0xff] }
0x1329   :  { %5860 = vtanh.f32 %v6855_v25  ;;  %v1965_v11 = vsel %vm1963_vm13, %v6845_v36, %v6842_v21  ;;  %v2223_v21 = vld [vmem:[%s7580_s8 + $0x38] sm:$0xff]  ;;  %v2511_v36 = vld [vmem:[%s7583_s11 + $0x30] sm:$0xff] }
0x132a   :  { %v5584_v24 = vpack.c.bf16 %v2223_v21, %v2222_v20 }
0x132b   :  { %v1854_v29 = vpop.permute.xlu1 %1853 }
0x132c   :  { %vm1855_vm14 = vcmp.eq.s32.totalorder %v1854_v29, 1  ;;  %v2506_v29 = vld [vmem:[%s7583_s11 + $0x8] sm:$0xff] }
0x1333   :  { %v5861_v45 = vpop.eup %5860 }
0x1334   :  { %1847 = vrot.lane.b32.xlu0 %v5861_v45, %s6110_s29  ;;  %v2217_v45 = vld [vmem:[%s7580_s8 + $0x8] sm:$0xff] }
0x1396   :  { %v1956_v39 = vpop.permute.xlu0 %1955 }
0x1397   :  { %v1958_v26 = vmul.f32 %v1956_v39, %v1941_v23 }
0x1399   :  { %v6861_v43 = vsel %vm1963_vm13, %v1958_v26, %v6803_v52 }
0x139a   :  { %1972 = vrot.lane.b32.xlu1 %v6861_v43, %s6111_s10 }
0x13a6   :  { %v1848_v53 = vpop.permute.xlu0 %1847 }
0x13a7   :  { %v1850_v30 = vmul.f32 %v1848_v53, %v1833_v62  ;;  %v2221_v62 = vld [vmem:[%s7580_s8 + $0x28] sm:$0xff]  ;;  %v5604_v53 = vpack.c.bf16 %v2506_v29, %v2505_v51 }
0x13a8   :  { %v5580_v19 = vpack.c.bf16 %v2221_v62, %v2220_v16  ;;  %v2205_v16 = vld [vmem:[#allocation4 + $0x28] sm:$0xff] }
0x13a9   :  { %v6867_v34 = vsel %vm1855_vm14, %v1850_v30, %v6809_v7 }
0x13aa   :  { %1967 = vrot.lane.b32.xlu0 %v6867_v34, %s6111_s10  ;;  %5581 = vmatprep.subr.bf16.mxu0 %v5580_v19 }
0x140c   :  { %v1973_v46 = vpop.permute.xlu1 %1972 }
0x140d   :  { %1975 = vst.msk [vmem:[#allocation5 + $0x8] sm:$0xff] %vm397_vm9, %v1973_v46  ;;  %5196 = vmatmul.mubr.msk.f32.vlgmr.msra.gmra.mrb[22].mxu1 %vm397_vm9, %v1973_v46 }
0x140e   :  { %5599 = vmatpush3.bf16.msra.mxu1 %v5596_v47 }
0x141c   :  { %v1968_v41 = vpop.permute.xlu0 %1967 }
0x141d   :  { %1970 = vst.msk [vmem:[#allocation4 + $0x30] sm:$0xff] %vm397_vm9, %v1968_v41  ;;  %5185 = vmatmul.mubr.msk.f32.vlgmr.msra.gmra.mrb[22].mxu0 %vm397_vm9, %v1968_v41 }
0x141e   :  { %5583 = vmatpush3.bf16.msra.mxu0 %v5580_v19  ;;  %v4701_v19 = vld [vmem:[#allocation10] ss:$0 sm:$0xff] }
0x141f   :  { %5585 = vmatprep.subr.bf16.mxu0 %v5584_v24 }
0x1422   :  { %5587 = vmatpush3.bf16.msra.mxu0 %v5584_v24 }
0x1424   :  { %v2206_v62 = vld [vmem:[#allocation4 + $0x30] sm:$0xff] }
0x14e0   :  { %v2154_v37 = vpop.f32.mrb[22].mxu1 }
0x14e1   :  { %v2158_v60 = vadd.f32 %v2154_v37, %v6362_v35  ;;  %v5197_v2 = vpop.f32.mrb[23].mxu1 }
0x14e3   :  { %v4684_v40 = vmul.f32 -1.442695, %v2158_v60 }
0x14e5   :  { %5862 = vpow2.f32 %v4684_v40  ;;  %v2219_v40 = vld [vmem:[%s7580_s8 + $0x18] sm:$0xff] }
0x14e6   :  { %5864 = vtanh.f32 %v2158_v60 }
0x14ef   :  { %v5863_v4 = vpop.eup %5862 }
0x14f0   :  { %v2163_v0 = vadd.f32 1.0, %v5863_v4  ;;  %v2047_v54 = vpop.f32.mrb[22].mxu0  ;;  %v5865_v57 = vpop.eup %5864  ;;  %v2507_v4 = vld [vmem:[%s7583_s11 + $0x10] sm:$0xff] }
0x14f1   :  { %v2051_v6 = vadd.f32 %v2047_v54, %v6384_v59  ;;  %v5186_v52 = vpop.f32.mrb[23].mxu0  ;;  %v2209_v54 = vld [vmem:[#allocation5 + $0x8] sm:$0xff] }
0x14f2   :  { %5866 = vrcp.f32 %v2163_v0 }
0x14f3   :  { %v4682_v61 = vmul.f32 -1.442695, %v2051_v6 }
0x14f5   :  { %5868 = vpow2.f32 %v4682_v61  ;;  %v2210_v61 = vld [vmem:[#allocation5 + $0x10] sm:$0xff] }
0x14f6   :  { %5870 = vtanh.f32 %v2051_v6 }
0x14fc   :  { %v5867_v56 = vpop.eup %5866 }
0x14fd   :  { %v2166_v7 = vsel %vm6388_vm4, %v5865_v57, %v5867_v56  ;;  %v2211_v57 = vld [vmem:[#allocation5 + $0x18] sm:$0xff]  ;;  %v2212_v56 = vld [vmem:[#allocation5 + $0x20] sm:$0xff] }
0x14fe   :  { %2169 = vrot.lane.b32.xlu1 %v2166_v7, %s6110_s29  ;;  %v2167_v17 = vmul.f32 %v2166_v7, %v1965_v11 }
0x14ff   :  { %v5869_v35 = vpop.eup %5868 }
0x1500   :  { %v2056_v9 = vadd.f32 1.0, %v5869_v35  ;;  %v5871_v44 = vpop.eup %5870  ;;  %v2213_v35 = vld [vmem:[#allocation5 + $0x28] sm:$0xff] }
0x1502   :  { %5872 = vrcp.f32 %v2056_v9  ;;  %v2214_v9 = vld [vmem:[#allocation5 + $0x30] sm:$0xff] }
0x150c   :  { %v5873_v10 = vpop.eup %5872 }
0x150d   :  { %v6882_v59 = vsel %vm6388_vm4, %v5871_v44, %v5873_v10  ;;  %v2215_v44 = vld [vmem:[#allocation5 + $0x38] sm:$0xff]  ;;  %v2746_v10 = vld [vmem:[%s7581_s9] sm:$0xff] }
0x150e   :  { %2062 = vrot.lane.b32.xlu0 %v6882_v59, %s6110_s29 }
0x1570   :  { %v2170_v63 = vpop.permute.xlu1 %2169 }
0x1571   :  { %v2172_v1 = vmul.f32 %v2170_v63, %v2166_v7  ;;  %v2750_v63 = vld [vmem:[%s7584_s12] sm:$0xff] }
0x1573   :  { %2174 = vrot.lane.b32.xlu1 %v2172_v1, %s6111_s10  ;;  %v2751_v1 = vld [vmem:[%s7584_s12 + $0x8] sm:$0xff] }
0x1574   :  { %v6995_v11 = vpack.c.bf16 %v2751_v1, %v2750_v63 }
0x1577   :  { %2186 = vperm.xlu1 %5749, %v6415_v49   ;;  %v1857_v49 = vsel %vm1855_vm14, %v6855_v25, %v6851_v32  ;;  %v5600_v32 = vpack.c.bf16 %v2512_v42, %v2511_v36  ;;  %v2216_v25 = vld [vmem:[%s7580_s8] sm:$0xff] }
0x1578   :  { %v2060_v23 = vmul.f32 %v6882_v59, %v1857_v49  ;;  %v5588_v26 = vpack.c.bf16 %v2217_v45, %v2216_v25  ;;  %v2202_v49 = vld [vmem:[#allocation4 + $0x10] sm:$0xff] }
0x1579   :  { %5601 = vmatprep.subr.bf16.mxu1 %v5600_v32 }
0x157a   :  { %5603 = vmatpush3.bf16.msra.mxu1 %v5600_v32  ;;  %5589 = vmatprep.subr.bf16.mxu0 %v5588_v26 }
0x157b   :  { %2079 = vperm.xlu1 %5749, %v6892_v22   ;;  %5605 = vmatprep.subr.bf16.mxu1 %v5604_v53 }
0x1580   :  { %v2063_v48 = vpop.permute.xlu0 %2062 }
0x1581   :  { %v2065_v38 = vmul.f32 %v2063_v48, %v6882_v59  ;;  %v2201_v48 = vld [vmem:[#allocation4 + $0x8] sm:$0xff] }
0x1583   :  { %2067 = vrot.lane.b32.xlu0 %v2065_v38, %s6111_s10 }
0x15e5   :  { %v2175_v3 = vpop.permute.xlu1 %2174 }
0x15e6   :  { %v2177_v13 = vadd.f32 %v2175_v3, %v2167_v17  ;;  %v2748_v17 = vld [vmem:[%s7581_s9 + $0x10] sm:$0xff]  ;;  %v2749_v3 = vld [vmem:[%s7581_s9 + $0x18] sm:$0xff] }
0x15e8   :  { %5874 = vtanh.f32 %v2177_v13  ;;  %v2752_v13 = vld [vmem:[%s7584_s12 + $0x10] sm:$0xff] }
0x15f2   :  { %v5875_v14 = vpop.eup %5874 }
0x15f3   :  { %2180 = vrot.lane.b32.xlu0 %v5875_v14, %s6110_s29  ;;  %v2753_v14 = vld [vmem:[%s7584_s12 + $0x18] sm:$0xff] }
0x15f5   :  { %v2068_v31 = vpop.permute.xlu0 %2067 }
0x15f6   :  { %v2070_v55 = vadd.f32 %v2068_v31, %v2060_v23  ;;  %v2187_v33 = vpop.permute.xlu1 %2186  ;;  %v7015_v23 = vpack.c.bf16 %v2749_v3, %v2748_v17  ;;  %v7017_v31 = vpack.c.bf16 %v2753_v14, %v2752_v13 }
0x15f7   :  { %vm2188_vm0 = vcmp.eq.s32.totalorder %v2187_v33, 1 }
0x15f8   :  { %5876 = vtanh.f32 %v2070_v55  ;;  %v2203_v55 = vld [vmem:[#allocation4 + $0x18] sm:$0xff] }
0x15fa   :  { %v2080_v46 = vpop.permute.xlu1 %2079 }
0x15fb   :  { %vm2081_vm2 = vcmp.eq.s32.totalorder %v2080_v46, 1 }
0x1602   :  { %v5877_v8 = vpop.eup %5876 }
0x1603   :  { %2073 = vrot.lane.b32.xlu0 %v5877_v8, %s6110_s29  ;;  %v2204_v8 = vld [vmem:[#allocation4 + $0x20] sm:$0xff] }
0x1665   :  { %v2181_v50 = vpop.permute.xlu0 %2180 }
0x1666   :  { %v2183_v39 = vmul.f32 %v2181_v50, %v2166_v7 }
0x1668   :  { %v2189_v30 = vsel %vm2188_vm0, %v2183_v39, %v6861_v43  ;;  %v2218_v43 = vld [vmem:[%s7580_s8 + $0x10] sm:$0xff] }
0x1669   :  { %2196 = vrot.lane.b32.xlu1 %v2189_v30, %s6111_s10  ;;  %v5592_v6 = vpack.c.bf16 %v2219_v40, %v2218_v43 }
0x1675   :  { %v2074_v41 = vpop.permute.xlu0 %2073 }
0x1676   :  { %v2076_v37 = vmul.f32 %v2074_v41, %v6882_v59  ;;  %v2747_v59 = vld [vmem:[%s7581_s9 + $0x8] sm:$0xff] }
0x1677   :  { %v6993_v38 = vpack.c.bf16 %v2747_v59, %v2746_v10 }
0x1678   :  { %v2082_v60 = vsel %vm2081_vm2, %v2076_v37, %v6867_v34  ;;  %v2508_v34 = vld [vmem:[%s7583_s11 + $0x18] sm:$0xff] }
0x1679   :  { %2191 = vrot.lane.b32.xlu0 %v2082_v60, %s6111_s10  ;;  %v5608_v52 = vpack.c.bf16 %v2508_v34, %v2507_v4 }
0x16db   :  { %v2197_v2 = vpop.permute.xlu1 %2196 }
0x16dc   :  { %2199 = vst.msk [vmem:[#allocation5] sm:$0xff] %vm397_vm9, %v2197_v2 }
0x16e3   :  { %v2208_v0 = vld [vmem:[#allocation5] sm:$0xff] }
0x16e4   :  { %5206 = vmatprep.mubr.msk.f32.mxu0 %vm397_vm9, %v2208_v0  ;;  %5246 = vmatprep.mubr.msk.f32.mxu1 %vm397_vm9, %v2208_v0 }
0x16e5   :  { %5207 = vmatmul.mubr.msk.f32.vlgmr.msra.gmra.mrb[24].mxu0 %vm397_vm9, %v2209_v54  ;;  %5247 = vmatmul.mubr.msk.f32.vlgmr.msra.gmra.mrb[24].mxu1 %vm397_vm9, %v2209_v54 }
0x16e6   :  { %5209 = vmatprep.mubr.msk.f32.mxu0 %vm397_vm9, %v2210_v61  ;;  %5591 = vmatpush3.bf16.msra.mxu0 %v5588_v26 }
0x16e7   :  { %5249 = vmatprep.mubr.msk.f32.mxu1 %vm397_vm9, %v2210_v61  ;;  %5607 = vmatpush3.bf16.msra.mxu1 %v5604_v53 }
0x16e8   :  { %5593 = vmatprep.subr.bf16.mxu0 %v5592_v6  ;;  %5609 = vmatprep.subr.bf16.mxu1 %v5608_v52 }
0x16e9   :  { %5210 = vmatmul.mubr.msk.f32.gmra.mrb[26].mxu0 %vm397_vm9, %v2211_v57  ;;  %5250 = vmatmul.mubr.msk.f32.gmra.mrb[26].mxu1 %vm397_vm9, %v2211_v57 }
0x16ea   :  { %5212 = vmatprep.mubr.msk.f32.mxu0 %vm397_vm9, %v2212_v56  ;;  %5252 = vmatprep.mubr.msk.f32.mxu1 %vm397_vm9, %v2212_v56 }
0x16eb   :  { %v2192_v7 = vpop.permute.xlu0 %2191  ;;  %5595 = vmatpush3.bf16.msra.mxu0 %v5592_v6  ;;  %5611 = vmatpush3.bf16.msra.mxu1 %v5608_v52 }
0x16ec   :  { %2194 = vst.msk [vmem:[#allocation4 + $0x38] sm:$0xff] %vm397_vm9, %v2192_v7  ;;  %5612 = vmatprep.subr.bf16.mxu0 %v6106_v12  ;;  %5618 = vmatprep.subr.bf16.mxu1 %v6106_v12 }
0x16ed   :  { %5213 = vmatmul.mubr.msk.f32.gmra.mrb[28].mxu0 %vm397_vm9, %v2213_v35  ;;  %5253 = vmatmul.mubr.msk.f32.gmra.mrb[28].mxu1 %vm397_vm9, %v2213_v35 }
0x16ee   :  { %5215 = vmatprep.mubr.msk.f32.mxu0 %vm397_vm9, %v2214_v9  ;;  %5255 = vmatprep.mubr.msk.f32.mxu1 %vm397_vm9, %v2214_v9 }
0x16f1   :  { %5216 = vmatmul.mubr.msk.f32.gmra.mrb[30].mxu0 %vm397_vm9, %v2215_v44  ;;  %5256 = vmatmul.mubr.msk.f32.gmra.mrb[30].mxu1 %vm397_vm9, %v2215_v44 }
0x16f2   :  { %5226 = vmatprep.mubr.msk.f32.mxu0 %vm397_vm9, %v2200_v5  ;;  %5266 = vmatprep.mubr.msk.f32.mxu1 %vm397_vm9, %v2200_v5 }
0x16f3   :  { %v2207_v18 = vld [vmem:[#allocation4 + $0x38] sm:$0xff] }
0x16f5   :  { %5227 = vmatmul.mubr.msk.f32.vlgmr.msra.gmra.mrb[24].mxu0 %vm397_vm9, %v2201_v48  ;;  %5267 = vmatmul.mubr.msk.f32.vlgmr.msra.gmra.mrb[24].mxu1 %vm397_vm9, %v2201_v48 }
0x16f6   :  { %5229 = vmatprep.mubr.msk.f32.mxu0 %vm397_vm9, %v2202_v49  ;;  %5269 = vmatprep.mubr.msk.f32.mxu1 %vm397_vm9, %v2202_v49 }
0x16f7   :  { %5614 = vmatpush3.bf16.msra.mxu0 %v6993_v38  ;;  %5620 = vmatpush3.bf16.msra.mxu1 %v6995_v11 }
0x16f8   :  { %5615 = vmatprep.subr.bf16.mxu0 %v6106_v12  ;;  %5621 = vmatprep.subr.bf16.mxu1 %v6106_v12 }
0x16f9   :  { %5230 = vmatmul.mubr.msk.f32.gmra.mrb[26].mxu0 %vm397_vm9, %v2203_v55  ;;  %5270 = vmatmul.mubr.msk.f32.gmra.mrb[26].mxu1 %vm397_vm9, %v2203_v55 }
0x16fa   :  { %5232 = vmatprep.mubr.msk.f32.mxu0 %vm397_vm9, %v2204_v8  ;;  %5272 = vmatprep.mubr.msk.f32.mxu1 %vm397_vm9, %v2204_v8 }
0x16fb   :  { %5617 = vmatpush3.bf16.msra.mxu0 %v7015_v23  ;;  %5623 = vmatpush3.bf16.msra.mxu1 %v7017_v31 }
0x16fc   :  { %5624 = vmatprep.subr.bf16.mxu0 %v6106_v12  ;;  %5630 = vmatprep.subr.bf16.mxu1 %v6106_v12 }
0x16fd   :  { %5233 = vmatmul.mubr.msk.f32.gmra.mrb[28].mxu0 %vm397_vm9, %v2205_v16  ;;  %5273 = vmatmul.mubr.msk.f32.gmra.mrb[28].mxu1 %vm397_vm9, %v2205_v16  ;;  %v2754_v16 = vld [vmem:[%s7573_s1] sm:$0xff] }
0x16fe   :  { %5235 = vmatprep.mubr.msk.f32.mxu0 %vm397_vm9, %v2206_v62  ;;  %5275 = vmatprep.mubr.msk.f32.mxu1 %vm397_vm9, %v2206_v62  ;;  %vm2755_vm3 = vcmp.gt.f32.partialorder %v2754_v16, 0.5 }
0x1701   :  { %5236 = vmatmul.mubr.msk.f32.gmra.mrb[30].mxu0 %vm397_vm9, %v2207_v18  ;;  %5276 = vmatmul.mubr.msk.f32.gmra.mrb[30].mxu1 %vm397_vm9, %v2207_v18 }
0x1702   :  { %5286 = vmatprep.mubr.msk.f32.mxu0 %vm6107_vm1, %v6108_v27  ;;  %5297 = vmatprep.mubr.msk.f32.mxu1 %vm6107_vm1, %v6108_v27 }
0x1705   :  { %5287 = vmatmul.mubr.f32.vlgmr.msra.gmra.mrb[32].mxu0 %v6108_v27  ;;  %5298 = vmatmul.mubr.f32.vlgmr.msra.gmra.mrb[32].mxu1 %v6108_v27 }
0x1706   :  { %5626 = vmatpush3.bf16.msra.mxu0 %v6993_v38  ;;  %5632 = vmatpush3.bf16.msra.mxu1 %v6995_v11 }
0x1707   :  { %5627 = vmatprep.subr.bf16.mxu0 %v6106_v12  ;;  %5633 = vmatprep.subr.bf16.mxu1 %v6106_v12 }
0x1708   :  { %5319 = vmatprep.mubr.msk.f32.mxu1 %vm6107_vm1, %v6108_v27  ;;  %5308 = vmatprep.mubr.msk.f32.mxu0 %vm6107_vm1, %v6108_v27 }
0x170a   :  { %5629 = vmatpush3.bf16.msra.mxu0 %v7015_v23  ;;  %5635 = vmatpush3.bf16.msra.mxu1 %v7017_v31 }
0x170b   :  { %5636 = vmatprep.subr.bf16.mxu0 %v6106_v12  ;;  %5642 = vmatprep.subr.bf16.mxu1 %v6106_v12 }
0x17c8   :  { %v5228_v20 = vpop.f32.mrb[24].mxu0  ;;  %v5268_v21 = vpop.f32.mrb[24].mxu1 }
0x17c9   :  { %v7053_v47 = vadd.f32 %v5228_v20, %v4701_v19  ;;  %v7055_v24 = vadd.f32 %v5268_v21, %v4718_v58  ;;  %v2443_v36 = vpop.f32.mrb[25].mxu0  ;;  %v2684_v42 = vpop.f32.mrb[25].mxu1  ;;  %v2853_v20 = vsel %vm2755_vm3, 1, %v6109_v28 }
0x17ca   :  { %v7057_v32 = vadd.f32 %v4718_v58, %v2684_v42  ;;  %v2489_v61 = vadd.f32 %v4701_v19, %v2443_v36 }
0x17cc   :  { %v5231_v33 = vpop.f32.mrb[26].mxu0  ;;  %v5271_v50 = vpop.f32.mrb[26].mxu1 }
0x17cd   :  { %v7059_v25 = vadd.f32 %v5231_v33, %v4701_v19  ;;  %v7061_v45 = vadd.f32 %v5271_v50, %v4718_v58  ;;  %v2453_v51 = vpop.f32.mrb[27].mxu0  ;;  %v2694_v39 = vpop.f32.mrb[27].mxu1 }
0x17ce   :  { %v7063_v26 = vadd.f32 %v4701_v19, %v2453_v51  ;;  %v7065_v29 = vadd.f32 %v4718_v58, %v2694_v39 }
0x17d0   :  { %v5234_v53 = vpop.f32.mrb[28].mxu0  ;;  %v5274_v30 = vpop.f32.mrb[28].mxu1 }
0x17d1   :  { %v7067_v46 = vadd.f32 %v5234_v53, %v4701_v19  ;;  %v7069_v41 = vadd.f32 %v5274_v30, %v4718_v58  ;;  %v2463_v37 = vpop.f32.mrb[29].mxu0  ;;  %v2704_v60 = vpop.f32.mrb[29].mxu1 }
0x17d2   :  { %v7071_v2 = vadd.f32 %v4701_v19, %v2463_v37  ;;  %v7073_v43 = vadd.f32 %v4718_v58, %v2704_v60 }
0x17d4   :  { %v5237_v40 = vpop.f32.mrb[30].mxu0  ;;  %v5277_v4 = vpop.f32.mrb[30].mxu1 }
0x17d5   :  { %v7075_v34 = vadd.f32 %v5237_v40, %v4701_v19  ;;  %v2473_v0 = vpop.f32.mrb[31].mxu0  ;;  %v2714_v54 = vpop.f32.mrb[31].mxu1  ;;  %v2737_v57 = vadd.f32 %v5277_v4, %v4718_v58 }
0x17d6   :  { %v7077_v6 = vadd.f32 %v4701_v19, %v2473_v0  ;;  %v7079_v52 = vadd.f32 %v4718_v58, %v2714_v54 }
0x17d8   :  { %v2823_v56 = vpop.f32.mrb[32].mxu0  ;;  %v2929_v7 = vpop.f32.mrb[32].mxu1 }
0x17d9   :  { %v2827_v35 = vadd.f32 %v2823_v56, %v2489_v61  ;;  %v2933_v9 = vadd.f32 %v2929_v7, %v2737_v57  ;;  %v5288_v44 = vpop.f32.mrb[33].mxu0  ;;  %v5299_v10 = vpop.f32.mrb[33].mxu1 }
0x17db   :  { %v4719_v59 = vmul.f32 -1.442695, %v2827_v35  ;;  %v4720_v63 = vmul.f32 -1.442695, %v2933_v9 }
0x17dd   :  { %5878 = vpow2.f32 %v4719_v59 }
0x17de   :  { %5880 = vpow2.f32 %v4720_v63 }
0x17df   :  { %5882 = vtanh.f32 %v2827_v35 }
0x17e0   :  { %5884 = vtanh.f32 %v2933_v9 }
0x17e7   :  { %v5879_v1 = vpop.eup %5878 }
0x17e8   :  { %v5881_v5 = vpop.eup %5880  ;;  %v2832_v48 = vadd.f32 1.0, %v5879_v1 }
0x17e9   :  { %v2938_v17 = vadd.f32 1.0, %v5881_v5  ;;  %v5883_v3 = vpop.eup %5882 }
0x17ea   :  { %5886 = vrcp.f32 %v2832_v48  ;;  %v5885_v13 = vpop.eup %5884 }
0x17eb   :  { %5888 = vrcp.f32 %v2938_v17 }
0x17f4   :  { %v5887_v14 = vpop.eup %5886 }
0x17f5   :  { %v5889_v49 = vpop.eup %5888  ;;  %v2835_v55 = vsel %vm6388_vm4, %v5883_v3, %v5887_v14 }
0x17f6   :  { %v2941_v8 = vsel %vm6388_vm4, %v5885_v13, %v5889_v49  ;;  %2838 = vrot.lane.b32.xlu1 %v2835_v55, %s6110_s29  ;;  %v2836_v21 = vmul.f32 0.0, %v2835_v55 }
0x17f7   :  { %2944 = vrot.lane.b32.xlu0 %v2941_v8, %s6110_s29  ;;  %v2942_v36 = vmul.f32 0.0, %v2941_v8 }
0x1868   :  { %v2839_v62 = vpop.permute.xlu1 %2838 }
0x1869   :  { %v2945_v18 = vpop.permute.xlu0 %2944  ;;  %v2841_v19 = vmul.f32 %v2839_v62, %v2835_v55 }
0x186a   :  { %v2947_v58 = vmul.f32 %v2945_v18, %v2941_v8 }
0x186b   :  { %2843 = vrot.lane.b32.xlu1 %v2841_v19, %s6111_s10 }
0x186c   :  { %2949 = vrot.lane.b32.xlu0 %v2947_v58, %s6111_s10 }
0x186f   :  { %2855 = vperm.xlu1 %5749, %v2853_v20  }
0x1870   :  { %2961 = vperm.xlu0 %5748, %v6892_v22  }
0x18dd   :  { %v2844_v42 = vpop.permute.xlu1 %2843 }
0x18de   :  { %v2950_v33 = vpop.permute.xlu0 %2949  ;;  %v7094_v50 = vadd.f32 %v2844_v42, %v2836_v21 }
0x18df   :  { %v7096_v51 = vadd.f32 %v2950_v33, %v2942_v36 }
0x18e0   :  { %5890 = vtanh.f32 %v7094_v50 }
0x18e1   :  { %5892 = vtanh.f32 %v7096_v51 }
0x18ea   :  { %v5891_v39 = vpop.eup %5890 }
0x18eb   :  { %v5893_v53 = vpop.eup %5892  ;;  %2849 = vrot.lane.b32.xlu1 %v5891_v39, %s6110_s29 }
0x18ec   :  { %2955 = vrot.lane.b32.xlu0 %v5893_v53, %s6110_s29 }
0x18ee   :  { %v7102_v30 = vpop.permute.xlu1 %2855 }
0x18ef   :  { %v7104_v22 = vpop.permute.xlu0 %2961  ;;  %vm2857_vm5 = vcmp.eq.s32.totalorder %v7102_v30, 1 }
0x18f0   :  { %vm2963_vm6 = vcmp.eq.s32.totalorder %v7104_v22, 1  ;;  %v7155_v21 = vsel %vm2857_vm5, %v7094_v50, 0.0  ;;  %v4751_v22 = vld [vmem:[%s7587_s15] ss:$0 sm:$0xff] }
0x18f1   :  { %v7160_v36 = vsel %vm2963_vm6, %v7096_v51, 0.0 }
0x195d   :  { %v2850_v37 = vpop.permute.xlu1 %2849 }
0x195e   :  { %v2956_v60 = vpop.permute.xlu0 %2955  ;;  %v2852_v40 = vmul.f32 %v2850_v37, %v2835_v55  ;;  %v2966_v55 = vld [vmem:[%s7573_s1 + $0x8] sm:$0xff] }
0x195f   :  { %v2958_v4 = vmul.f32 %v2956_v60, %v2941_v8  ;;  %v3077_v8 = vld [vmem:[%s7573_s1 + $0x30] sm:$0xff]  ;;  %vm2967_vm7 = vcmp.gt.f32.partialorder %v2966_v55, 0.5 }
0x1960   :  { %v7110_v0 = vsel %vm2857_vm5, %v2852_v40, 0.0  ;;  %vm3078_vm8 = vcmp.gt.f32.partialorder %v3077_v8, 0.5  ;;  %v3070_v58 = vsel %vm2967_vm7, 1, %v6109_v28 }
0x1961   :  { %v7114_v54 = vsel %vm2963_vm6, %v2958_v4, 0.0  ;;  %2970 = vrot.lane.b32.xlu1 %v7110_v0, %s6111_s10  ;;  %v3181_v20 = vsel %vm3078_vm8, 1, %v6109_v28 }
0x1962   :  { %3081 = vrot.lane.b32.xlu0 %v7114_v54, %s6111_s10 }
0x19d3   :  { %v2971_v61 = vpop.permute.xlu1 %2970 }
0x19d4   :  { %v3082_v57 = vpop.permute.xlu0 %3081  ;;  %5309 = vmatmul.mubr.msk.f32.vlgmr.msra.gmra.mrb[34].mxu0 %vm397_vm9, %v2971_v61 }
0x19d5   :  { %5320 = vmatmul.mubr.msk.f32.vlgmr.msra.gmra.mrb[34].mxu1 %vm397_vm9, %v3082_v57  ;;  %5638 = vmatpush3.bf16.msra.mxu0 %v6993_v38 }
0x19d6   :  { %5644 = vmatpush3.bf16.msra.mxu1 %v6995_v11  ;;  %5639 = vmatprep.subr.bf16.mxu0 %v6106_v12 }
0x19d7   :  { %5645 = vmatprep.subr.bf16.mxu1 %v6106_v12  ;;  %5341 = vmatprep.mubr.msk.f32.mxu1 %vm6107_vm1, %v6108_v27 }
0x19d8   :  { %5330 = vmatprep.mubr.msk.f32.mxu0 %vm6107_vm1, %v6108_v27 }
0x19d9   :  { %5641 = vmatpush3.bf16.msra.mxu0 %v7015_v23 }
0x19da   :  { %5647 = vmatpush3.bf16.msra.mxu1 %v7017_v31  ;;  %5648 = vmatprep.subr.bf16.mxu0 %v6106_v12 }
0x19db   :  { %5654 = vmatprep.subr.bf16.mxu1 %v6106_v12 }
0x1aa7   :  { %v3040_v56 = vpop.f32.mrb[34].mxu0 }
0x1aa8   :  { %v3044_v7 = vadd.f32 %v3040_v56, %v7053_v47  ;;  %v3151_v35 = vpop.f32.mrb[34].mxu1  ;;  %v5310_v9 = vpop.f32.mrb[35].mxu0 }
0x1aa9   :  { %v3155_v44 = vadd.f32 %v3151_v35, %v7079_v52  ;;  %v5321_v10 = vpop.f32.mrb[35].mxu1 }
0x1aaa   :  { %v4722_v59 = vmul.f32 -1.442695, %v3044_v7 }
0x1aab   :  { %v4724_v63 = vmul.f32 -1.442695, %v3155_v44 }
0x1aac   :  { %5894 = vpow2.f32 %v4722_v59 }
0x1aad   :  { %5896 = vpow2.f32 %v4724_v63 }
0x1aae   :  { %5898 = vtanh.f32 %v3044_v7 }
0x1aaf   :  { %5900 = vtanh.f32 %v3155_v44 }
0x1ab6   :  { %v5895_v1 = vpop.eup %5894 }
0x1ab7   :  { %v5897_v5 = vpop.eup %5896  ;;  %v3049_v48 = vadd.f32 1.0, %v5895_v1 }
0x1ab8   :  { %v3160_v17 = vadd.f32 1.0, %v5897_v5  ;;  %v5899_v3 = vpop.eup %5898 }
0x1ab9   :  { %5902 = vrcp.f32 %v3049_v48  ;;  %v5901_v13 = vpop.eup %5900 }
0x1aba   :  { %5904 = vrcp.f32 %v3160_v17 }
0x1ac3   :  { %v5903_v47 = vpop.eup %5902 }
0x1ac4   :  { %v5905_v14 = vpop.eup %5904  ;;  %v3052_v52 = vsel %vm6388_vm4, %v5899_v3, %v5903_v47 }
0x1ac5   :  { %v3163_v49 = vsel %vm6388_vm4, %v5901_v13, %v5905_v14  ;;  %3055 = vrot.lane.b32.xlu1 %v3052_v52, %s6110_s29  ;;  %v3053_v42 = vmul.f32 %v3052_v52, %v7155_v21 }
0x1ac6   :  { %3166 = vrot.lane.b32.xlu0 %v3163_v49, %s6110_s29  ;;  %v3164_v33 = vmul.f32 %v3163_v49, %v7160_v36 }
0x1b37   :  { %v3056_v16 = vpop.permute.xlu1 %3055 }
0x1b38   :  { %v3167_v62 = vpop.permute.xlu0 %3166  ;;  %v3058_v18 = vmul.f32 %v3056_v16, %v3052_v52  ;;  %v3188_v16 = vld [vmem:[%s7573_s1 + $0x10] sm:$0xff] }
0x1b39   :  { %v3169_v19 = vmul.f32 %v3167_v62, %v3163_v49  ;;  %v3299_v62 = vld [vmem:[%s7573_s1 + $0x28] sm:$0xff]  ;;  %vm3189_vm12 = vcmp.gt.f32.partialorder %v3188_v16, 0.5 }
0x1b3a   :  { %3060 = vrot.lane.b32.xlu1 %v3058_v18, %s6111_s10  ;;  %vm3300_vm13 = vcmp.gt.f32.partialorder %v3299_v62, 0.5 }
0x1b3b   :  { %3171 = vrot.lane.b32.xlu0 %v3169_v19, %s6111_s10 }
0x1b3e   :  { %3072 = vperm.xlu1 %5749, %v3070_v58  }
0x1b3f   :  { %3183 = vperm.xlu0 %5748, %v3181_v20  }
0x1bac   :  { %v3061_v39 = vpop.permute.xlu1 %3060 }
0x1bad   :  { %v3172_v53 = vpop.permute.xlu0 %3171  ;;  %v7164_v37 = vadd.f32 %v3061_v39, %v3053_v42  ;;  %v3292_v42 = vsel %vm3189_vm12, 1, %v6109_v28 }
0x1bae   :  { %v7166_v60 = vadd.f32 %v3172_v53, %v3164_v33  ;;  %v3403_v33 = vsel %vm3300_vm13, 1, %v6109_v28 }
0x1baf   :  { %5906 = vtanh.f32 %v7164_v37 }
0x1bb0   :  { %5908 = vtanh.f32 %v7166_v60 }
0x1bb9   :  { %v5907_v50 = vpop.eup %5906 }
0x1bba   :  { %v5909_v40 = vpop.eup %5908  ;;  %3066 = vrot.lane.b32.xlu1 %v5907_v50, %s6110_s29 }
0x1bbb   :  { %3177 = vrot.lane.b32.xlu0 %v5909_v40, %s6110_s29 }
0x1bbd   :  { %v7172_v51 = vpop.permute.xlu1 %3072 }
0x1bbe   :  { %v7174_v4 = vpop.permute.xlu0 %3183  ;;  %vm3074_vm10 = vcmp.eq.s32.totalorder %v7172_v51, 1  ;;  %v4462_v51 = vld [vmem:[%s7586_s14] sm:$0xff] }
0x1bbf   :  { %vm3185_vm11 = vcmp.eq.s32.totalorder %v7174_v4, 1  ;;  %v7228_v39 = vsel %vm3074_vm10, %v7164_v37, %v7155_v21  ;;  %v4467_v4 = vld [vmem:[%s7586_s14 + $0x28] sm:$0xff] }
0x1bc0   :  { %v7234_v53 = vsel %vm3185_vm11, %v7166_v60, %v7160_v36 }
0x1c2c   :  { %v3067_v61 = vpop.permute.xlu1 %3066 }
0x1c2d   :  { %v3178_v57 = vpop.permute.xlu0 %3177  ;;  %v3069_v56 = vmul.f32 %v3067_v61, %v3052_v52 }
0x1c2e   :  { %v3180_v7 = vmul.f32 %v3178_v57, %v3163_v49 }
0x1c2f   :  { %v7181_v35 = vsel %vm3074_vm10, %v3069_v56, %v7110_v0 }
0x1c30   :  { %v7186_v9 = vsel %vm3185_vm11, %v3180_v7, %v7114_v54  ;;  %3192 = vrot.lane.b32.xlu1 %v7181_v35, %s6111_s10 }
0x1c31   :  { %3303 = vrot.lane.b32.xlu0 %v7186_v9, %s6111_s10 }
0x1ca2   :  { %v3193_v44 = vpop.permute.xlu1 %3192 }
0x1ca3   :  { %v3304_v10 = vpop.permute.xlu0 %3303  ;;  %5331 = vmatmul.mubr.msk.f32.vlgmr.msra.gmra.mrb[36].mxu0 %vm397_vm9, %v3193_v44 }
0x1ca4   :  { %5342 = vmatmul.mubr.msk.f32.vlgmr.msra.gmra.mrb[36].mxu1 %vm397_vm9, %v3304_v10  ;;  %5650 = vmatpush3.bf16.msra.mxu0 %v6993_v38 }
0x1ca5   :  { %5656 = vmatpush3.bf16.msra.mxu1 %v6995_v11  ;;  %5651 = vmatprep.subr.bf16.mxu0 %v6106_v12 }
0x1ca6   :  { %5657 = vmatprep.subr.bf16.mxu1 %v6106_v12  ;;  %5363 = vmatprep.mubr.msk.f32.mxu1 %vm6107_vm1, %v6108_v27 }
0x1ca7   :  { %5352 = vmatprep.mubr.msk.f32.mxu0 %vm6107_vm1, %v6108_v27 }
0x1ca8   :  { %5653 = vmatpush3.bf16.msra.mxu0 %v7015_v23 }
0x1ca9   :  { %5659 = vmatpush3.bf16.msra.mxu1 %v7017_v31  ;;  %5660 = vmatprep.subr.bf16.mxu0 %v6106_v12 }
0x1caa   :  { %5666 = vmatprep.subr.bf16.mxu1 %v6106_v12 }
0x1d76   :  { %v3262_v0 = vpop.f32.mrb[36].mxu0 }
0x1d77   :  { %v3266_v54 = vadd.f32 %v3262_v0, %v7063_v26  ;;  %v3373_v59 = vpop.f32.mrb[36].mxu1  ;;  %v5332_v63 = vpop.f32.mrb[37].mxu0 }
0x1d78   :  { %v3377_v1 = vadd.f32 %v3373_v59, %v7069_v41  ;;  %v5343_v5 = vpop.f32.mrb[37].mxu1 }
0x1d79   :  { %v4726_v48 = vmul.f32 -1.442695, %v3266_v54 }
0x1d7a   :  { %v4728_v17 = vmul.f32 -1.442695, %v3377_v1 }
0x1d7b   :  { %5910 = vpow2.f32 %v4726_v48 }
0x1d7c   :  { %5912 = vpow2.f32 %v4728_v17 }
0x1d7d   :  { %5914 = vtanh.f32 %v3266_v54 }
0x1d7e   :  { %5916 = vtanh.f32 %v3377_v1 }
0x1d85   :  { %v5911_v3 = vpop.eup %5910 }
0x1d86   :  { %v5913_v13 = vpop.eup %5912  ;;  %v3271_v47 = vadd.f32 1.0, %v5911_v3 }
0x1d87   :  { %v3382_v14 = vadd.f32 1.0, %v5913_v13  ;;  %v5915_v52 = vpop.eup %5914 }
0x1d88   :  { %5918 = vrcp.f32 %v3271_v47  ;;  %v5917_v49 = vpop.eup %5916 }
0x1d89   :  { %5920 = vrcp.f32 %v3382_v14 }
0x1d92   :  { %v5919_v26 = vpop.eup %5918 }
0x1d93   :  { %v5921_v55 = vpop.eup %5920  ;;  %v3274_v41 = vsel %vm6388_vm4, %v5915_v52, %v5919_v26 }
0x1d94   :  { %v3385_v8 = vsel %vm6388_vm4, %v5917_v49, %v5921_v55  ;;  %3277 = vrot.lane.b32.xlu1 %v3274_v41, %s6110_s29  ;;  %v3275_v50 = vmul.f32 %v3274_v41, %v7228_v39 }
0x1d95   :  { %3388 = vrot.lane.b32.xlu0 %v3385_v8, %s6110_s29  ;;  %v3386_v40 = vmul.f32 %v3385_v8, %v7234_v53 }
0x1e06   :  { %v3278_v18 = vpop.permute.xlu1 %3277 }
0x1e07   :  { %v3389_v19 = vpop.permute.xlu0 %3388  ;;  %v3280_v58 = vmul.f32 %v3278_v18, %v3274_v41  ;;  %v3410_v18 = vld [vmem:[%s7573_s1 + $0x18] sm:$0xff] }
0x1e08   :  { %v3391_v20 = vmul.f32 %v3389_v19, %v3385_v8  ;;  %v3521_v19 = vld [vmem:[%s7573_s1 + $0x20] sm:$0xff]  ;;  %vm3411_vm0 = vcmp.gt.f32.partialorder %v3410_v18, 0.5 }
0x1e09   :  { %3282 = vrot.lane.b32.xlu1 %v3280_v58, %s6111_s10  ;;  %vm3522_vm2 = vcmp.gt.f32.partialorder %v3521_v19, 0.5 }
0x1e0a   :  { %3393 = vrot.lane.b32.xlu0 %v3391_v20, %s6111_s10 }
0x1e0d   :  { %3294 = vperm.xlu1 %5749, %v3292_v42  }
0x1e0e   :  { %3405 = vperm.xlu0 %5748, %v3403_v33  }
0x1e7b   :  { %v3283_v61 = vpop.permute.xlu1 %3282 }
0x1e7c   :  { %v3394_v57 = vpop.permute.xlu0 %3393  ;;  %v7238_v56 = vadd.f32 %v3283_v61, %v3275_v50  ;;  %v3514_v50 = vsel %vm3411_vm0, 1, %v6109_v28 }
0x1e7d   :  { %v7240_v7 = vadd.f32 %v3394_v57, %v3386_v40  ;;  %v3625_v40 = vsel %vm3522_vm2, 1, %v6109_v28 }
0x1e7e   :  { %5922 = vtanh.f32 %v7238_v56 }
0x1e7f   :  { %5924 = vtanh.f32 %v7240_v7 }
0x1e88   :  { %v5923_v21 = vpop.eup %5922 }
0x1e89   :  { %v5925_v37 = vpop.eup %5924  ;;  %3288 = vrot.lane.b32.xlu1 %v5923_v21, %s6110_s29 }
0x1e8a   :  { %3399 = vrot.lane.b32.xlu0 %v5925_v37, %s6110_s29 }
0x1e8c   :  { %v7246_v36 = vpop.permute.xlu1 %3294 }
0x1e8d   :  { %v7248_v60 = vpop.permute.xlu0 %3405  ;;  %vm3296_vm14 = vcmp.eq.s32.totalorder %v7246_v36, 1 }
0x1e8e   :  { %vm3407_vm15 = vcmp.eq.s32.totalorder %v7248_v60, 1  ;;  %v7302_v61 = vsel %vm3296_vm14, %v7238_v56, %v7228_v39 }
0x1e8f   :  { %v7308_v57 = vsel %vm3407_vm15, %v7240_v7, %v7234_v53 }
0x1efb   :  { %v3289_v44 = vpop.permute.xlu1 %3288 }
0x1efc   :  { %v3400_v10 = vpop.permute.xlu0 %3399  ;;  %v3291_v0 = vmul.f32 %v3289_v44, %v3274_v41 }
0x1efd   :  { %v3402_v54 = vmul.f32 %v3400_v10, %v3385_v8 }
0x1efe   :  { %v7255_v59 = vsel %vm3296_vm14, %v3291_v0, %v7181_v35 }
0x1eff   :  { %v7260_v63 = vsel %vm3407_vm15, %v3402_v54, %v7186_v9  ;;  %3414 = vrot.lane.b32.xlu1 %v7255_v59, %s6111_s10 }
0x1f00   :  { %3525 = vrot.lane.b32.xlu0 %v7260_v63, %s6111_s10 }
0x1f71   :  { %v3415_v1 = vpop.permute.xlu1 %3414 }
0x1f72   :  { %v3526_v5 = vpop.permute.xlu0 %3525  ;;  %5353 = vmatmul.mubr.msk.f32.vlgmr.msra.gmra.mrb[38].mxu0 %vm397_vm9, %v3415_v1 }
0x1f73   :  { %5364 = vmatmul.mubr.msk.f32.vlgmr.msra.gmra.mrb[38].mxu1 %vm397_vm9, %v3526_v5  ;;  %5662 = vmatpush3.bf16.msra.mxu0 %v6993_v38 }
0x1f74   :  { %5668 = vmatpush3.bf16.msra.mxu1 %v6995_v11  ;;  %5663 = vmatprep.subr.bf16.mxu0 %v6106_v12 }
0x1f75   :  { %5669 = vmatprep.subr.bf16.mxu1 %v6106_v12  ;;  %5385 = vmatprep.mubr.msk.f32.mxu1 %vm6107_vm1, %v6108_v27 }
0x1f76   :  { %5374 = vmatprep.mubr.msk.f32.mxu0 %vm6107_vm1, %v6108_v27 }
0x1f77   :  { %5665 = vmatpush3.bf16.msra.mxu0 %v7015_v23 }
0x1f78   :  { %5671 = vmatpush3.bf16.msra.mxu1 %v7017_v31  ;;  %5672 = vmatprep.subr.bf16.mxu0 %v6106_v12 }
0x1f79   :  { %5678 = vmatprep.subr.bf16.mxu1 %v6106_v12 }
0x2045   :  { %v3484_v35 = vpop.f32.mrb[38].mxu0 }
0x2046   :  { %v3488_v9 = vadd.f32 %v3484_v35, %v7059_v25  ;;  %v3595_v48 = vpop.f32.mrb[38].mxu1  ;;  %v5354_v17 = vpop.f32.mrb[39].mxu0 }
0x2047   :  { %v3599_v3 = vadd.f32 %v3595_v48, %v7073_v43  ;;  %v5365_v13 = vpop.f32.mrb[39].mxu1 }
0x2048   :  { %v4730_v47 = vmul.f32 -1.442695, %v3488_v9 }
0x2049   :  { %v4732_v14 = vmul.f32 -1.442695, %v3599_v3 }
0x204a   :  { %5926 = vpow2.f32 %v4730_v47 }
0x204b   :  { %5928 = vpow2.f32 %v4732_v14 }
0x204c   :  { %5930 = vtanh.f32 %v3488_v9 }
0x204d   :  { %5932 = vtanh.f32 %v3599_v3 }
0x2054   :  { %v5927_v52 = vpop.eup %5926 }
0x2055   :  { %v5929_v49 = vpop.eup %5928  ;;  %v3493_v26 = vadd.f32 1.0, %v5927_v52 }
0x2056   :  { %v3604_v55 = vadd.f32 1.0, %v5929_v49  ;;  %v5931_v41 = vpop.eup %5930 }
0x2057   :  { %5934 = vrcp.f32 %v3493_v26  ;;  %v5933_v8 = vpop.eup %5932 }
0x2058   :  { %5936 = vrcp.f32 %v3604_v55 }
0x2061   :  { %v5935_v25 = vpop.eup %5934 }
0x2062   :  { %v5937_v16 = vpop.eup %5936  ;;  %v3496_v43 = vsel %vm6388_vm4, %v5931_v41, %v5935_v25 }
0x2063   :  { %v3607_v62 = vsel %vm6388_vm4, %v5933_v8, %v5937_v16  ;;  %3499 = vrot.lane.b32.xlu1 %v3496_v43, %s6110_s29  ;;  %v3497_v21 = vmul.f32 %v3496_v43, %v7302_v61 }
0x2064   :  { %3610 = vrot.lane.b32.xlu0 %v3607_v62, %s6110_s29  ;;  %v3608_v37 = vmul.f32 %v3607_v62, %v7308_v57 }
0x20d5   :  { %v3500_v58 = vpop.permute.xlu1 %3499 }
0x20d6   :  { %v3611_v20 = vpop.permute.xlu0 %3610  ;;  %v3502_v42 = vmul.f32 %v3500_v58, %v3496_v43 }
0x20d7   :  { %v3613_v33 = vmul.f32 %v3611_v20, %v3607_v62 }
0x20d8   :  { %3504 = vrot.lane.b32.xlu1 %v3502_v42, %s6111_s10 }
0x20d9   :  { %3615 = vrot.lane.b32.xlu0 %v3613_v33, %s6111_s10 }
0x20dc   :  { %3516 = vperm.xlu1 %5749, %v3514_v50  }
0x20dd   :  { %3627 = vperm.xlu0 %5748, %v3625_v40  }
0x214a   :  { %v3505_v44 = vpop.permute.xlu1 %3504 }
0x214b   :  { %v3616_v28 = vpop.permute.xlu0 %3615  ;;  %v7312_v10 = vadd.f32 %v3505_v44, %v3497_v21 }
0x214c   :  { %v7314_v0 = vadd.f32 %v3616_v28, %v3608_v37 }
0x214d   :  { %5938 = vtanh.f32 %v7312_v10 }
0x214e   :  { %5940 = vtanh.f32 %v7314_v0 }
0x2157   :  { %v5939_v39 = vpop.eup %5938 }
0x2158   :  { %v5941_v56 = vpop.eup %5940  ;;  %3510 = vrot.lane.b32.xlu1 %v5939_v39, %s6110_s29 }
0x2159   :  { %3621 = vrot.lane.b32.xlu0 %v5941_v56, %s6110_s29 }
0x215b   :  { %v7320_v53 = vpop.permute.xlu1 %3516 }
0x215c   :  { %v7322_v7 = vpop.permute.xlu0 %3627  ;;  %vm3518_vm3 = vcmp.eq.s32.totalorder %v7320_v53, 1 }
0x215d   :  { %vm3629_vm7 = vcmp.eq.s32.totalorder %v7322_v7, 1  ;;  %v7368_v33 = vsel %vm3518_vm3, %v7312_v10, %v7302_v61 }
0x215e   :  { %v7374_v50 = vsel %vm3629_vm7, %v7314_v0, %v7308_v57 }
0x21ca   :  { %v3511_v54 = vpop.permute.xlu1 %3510 }
0x21cb   :  { %v3622_v1 = vpop.permute.xlu0 %3621  ;;  %v3513_v5 = vmul.f32 %v3511_v54, %v3496_v43 }
0x21cc   :  { %v3624_v35 = vmul.f32 %v3622_v1, %v3607_v62 }
0x21cd   :  { %v7329_v9 = vsel %vm3518_vm3, %v3513_v5, %v7255_v59 }
0x21ce   :  { %v7334_v48 = vsel %vm3629_vm7, %v3624_v35, %v7260_v63  ;;  %3634 = vrot.lane.b32.xlu1 %v7329_v9, %s6111_s10 }
0x21cf   :  { %3738 = vrot.lane.b32.xlu0 %v7334_v48, %s6111_s10 }
0x2240   :  { %v3635_v17 = vpop.permute.xlu1 %3634 }
0x2241   :  { %v3739_v3 = vpop.permute.xlu0 %3738  ;;  %5375 = vmatmul.mubr.msk.f32.vlgmr.msra.gmra.mrb[40].mxu0 %vm397_vm9, %v3635_v17 }
0x2242   :  { %5386 = vmatmul.mubr.msk.f32.vlgmr.msra.gmra.mrb[40].mxu1 %vm397_vm9, %v3739_v3  ;;  %5674 = vmatpush3.bf16.msra.mxu0 %v6993_v38 }
0x2243   :  { %5680 = vmatpush3.bf16.msra.mxu1 %v6995_v11  ;;  %5675 = vmatprep.subr.bf16.mxu0 %v6106_v12 }
0x2244   :  { %5681 = vmatprep.subr.bf16.mxu1 %v6106_v12  ;;  %5407 = vmatprep.mubr.msk.f32.mxu1 %vm6107_vm1, %v6108_v27 }
0x2245   :  { %5396 = vmatprep.mubr.msk.f32.mxu0 %vm6107_vm1, %v6108_v27 }
0x2246   :  { %5677 = vmatpush3.bf16.msra.mxu0 %v7015_v23 }
0x2247   :  { %5683 = vmatpush3.bf16.msra.mxu1 %v7017_v31  ;;  %5684 = vmatprep.subr.bf16.mxu0 %v6106_v12 }
0x2248   :  { %5690 = vmatprep.subr.bf16.mxu1 %v6106_v12 }
0x2314   :  { %v3704_v59 = vpop.f32.mrb[40].mxu0 }
0x2315   :  { %v3708_v63 = vadd.f32 %v3704_v59, %v7071_v2  ;;  %v3808_v13 = vpop.f32.mrb[40].mxu1  ;;  %v5376_v47 = vpop.f32.mrb[41].mxu0 }
0x2316   :  { %v3812_v14 = vadd.f32 %v3808_v13, %v7061_v45  ;;  %v5387_v52 = vpop.f32.mrb[41].mxu1 }
0x2317   :  { %v4734_v49 = vmul.f32 -1.442695, %v3708_v63 }
0x2318   :  { %v4736_v26 = vmul.f32 -1.442695, %v3812_v14 }
0x2319   :  { %5942 = vpow2.f32 %v4734_v49 }
0x231a   :  { %5944 = vpow2.f32 %v4736_v26 }
0x231b   :  { %5946 = vtanh.f32 %v3708_v63 }
0x231c   :  { %5948 = vtanh.f32 %v3812_v14 }
0x2323   :  { %v5943_v55 = vpop.eup %5942 }
0x2324   :  { %v5945_v41 = vpop.eup %5944  ;;  %v3713_v8 = vadd.f32 1.0, %v5943_v55 }
0x2325   :  { %v3817_v25 = vadd.f32 1.0, %v5945_v41  ;;  %v5947_v16 = vpop.eup %5946 }
0x2326   :  { %5950 = vrcp.f32 %v3713_v8  ;;  %v5949_v43 = vpop.eup %5948 }
0x2327   :  { %5952 = vrcp.f32 %v3817_v25 }
0x2330   :  { %v5951_v2 = vpop.eup %5950 }
0x2331   :  { %v5953_v62 = vpop.eup %5952  ;;  %v3716_v45 = vsel %vm6388_vm4, %v5947_v16, %v5951_v2 }
0x2332   :  { %v3820_v18 = vsel %vm6388_vm4, %v5949_v43, %v5953_v62  ;;  %3719 = vrot.lane.b32.xlu1 %v3716_v45, %s6110_s29  ;;  %v3717_v40 = vmul.f32 %v3716_v45, %v7368_v33 }
0x2333   :  { %3823 = vrot.lane.b32.xlu0 %v3820_v18, %s6110_s29  ;;  %v3821_v21 = vmul.f32 %v3820_v18, %v7374_v50 }
0x23a4   :  { %v3720_v19 = vpop.permute.xlu1 %3719 }
0x23a5   :  { %v3824_v58 = vpop.permute.xlu0 %3823  ;;  %v3722_v20 = vmul.f32 %v3720_v19, %v3716_v45 }
0x23a6   :  { %v3826_v42 = vmul.f32 %v3824_v58, %v3820_v18 }
0x23a7   :  { %3724 = vrot.lane.b32.xlu1 %v3722_v20, %s6111_s10 }
0x23a8   :  { %3828 = vrot.lane.b32.xlu0 %v3826_v42, %s6111_s10 }
0x2419   :  { %v3725_v37 = vpop.permute.xlu1 %3724 }
0x241a   :  { %v3829_v44 = vpop.permute.xlu0 %3828  ;;  %v7378_v28 = vadd.f32 %v3725_v37, %v3717_v40 }
0x241b   :  { %v7380_v39 = vadd.f32 %v3829_v44, %v3821_v21 }
0x241c   :  { %5954 = vtanh.f32 %v7378_v28 }
0x241d   :  { %5956 = vtanh.f32 %v7380_v39  ;;  %v7434_v19 = vsel %vm3518_vm3, %v7380_v39, %v7374_v50 }
0x2426   :  { %v5955_v61 = vpop.eup %5954 }
0x2427   :  { %v5957_v10 = vpop.eup %5956  ;;  %3730 = vrot.lane.b32.xlu1 %v5955_v61, %s6110_s29 }
0x2428   :  { %3834 = vrot.lane.b32.xlu0 %v5957_v10, %s6110_s29 }
0x2499   :  { %v3731_v57 = vpop.permute.xlu1 %3730 }
0x249a   :  { %v3835_v0 = vpop.permute.xlu0 %3834  ;;  %v3733_v56 = vmul.f32 %v3731_v57, %v3716_v45 }
0x249b   :  { %v3837_v54 = vmul.f32 %v3835_v0, %v3820_v18  ;;  %v7428_v18 = vsel %vm3629_vm7, %v7378_v28, %v7368_v33 }
0x249c   :  { %v7389_v1 = vsel %vm3629_vm7, %v3733_v56, %v7329_v9 }
0x249d   :  { %v7394_v5 = vsel %vm3518_vm3, %v3837_v54, %v7334_v48  ;;  %3842 = vrot.lane.b32.xlu1 %v7389_v1, %s6111_s10 }
0x249e   :  { %3946 = vrot.lane.b32.xlu0 %v7394_v5, %s6111_s10 }
0x250f   :  { %v3843_v35 = vpop.permute.xlu1 %3842 }
0x2510   :  { %v3947_v17 = vpop.permute.xlu0 %3946  ;;  %5397 = vmatmul.mubr.msk.f32.vlgmr.msra.gmra.mrb[42].mxu0 %vm397_vm9, %v3843_v35 }
0x2511   :  { %5408 = vmatmul.mubr.msk.f32.vlgmr.msra.gmra.mrb[42].mxu1 %vm397_vm9, %v3947_v17  ;;  %5686 = vmatpush3.bf16.msra.mxu0 %v6993_v38 }
0x2512   :  { %5692 = vmatpush3.bf16.msra.mxu1 %v6995_v11  ;;  %5687 = vmatprep.subr.bf16.mxu0 %v6106_v12 }
0x2513   :  { %5693 = vmatprep.subr.bf16.mxu1 %v6106_v12  ;;  %5429 = vmatprep.mubr.msk.f32.mxu1 %vm6107_vm1, %v6108_v27 }
0x2514   :  { %5418 = vmatprep.mubr.msk.f32.mxu0 %vm6107_vm1, %v6108_v27 }
0x2515   :  { %5689 = vmatpush3.bf16.msra.mxu0 %v7015_v23 }
0x2516   :  { %5695 = vmatpush3.bf16.msra.mxu1 %v7017_v31  ;;  %5696 = vmatprep.subr.bf16.mxu0 %v6106_v12 }
0x2517   :  { %5702 = vmatprep.subr.bf16.mxu1 %v6106_v12 }
0x25e3   :  { %v3912_v9 = vpop.f32.mrb[42].mxu0 }
0x25e4   :  { %v3916_v48 = vadd.f32 %v3912_v9, %v7067_v46  ;;  %v4016_v3 = vpop.f32.mrb[42].mxu1  ;;  %v5398_v59 = vpop.f32.mrb[43].mxu0 }
0x25e5   :  { %v4020_v63 = vadd.f32 %v4016_v3, %v7065_v29  ;;  %v5409_v13 = vpop.f32.mrb[43].mxu1 }
0x25e6   :  { %v4738_v47 = vmul.f32 -1.442695, %v3916_v48 }
0x25e7   :  { %v4740_v14 = vmul.f32 -1.442695, %v4020_v63 }
0x25e8   :  { %5958 = vpow2.f32 %v4738_v47 }
0x25e9   :  { %5960 = vpow2.f32 %v4740_v14 }
0x25ea   :  { %5962 = vtanh.f32 %v3916_v48 }
0x25eb   :  { %5964 = vtanh.f32 %v4020_v63 }
0x25f2   :  { %v5959_v52 = vpop.eup %5958 }
0x25f3   :  { %v5961_v49 = vpop.eup %5960  ;;  %v3921_v26 = vadd.f32 1.0, %v5959_v52 }
0x25f4   :  { %v4025_v55 = vadd.f32 1.0, %v5961_v49  ;;  %v5963_v41 = vpop.eup %5962 }
0x25f5   :  { %5966 = vrcp.f32 %v3921_v26  ;;  %v5965_v8 = vpop.eup %5964 }
0x25f6   :  { %5968 = vrcp.f32 %v4025_v55 }
0x25ff   :  { %v5967_v46 = vpop.eup %5966 }
0x2600   :  { %v5969_v25 = vpop.eup %5968  ;;  %v3924_v29 = vsel %vm6388_vm4, %v5963_v41, %v5967_v46 }
0x2601   :  { %v4028_v16 = vsel %vm6388_vm4, %v5965_v8, %v5969_v25  ;;  %3927 = vrot.lane.b32.xlu1 %v3924_v29, %s6110_s29  ;;  %v3925_v58 = vmul.f32 %v3924_v29, %v7428_v18 }
0x2602   :  { %4031 = vrot.lane.b32.xlu0 %v4028_v16, %s6110_s29  ;;  %v4029_v20 = vmul.f32 %v4028_v16, %v7434_v19 }
0x2673   :  { %v3928_v43 = vpop.permute.xlu1 %3927 }
0x2674   :  { %v4032_v2 = vpop.permute.xlu0 %4031  ;;  %v3930_v62 = vmul.f32 %v3928_v43, %v3924_v29 }
0x2675   :  { %v4034_v45 = vmul.f32 %v4032_v2, %v4028_v16 }
0x2676   :  { %3932 = vrot.lane.b32.xlu1 %v3930_v62, %s6111_s10 }
0x2677   :  { %4036 = vrot.lane.b32.xlu0 %v4034_v45, %s6111_s10 }
0x26e8   :  { %v3933_v42 = vpop.permute.xlu1 %3932 }
0x26e9   :  { %v4037_v40 = vpop.permute.xlu0 %4036  ;;  %v7438_v21 = vadd.f32 %v3933_v42, %v3925_v58 }
0x26ea   :  { %v7440_v37 = vadd.f32 %v4037_v40, %v4029_v20 }
0x26eb   :  { %5970 = vtanh.f32 %v7438_v21  ;;  %v3943_v49 = vsel %vm3407_vm15, %v7438_v21, %v7428_v18 }
0x26ec   :  { %5972 = vtanh.f32 %v7440_v37  ;;  %v4047_v26 = vsel %vm3296_vm14, %v7440_v37, %v7434_v19 }
0x26f5   :  { %v5971_v7 = vpop.eup %5970 }
0x26f6   :  { %v5973_v33 = vpop.eup %5972  ;;  %3938 = vrot.lane.b32.xlu1 %v5971_v7, %s6110_s29 }
0x26f7   :  { %4042 = vrot.lane.b32.xlu0 %v5973_v33, %s6110_s29 }
0x2768   :  { %v3939_v53 = vpop.permute.xlu1 %3938 }
0x2769   :  { %v4043_v50 = vpop.permute.xlu0 %4042  ;;  %v3941_v44 = vmul.f32 %v3939_v53, %v3924_v29 }
0x276a   :  { %v4045_v28 = vmul.f32 %v4043_v50, %v4028_v16 }
0x276b   :  { %v7449_v39 = vsel %vm3407_vm15, %v3941_v44, %v7389_v1 }
0x276c   :  { %v7454_v61 = vsel %vm3296_vm14, %v4045_v28, %v7394_v5  ;;  %4050 = vrot.lane.b32.xlu1 %v7449_v39, %s6111_s10 }
0x276d   :  { %4154 = vrot.lane.b32.xlu0 %v7454_v61, %s6111_s10 }
0x27de   :  { %v4051_v10 = vpop.permute.xlu1 %4050 }
0x27df   :  { %v4155_v57 = vpop.permute.xlu0 %4154  ;;  %5419 = vmatmul.mubr.msk.f32.vlgmr.msra.gmra.mrb[44].mxu0 %vm397_vm9, %v4051_v10 }
0x27e0   :  { %5430 = vmatmul.mubr.msk.f32.vlgmr.msra.gmra.mrb[44].mxu1 %vm397_vm9, %v4155_v57  ;;  %5698 = vmatpush3.bf16.msra.mxu0 %v6993_v38 }
0x27e1   :  { %5704 = vmatpush3.bf16.msra.mxu1 %v6995_v11  ;;  %5699 = vmatprep.subr.bf16.mxu0 %v6106_v12 }
0x27e2   :  { %5705 = vmatprep.subr.bf16.mxu1 %v6106_v12  ;;  %5451 = vmatprep.mubr.msk.f32.mxu1 %vm6107_vm1, %v6108_v27 }
0x27e3   :  { %5440 = vmatprep.mubr.msk.f32.mxu0 %vm6107_vm1, %v6108_v27 }
0x27e4   :  { %5701 = vmatpush3.bf16.msra.mxu0 %v7015_v23 }
0x27e5   :  { %5707 = vmatpush3.bf16.msra.mxu1 %v7017_v31  ;;  %5708 = vmatprep.subr.bf16.mxu0 %v6106_v12 }
0x27e6   :  { %5714 = vmatprep.subr.bf16.mxu1 %v6106_v12 }
0x28b2   :  { %v4120_v38 = vpop.f32.mrb[44].mxu0 }
0x28b3   :  { %v4124_v11 = vadd.f32 %v4120_v38, %v7077_v6  ;;  %v4224_v0 = vpop.f32.mrb[44].mxu1  ;;  %v5420_v56 = vpop.f32.mrb[45].mxu0 }
0x28b4   :  { %v4228_v54 = vadd.f32 %v4224_v0, %v7055_v24  ;;  %v5431_v1 = vpop.f32.mrb[45].mxu1 }
0x28b5   :  { %v4742_v5 = vmul.f32 -1.442695, %v4124_v11 }
0x28b6   :  { %v4744_v35 = vmul.f32 -1.442695, %v4228_v54 }
0x28b7   :  { %5974 = vpow2.f32 %v4742_v5 }
0x28b8   :  { %5976 = vpow2.f32 %v4744_v35 }
0x28b9   :  { %5978 = vtanh.f32 %v4124_v11 }
0x28ba   :  { %5980 = vtanh.f32 %v4228_v54 }
0x28c1   :  { %v5975_v17 = vpop.eup %5974 }
0x28c2   :  { %v5977_v23 = vpop.eup %5976  ;;  %v4129_v31 = vadd.f32 1.0, %v5975_v17 }
0x28c3   :  { %v4233_v9 = vadd.f32 1.0, %v5977_v23  ;;  %v5979_v48 = vpop.eup %5978 }
0x28c4   :  { %5982 = vrcp.f32 %v4129_v31  ;;  %v5981_v3 = vpop.eup %5980 }
0x28c5   :  { %5984 = vrcp.f32 %v4233_v9  ;;  %v4466_v9 = vld [vmem:[%s7586_s14 + $0x20] sm:$0xff] }
0x28ce   :  { %v5983_v6 = vpop.eup %5982 }
0x28cf   :  { %v5985_v59 = vpop.eup %5984  ;;  %v4132_v24 = vsel %vm6388_vm4, %v5979_v48, %v5983_v6  ;;  %v5709_v48 = vpack.c.bf16 %v4467_v4, %v4466_v9  ;;  %v4468_v6 = vld [vmem:[%s7586_s14 + $0x30] sm:$0xff] }
0x28d0   :  { %v4236_v63 = vsel %vm6388_vm4, %v5981_v3, %v5985_v59  ;;  %4135 = vrot.lane.b32.xlu1 %v4132_v24, %s6110_s29  ;;  %v4133_v55 = vmul.f32 %v4132_v24, %v3943_v49  ;;  %v4463_v3 = vld [vmem:[%s7586_s14 + $0x8] sm:$0xff]  ;;  %v4469_v59 = vld [vmem:[%s7586_s14 + $0x38] sm:$0xff] }
0x28d1   :  { %4239 = vrot.lane.b32.xlu0 %v4236_v63, %s6110_s29  ;;  %v4237_v41 = vmul.f32 %v4236_v63, %v4047_v26 }
0x2942   :  { %v4136_v13 = vpop.permute.xlu1 %4135 }
0x2943   :  { %v4240_v47 = vpop.permute.xlu0 %4239  ;;  %v4138_v14 = vmul.f32 %v4136_v13, %v4132_v24  ;;  %v4465_v13 = vld [vmem:[%s7586_s14 + $0x18] sm:$0xff] }
0x2944   :  { %v4242_v52 = vmul.f32 %v4240_v47, %v4236_v63  ;;  %v5712_v47 = vpack.c.bf16 %v4469_v59, %v4468_v6 }
0x2945   :  { %4140 = vrot.lane.b32.xlu1 %v4138_v14, %s6111_s10 }
0x2946   :  { %4244 = vrot.lane.b32.xlu0 %v4242_v52, %s6111_s10 }
0x29b7   :  { %v4141_v8 = vpop.permute.xlu1 %4140 }
0x29b8   :  { %v4245_v46 = vpop.permute.xlu0 %4244  ;;  %v4143_v25 = vadd.f32 %v4141_v8, %v4133_v55 }
0x29b9   :  { %v4247_v29 = vadd.f32 %v4245_v46, %v4237_v41 }
0x29ba   :  { %5986 = vtanh.f32 %v4143_v25  ;;  %v4151_v54 = vsel %vm3185_vm11, %v4143_v25, %v3943_v49 }
0x29bb   :  { %5988 = vtanh.f32 %v4247_v29  ;;  %v4255_v1 = vsel %vm3074_vm10, %v4247_v29, %v4047_v26 }
0x29c4   :  { %v5987_v16 = vpop.eup %5986 }
0x29c5   :  { %v5989_v43 = vpop.eup %5988  ;;  %4146 = vrot.lane.b32.xlu1 %v5987_v16, %s6110_s29 }
0x29c6   :  { %4250 = vrot.lane.b32.xlu0 %v5989_v43, %s6110_s29 }
0x2a37   :  { %v4147_v60 = vpop.permute.xlu1 %4146 }
0x2a38   :  { %v4251_v2 = vpop.permute.xlu0 %4250  ;;  %v4149_v62 = vmul.f32 %v4147_v60, %v4132_v24  ;;  %v5715_v24 = vpack.c.bf16 %v4463_v3, %v4462_v51 }
0x2a39   :  { %v4253_v45 = vmul.f32 %v4251_v2, %v4236_v63  ;;  %v4464_v63 = vld [vmem:[%s7586_s14 + $0x10] sm:$0xff] }
0x2a3a   :  { %v7497_v36 = vsel %vm3185_vm11, %v4149_v62, %v7449_v39  ;;  %v5718_v14 = vpack.c.bf16 %v4465_v13, %v4464_v63 }
0x2a3b   :  { %v7502_v18 = vsel %vm3074_vm10, %v4253_v45, %v7454_v61  ;;  %4258 = vrot.lane.b32.xlu1 %v7497_v36, %s6111_s10 }
0x2a3c   :  { %4361 = vrot.lane.b32.xlu0 %v7502_v18, %s6111_s10 }
0x2aad   :  { %v4259_v19 = vpop.permute.xlu1 %4258 }
0x2aae   :  { %v4362_v58 = vpop.permute.xlu0 %4361  ;;  %5441 = vmatmul.mubr.msk.f32.vlgmr.msra.gmra.mrb[46].mxu0 %vm397_vm9, %v4259_v19 }
0x2aaf   :  { %5452 = vmatmul.mubr.msk.f32.vlgmr.msra.gmra.mrb[46].mxu1 %vm397_vm9, %v4362_v58  ;;  %5462 = vmatprep.mubr.msk.f32.mxu0 %vm6107_vm1, %v6108_v27 }
0x2ab0   :  { %5473 = vmatprep.mubr.msk.f32.mxu1 %vm6107_vm1, %v6108_v27  ;;  %5710 = vmatpush3.bf16.msra.mxu0 %v5709_v48  ;;  %vm4628_vm1 = vcmask 31744  }
0x2ab1   :  { %5716 = vmatpush3.bf16.msra.mxu1 %v5715_v24  ;;  %5711 = vmatprep.subr.bf16.mxu0 %v6106_v12 }
0x2ab2   :  { %5717 = vmatprep.subr.bf16.mxu1 %v6106_v12 }
0x2ab4   :  { %5713 = vmatpush3.bf16.msra.mxu0 %v5712_v47 }
0x2ab5   :  { %5719 = vmatpush3.bf16.msra.mxu1 %v5718_v14 }
0x2b81   :  { %v4328_v20 = vpop.f32.mrb[46].mxu0 }
0x2b82   :  { %v4332_v42 = vadd.f32 %v4328_v20, %v7075_v34  ;;  %v4431_v40 = vpop.f32.mrb[46].mxu1  ;;  %v5442_v21 = vpop.f32.mrb[47].mxu0 }
0x2b83   :  { %v4435_v37 = vadd.f32 %v4431_v40, %v7057_v32  ;;  %v5453_v7 = vpop.f32.mrb[47].mxu1 }
0x2b84   :  { %v4746_v33 = vmul.f32 -1.442695, %v4332_v42 }
0x2b85   :  { %v4748_v53 = vmul.f32 -1.442695, %v4435_v37 }
0x2b86   :  { %5990 = vpow2.f32 %v4746_v33 }
0x2b87   :  { %5992 = vpow2.f32 %v4748_v53 }
0x2b88   :  { %5994 = vtanh.f32 %v4332_v42 }
0x2b89   :  { %5996 = vtanh.f32 %v4435_v37 }
0x2b90   :  { %v5991_v50 = vpop.eup %5990 }
0x2b91   :  { %v5993_v44 = vpop.eup %5992  ;;  %v4337_v28 = vadd.f32 1.0, %v5991_v50 }
0x2b92   :  { %v4440_v39 = vadd.f32 1.0, %v5993_v44  ;;  %v5995_v27 = vpop.eup %5994 }
0x2b93   :  { %5998 = vrcp.f32 %v4337_v28  ;;  %v5997_v61 = vpop.eup %5996 }
0x2b94   :  { %6000 = vrcp.f32 %v4440_v39 }
0x2b9d   :  { %v5999_v34 = vpop.eup %5998 }
0x2b9e   :  { %v6001_v10 = vpop.eup %6000  ;;  %v4340_v32 = vsel %vm6388_vm4, %v5995_v27, %v5999_v34 }
0x2b9f   :  { %v4443_v57 = vsel %vm6388_vm4, %v5997_v61, %v6001_v10  ;;  %4343 = vrot.lane.b32.xlu1 %v4340_v32, %s6110_s29  ;;  %v4341_v15 = vmul.f32 %v4340_v32, %v4151_v54 }
0x2ba0   :  { %4446 = vrot.lane.b32.xlu0 %v4443_v57, %s6110_s29  ;;  %v4444_v5 = vmul.f32 %v4443_v57, %v4255_v1 }
0x2c11   :  { %v4344_v38 = vpop.permute.xlu1 %4343 }
0x2c12   :  { %v4447_v11 = vpop.permute.xlu0 %4446  ;;  %v4346_v0 = vmul.f32 %v4344_v38, %v4340_v32 }
0x2c13   :  { %v4449_v56 = vmul.f32 %v4447_v11, %v4443_v57 }
0x2c14   :  { %4348 = vrot.lane.b32.xlu1 %v4346_v0, %s6111_s10 }
0x2c15   :  { %4451 = vrot.lane.b32.xlu0 %v4449_v56, %s6111_s10 }
0x2c86   :  { %v4349_v35 = vpop.permute.xlu1 %4348 }
0x2c87   :  { %v4452_v17 = vpop.permute.xlu0 %4451  ;;  %v4351_v23 = vadd.f32 %v4349_v35, %v4341_v15 }
0x2c88   :  { %v4454_v31 = vadd.f32 %v4452_v17, %v4444_v5 }
0x2c89   :  { %6002 = vtanh.f32 %v4351_v23 }
0x2c8a   :  { %6004 = vtanh.f32 %v4454_v31 }
0x2c93   :  { %v6003_v52 = vpop.eup %6002 }
0x2c94   :  { %v6005_v49 = vpop.eup %6004  ;;  %4354 = vrot.lane.b32.xlu1 %v6003_v52, %s6110_s29 }
0x2c95   :  { %4457 = vrot.lane.b32.xlu0 %v6005_v49, %s6110_s29 }
0x2d06   :  { %v4355_v26 = vpop.permute.xlu1 %4354 }
0x2d07   :  { %v4458_v55 = vpop.permute.xlu0 %4457  ;;  %v4357_v41 = vmul.f32 %v4355_v26, %v4340_v32 }
0x2d08   :  { %v4460_v8 = vmul.f32 %v4458_v55, %v4443_v57 }
0x2d09   :  { %v4358_v46 = vsel %vm2963_vm6, %v4357_v41, %v7497_v36 }
0x2d0a   :  { %v4461_v12 = vsel %vm2857_vm5, %v4460_v8, %v7502_v18  ;;  %4471 = vrot.lane.b32.xlu1 %v4358_v46, %s6111_s10 }
0x2d0b   :  { %4546 = vrot.lane.b32.xlu0 %v4461_v12, %s6111_s10 }
0x2d7c   :  { %v4472_v25 = vpop.permute.xlu1 %4471 }
0x2d7d   :  { %v4547_v29 = vpop.permute.xlu0 %4546  ;;  %5463 = vmatmul.mubr.msk.f32.vlgmr.msra.gmra.mrb[48].mxu0 %vm397_vm9, %v4472_v25 }
0x2d7e   :  { %5474 = vmatmul.mubr.msk.f32.vlgmr.msra.gmra.mrb[48].mxu1 %vm397_vm9, %v4547_v29 }
0x2e50   :  { %v4541_v16 = vpop.f32.mrb[48].mxu0 }
0x2e51   :  { %v4616_v43 = vpop.f32.mrb[48].mxu1  ;;  %v5464_v60 = vpop.f32.mrb[49].mxu0 }
0x2e52   :  { %v4617_v2 = vadd.f32 %v4616_v43, %v4541_v16  ;;  %v5475_v30 = vpop.f32.mrb[49].mxu1 }
0x2e54   :  { %v4627_v62 = vadd.f32 %v4751_v22, %v4617_v2 }
0x2e56   :  { %4629 = vst.msk [vmem:[%s7588_s16] sm:$0xff] %vm4628_vm1, %v4627_v62 }
0x2e57   :  { %4634 = vsyncpa [#allocation7], 1 }
0x2e58   :  { %4635 = vsyncpa [#allocation9], 1 }
0x2e59   :  { %4636 = vsyncpa [#allocation12], 1 }

</bundles_post_ra>
